<compile_context>
chip_gen: v5e
topology: v5e:2x2
jax: 0.10.0
libtpu: 0.0.40
codegen_flags: <defaults>
</compile_context>

<pallas_src>
import functools

import jax
import jax.numpy as jnp
from jax.experimental import pallas as pl
from jax.experimental.pallas import tpu as pltpu

NUM_CLASSES = 100
EPS = 1e-5
POOL = 8            # 3x MaxPool2d(2,2) == one 8x8 / stride-8 max pool
HID_PAD = 128       # padded hidden width (real widths: 16 and 8)
OUT_PAD = 128       # padded logits width (real width: 100)


def _pick_row_tile(total, cap):
    """Largest divisor of `total` that is a multiple of 8, <= cap, and (when
    possible) gives >= 2 grid steps so the pipeline double-buffers.  Falls back
    to the full extent, which is always a legal second-minor block dim."""
    hi = min(cap, total // 2)
    for r in range(hi, 7, -1):
        if total % r == 0 and r % 8 == 0:
            return r
    return total


# ---------------------------------------------------------------------------
# pltpu.roll probe: detect shift direction (and that a 224-lane roll lowers).
# Runs eagerly at import time, outside jit.  Any failure -> safe fallback path.
# ---------------------------------------------------------------------------
def _probe_roll_mode():
    try:
        def k(x_ref, o_ref):
            o_ref[...] = pltpu.roll(x_ref[...], 1, 1)

        x = jnp.broadcast_to(jnp.arange(224, dtype=jnp.float32)[None, :], (8, 224))
        out = pl.pallas_call(
            k, out_shape=jax.ShapeDtypeStruct((8, 224), jnp.float32))(x)
        out = jax.block_until_ready(out)
        a, b = float(out[0, 0]), float(out[0, 1])
        if a == 223.0 and b == 0.0:
            return "fwd"     # out[i] = in[i-1]  (jnp.roll convention)
        if a == 1.0 and b == 2.0:
            return "rev"     # out[i] = in[i+1]
        return None
    except Exception:
        return None


_ROLL_MODE = _probe_roll_mode()


# ---------------------------------------------------------------------------
# Kernel 1: 8x8 max pool, streaming the natural (rows, 8, 224) layout
# ---------------------------------------------------------------------------
def _pool_kernel(x_ref, sel_ref, o_ref, *, roll_mode):
    # x_ref:   (R, 8, 224)   the 8 input rows feeding each output row
    # sel_ref: (8, 224, 28)  sel[k, w, j] = (w == 8*j + k)   exact one-hot gathers
    # o_ref:   (R, 28)
    r = jnp.max(x_ref[...], axis=1)                        # row-window max (sublane reduce)
    if roll_mode is not None:
        # 3-step roll+max tree over lanes; afterwards one lane per 8-wide window
        # holds that window's max (which lane depends on the roll direction).
        r = jnp.maximum(r, pltpu.roll(r, 1, 1))
        r = jnp.maximum(r, pltpu.roll(r, 2, 1))
        r = jnp.maximum(r, pltpu.roll(r, 4, 1))
        pick = 7 if roll_mode == "fwd" else 0
        o_ref[...] = jnp.dot(r, sel_ref[pick], preferred_element_type=jnp.float32)
    else:
        # Fallback: max of 8 exact one-hot gathers on the MXU (no cross-lane ops).
        acc = jnp.dot(r, sel_ref[0], preferred_element_type=jnp.float32)
        for k in range(1, POOL):
            acc = jnp.maximum(
                acc, jnp.dot(r, sel_ref[k], preferred_element_type=jnp.float32))
        o_ref[...] = acc


def maxpool8x8(x_nchw):
    N, C, H, W = x_nchw.shape
    Ho, Wo = H // POOL, W // POOL
    rows = N * C * Ho
    # copy-free reshape only: no transpose, no extra HBM round-trip
    x3 = x_nchw.reshape(rows, POOL, W)

    k_idx = jnp.arange(POOL, dtype=jnp.int32)[:, None, None]
    w_idx = jnp.arange(W, dtype=jnp.int32)[None, :, None]
    j_idx = jnp.arange(Wo, dtype=jnp.int32)[None, None, :]
    sel = (w_idx == j_idx * POOL + k_idx).astype(jnp.float32)      # (8, W, Wo)

    # <= ~3.2 MiB per input buffer (double-buffered) -> fits v7x 32 MiB scoped VMEM
    R = _pick_row_tile(rows, 448)

    out = pl.pallas_call(
        functools.partial(_pool_kernel, roll_mode=_ROLL_MODE),
        out_shape=jax.ShapeDtypeStruct((rows, Wo), jnp.float32),
        grid=(rows // R,),
        in_specs=[
            pl.BlockSpec((R, POOL, W), lambda i: (i, 0, 0)),
            pl.BlockSpec((POOL, W, Wo), lambda i: (0, 0, 0)),      # VMEM-resident
        ],
        out_specs=pl.BlockSpec((R, Wo), lambda i: (i, 0)),
        compiler_params=pltpu.CompilerParams(dimension_semantics=("parallel",)),
    )(x3, sel)
    # (N, C*Ho*Wo) == torch.flatten(pooled, start_dim=1)  (row-major C, H, W)
    return out.reshape(N, C * Ho * Wo)


# ---------------------------------------------------------------------------
# Kernel 2: classifier MLP with BN folded into the Linears, lane-dense (128) widths
# ---------------------------------------------------------------------------
def _mlp_kernel(x_ref, w1_ref, b1_ref, w2_ref, b2_ref, w3_ref, b3_ref, o_ref):
    h = jnp.dot(x_ref[...], w1_ref[...], preferred_element_type=jnp.float32) + b1_ref[...]
    h = jnp.maximum(h, 0.0)
    # Dropout(p=0.5) is identity in eval mode
    h = jnp.dot(h, w2_ref[...], preferred_element_type=jnp.float32) + b2_ref[...]
    h = jnp.maximum(h, 0.0)
    o_ref[...] = jnp.dot(h, w3_ref[...], preferred_element_type=jnp.float32) + b3_ref[...]


def _fold_and_pad(p):
    """Fold inference BatchNorm into the preceding Linear; zero-pad widths to 128.
    Zero-padded rows/cols keep the math exact (padded channels stay identically 0)."""
    s1 = p["g1"] * jax.lax.rsqrt(p["v1"] + EPS)
    w1 = p["w1"] * s1
    b1 = (p["b1"] - p["m1"]) * s1 + p["be1"]
    s2 = p["g2"] * jax.lax.rsqrt(p["v2"] + EPS)
    w2 = p["w2"] * s2
    b2 = (p["b2"] - p["m2"]) * s2 + p["be2"]
    w3, b3 = p["w3"], p["b3"]

    kin, d1 = w1.shape
    d2 = w2.shape[1]
    d3 = w3.shape[1]
    f32 = jnp.float32
    w1p = jnp.zeros((kin, HID_PAD), f32).at[:, :d1].set(w1)
    b1p = jnp.zeros((1, HID_PAD), f32).at[:, :d1].set(b1)
    w2p = jnp.zeros((HID_PAD, HID_PAD), f32).at[:d1, :d2].set(w2)
    b2p = jnp.zeros((1, HID_PAD), f32).at[:, :d2].set(b2)
    w3p = jnp.zeros((HID_PAD, OUT_PAD), f32).at[:d2, :d3].set(w3)
    b3p = jnp.zeros((1, OUT_PAD), f32).at[:, :d3].set(b3)
    return w1p, b1p, w2p, b2p, w3p, b3p


def classifier(x, params):
    N, K = x.shape
    w1p, b1p, w2p, b2p, w3p, b3p = _fold_and_pad(params)
    TN = _pick_row_tile(N, 256)

    def const_spec(shape):
        return pl.BlockSpec(shape, lambda i: (0, 0))

    out = pl.pallas_call(
        _mlp_kernel,
        out_shape=jax.ShapeDtypeStruct((N, OUT_PAD), jnp.float32),
        grid=(N // TN,),
        in_specs=[
            pl.BlockSpec((TN, K), lambda i: (i, 0)),
            const_spec(w1p.shape), const_spec(b1p.shape),
            const_spec(w2p.shape), const_spec(b2p.shape),
            const_spec(w3p.shape), const_spec(b3p.shape),
        ],
        out_specs=pl.BlockSpec((TN, OUT_PAD), lambda i: (i, 0)),
        compiler_params=pltpu.CompilerParams(dimension_semantics=("parallel",)),
    )(x, w1p, b1p, w2p, b2p, w3p, b3p)
    return out[:, :NUM_CLASSES]


def discriminator_forward(x, params):
    feats = maxpool8x8(x)              # (N, 3*28*28) = (N, 2352)
    return classifier(feats, params)   # (N, 100)


# ---------------------------------------------------------------------------
# Parameter init (deterministic, synthetic) + reference check
# ---------------------------------------------------------------------------
def make_params(key):
    ks = jax.random.split(key, 16)
    f32 = jnp.float32

    def lin(kw, kb, fan_in, fan_out):
        w = jax.random.normal(kw, (fan_in, fan_out), f32) * 0.02
        b = jax.random.normal(kb, (1, fan_out), f32) * 0.01
        return w, b

    def bn(kg, kb, km, kv, dim):
        g = 1.0 + 0.1 * jax.random.normal(kg, (1, dim), f32)
        be = 0.1 * jax.random.normal(kb, (1, dim), f32)
        m = 0.05 * jax.random.normal(km, (1, dim), f32)
        v = jax.random.uniform(kv, (1, dim), f32, 0.5, 1.5)
        return g, be, m, v

    w1, b1 = lin(ks[0], ks[1], 3 * 28 * 28, 16)
    g1, be1, m1, v1 = bn(ks[2], ks[3], ks[4], ks[5], 16)
    w2, b2 = lin(ks[6], ks[7], 16, 8)
    g2, be2, m2, v2 = bn(ks[8], ks[9], ks[10], ks[11], 8)
    w3, b3 = lin(ks[12], ks[13], 8, NUM_CLASSES)
    return dict(w1=w1, b1=b1, g1=g1, be1=be1, m1=m1, v1=v1,
                w2=w2, b2=b2, g2=g2, be2=be2, m2=m2, v2=v2,
                w3=w3, b3=b3)


def reference_forward(x, p):
    N = x.shape[0]
    pooled = x.reshape(N, 3, 28, 8, 28, 8).max(axis=(3, 5)).reshape(N, -1)
    h = pooled @ p["w1"] + p["b1"]
    h = (h - p["m1"]) / jnp.sqrt(p["v1"] + EPS) * p["g1"] + p["be1"]
    h = jnp.maximum(h, 0.0)
    h = h @ p["w2"] + p["b2"]
    h = (h - p["m2"]) / jnp.sqrt(p["v2"] + EPS) * p["g2"] + p["be2"]
    h = jnp.maximum(h, 0.0)
    return h @ p["w3"] + p["b3"]


if __name__ == "__main__":
    key = jax.random.PRNGKey(0)
    kx, kp = jax.random.split(key)

    # Input implied by the module: Linear(3*28*28, ...) after three stride-2 pools
    # => (N, 3, 224, 224).  Small batch of 2.
    x = jax.random.normal(kx, (2, 3, 224, 224), jnp.float32)
    params = make_params(kp)

    fwd = jax.jit(discriminator_forward)
    out = jax.block_until_ready(fwd(x, params))

    ref = reference_forward(x, params)
    assert out.shape == (2, NUM_CLASSES)
    max_err = float(jnp.max(jnp.abs(out - ref)))
    assert jnp.allclose(out, ref, atol=2e-4, rtol=2e-4), f"mismatch vs reference: {max_err}"
    print("KERNEL_OK")
</pallas_src>

<mosaic_0001>
module attributes {stable_mosaic.version = 11 : i64} {
  func.func @k(%arg0: memref<8x224xf32, #tpu.memory_space<vmem>>, %arg1: memref<8x224xf32, #tpu.memory_space<vmem>>) attributes {dimension_semantics = [], scalar_prefetch = 0 : i64, scratch_operands = 0 : i64, tpu.core_type = #tpu.core_type<tc>} {
    %c0 = arith.constant 0 : index
    %c0_0 = arith.constant 0 : index
    %0 = vector.load %arg0[%c0, %c0_0] : memref<8x224xf32, #tpu.memory_space<vmem>>, vector<8x224xf32>
    %c1_i32 = arith.constant 1 : i32
    %1 = tpu.dynamic_rotate %0 by %c1_i32 dim 1 : vector<8x224xf32>, i32 -> vector<8x224xf32>
    %c0_1 = arith.constant 0 : index
    %c0_2 = arith.constant 0 : index
    %2 = vector.load %arg1[%c0_1, %c0_2] : memref<8x224xf32, #tpu.memory_space<vmem>>, vector<8x224xf32>
    tpu.vector_store %arg1[%c0_1, %c0_2], %1 {strides = array<i32>} : memref<8x224xf32, #tpu.memory_space<vmem>>, vector<8x224xf32>,
    return
  }
}

module attributes {stable_mosaic.version = 11 : i64} {
  func.func @_pool_kernel(%arg0: i32, %arg1: memref<56x8x224xf32, #tpu.memory_space<vmem>>, %arg2: memref<8x224x28xf32, #tpu.memory_space<vmem>>, %arg3: memref<56x28xf32, #tpu.memory_space<vmem>>) attributes {dimension_semantics = [#tpu.dimension_semantics<parallel>], iteration_bounds = array<i64: 3>, scalar_prefetch = 0 : i64, scratch_operands = 0 : i64, tpu.core_type = #tpu.core_type<tc>, window_params = [{transform_indices = @transform_0, window_bounds = array<i64: 56, 8, 224>}, {pipeline_mode = #tpu.pipeline_mode<synchronous>, transform_indices = @transform_1, window_bounds = array<i64: 8, 224, 28>}, {transform_indices = @transform_2, window_bounds = array<i64: 56, 28>}]} {
    %c0 = arith.constant 0 : index
    %c0_0 = arith.constant 0 : index
    %c0_1 = arith.constant 0 : index
    %0 = vector.load %arg1[%c0, %c0_0, %c0_1] : memref<56x8x224xf32, #tpu.memory_space<vmem>>, vector<56x8x224xf32>
    %cst = arith.constant dense<0xFF800000> : vector<56x224xf32>
    %1 = vector.multi_reduction <maximumf>, %0, %cst [1] : vector<56x8x224xf32> to vector<56x224xf32>
    %c0_2 = arith.constant 0 : index
    %c0_3 = arith.constant 0 : index
    %c0_4 = arith.constant 0 : index
    %2 = vector.load %arg2[%c0_2, %c0_3, %c0_4] : memref<8x224x28xf32, #tpu.memory_space<vmem>>, vector<1x224x28xf32>
    %3 = vector.shape_cast %2 : vector<1x224x28xf32> to vector<224x28xf32>
    %cst_5 = arith.constant dense<0.000000e+00> : vector<56x28xf32>
    %4 = tpu.matmul %1, %3, %cst_5 {dimension_numbers = #tpu.dot_dimension_numbers<[1], [0], [0], [1], [0, 0, 1, 1], [], []>} : vector<56x224xf32>, vector<224x28xf32>, vector<56x28xf32> -> vector<56x28xf32>
    %c1 = arith.constant 1 : index
    %c0_6 = arith.constant 0 : index
    %c0_7 = arith.constant 0 : index
    %5 = vector.load %arg2[%c1, %c0_6, %c0_7] : memref<8x224x28xf32, #tpu.memory_space<vmem>>, vector<1x224x28xf32>
    %6 = vector.shape_cast %5 : vector<1x224x28xf32> to vector<224x28xf32>
    %cst_8 = arith.constant dense<0.000000e+00> : vector<56x28xf32>
    %7 = tpu.matmul %1, %6, %cst_8 {dimension_numbers = #tpu.dot_dimension_numbers<[1], [0], [0], [1], [0, 0, 1, 1], [], []>} : vector<56x224xf32>, vector<224x28xf32>, vector<56x28xf32> -> vector<56x28xf32>
    %8 = arith.maximumf %4, %7 : vector<56x28xf32>
    %c2 = arith.constant 2 : index
    %c0_9 = arith.constant 0 : index
    %c0_10 = arith.constant 0 : index
    %9 = vector.load %arg2[%c2, %c0_9, %c0_10] : memref<8x224x28xf32, #tpu.memory_space<vmem>>, vector<1x224x28xf32>
    %10 = vector.shape_cast %9 : vector<1x224x28xf32> to vector<224x28xf32>
    %cst_11 = arith.constant dense<0.000000e+00> : vector<56x28xf32>
    %11 = tpu.matmul %1, %10, %cst_11 {dimension_numbers = #tpu.dot_dimension_numbers<[1], [0], [0], [1], [0, 0, 1, 1], [], []>} : vector<56x224xf32>, vector<224x28xf32>, vector<56x28xf32> -> vector<56x28xf32>
    %12 = arith.maximumf %8, %11 : vector<56x28xf32>
    %c3 = arith.constant 3 : index
    %c0_12 = arith.constant 0 : index
    %c0_13 = arith.constant 0 : index
    %13 = vector.load %arg2[%c3, %c0_12, %c0_13] : memref<8x224x28xf32, #tpu.memory_space<vmem>>, vector<1x224x28xf32>
    %14 = vector.shape_cast %13 : vector<1x224x28xf32> to vector<224x28xf32>
    %cst_14 = arith.constant dense<0.000000e+00> : vector<56x28xf32>
    %15 = tpu.matmul %1, %14, %cst_14 {dimension_numbers = #tpu.dot_dimension_numbers<[1], [0], [0], [1], [0, 0, 1, 1], [], []>} : vector<56x224xf32>, vector<224x28xf32>, vector<56x28xf32> -> vector<56x28xf32>
    %16 = arith.maximumf %12, %15 : vector<56x28xf32>
    %c4 = arith.constant 4 : index
    %c0_15 = arith.constant 0 : index
    %c0_16 = arith.constant 0 : index
    %17 = vector.load %arg2[%c4, %c0_15, %c0_16] : memref<8x224x28xf32, #tpu.memory_space<vmem>>, vector<1x224x28xf32>
    %18 = vector.shape_cast %17 : vector<1x224x28xf32> to vector<224x28xf32>
    %cst_17 = arith.constant dense<0.000000e+00> : vector<56x28xf32>
    %19 = tpu.matmul %1, %18, %cst_17 {dimension_numbers = #tpu.dot_dimension_numbers<[1], [0], [0], [1], [0, 0, 1, 1], [], []>} : vector<56x224xf32>, vector<224x28xf32>, vector<56x28xf32> -> vector<56x28xf32>
    %20 = arith.maximumf %16, %19 : vector<56x28xf32>
    %c5 = arith.constant 5 : index
    %c0_18 = arith.constant 0 : index
    %c0_19 = arith.constant 0 : index
    %21 = vector.load %arg2[%c5, %c0_18, %c0_19] : memref<8x224x28xf32, #tpu.memory_space<vmem>>, vector<1x224x28xf32>
    %22 = vector.shape_cast %21 : vector<1x224x28xf32> to vector<224x28xf32>
    %cst_20 = arith.constant dense<0.000000e+00> : vector<56x28xf32>
    %23 = tpu.matmul %1, %22, %cst_20 {dimension_numbers = #tpu.dot_dimension_numbers<[1], [0], [0], [1], [0, 0, 1, 1], [], []>} : vector<56x224xf32>, vector<224x28xf32>, vector<56x28xf32> -> vector<56x28xf32>
    %24 = arith.maximumf %20, %23 : vector<56x28xf32>
    %c6 = arith.constant 6 : index
    %c0_21 = arith.constant 0 : index
    %c0_22 = arith.constant 0 : index
    %25 = vector.load %arg2[%c6, %c0_21, %c0_22] : memref<8x224x28xf32, #tpu.memory_space<vmem>>, vector<1x224x28xf32>
    %26 = vector.shape_cast %25 : vector<1x224x28xf32> to vector<224x28xf32>
    %cst_23 = arith.constant dense<0.000000e+00> : vector<56x28xf32>
    %27 = tpu.matmul %1, %26, %cst_23 {dimension_numbers = #tpu.dot_dimension_numbers<[1], [0], [0], [1], [0, 0, 1, 1], [], []>} : vector<56x224xf32>, vector<224x28xf32>, vector<56x28xf32> -> vector<56x28xf32>
    %28 = arith.maximumf %24, %27 : vector<56x28xf32>
    %c7 = arith.constant 7 : index
    %c0_24 = arith.constant 0 : index
    %c0_25 = arith.constant 0 : index
    %29 = vector.load %arg2[%c7, %c0_24, %c0_25] : memref<8x224x28xf32, #tpu.memory_space<vmem>>, vector<1x224x28xf32>
    %30 = vector.shape_cast %29 : vector<1x224x28xf32> to vector<224x28xf32>
    %cst_26 = arith.constant dense<0.000000e+00> : vector<56x28xf32>
    %31 = tpu.matmul %1, %30, %cst_26 {dimension_numbers = #tpu.dot_dimension_numbers<[1], [0], [0], [1], [0, 0, 1, 1], [], []>} : vector<56x224xf32>, vector<224x28xf32>, vector<56x28xf32> -> vector<56x28xf32>
    %32 = arith.maximumf %28, %31 : vector<56x28xf32>
    %c0_27 = arith.constant 0 : index
    %c0_28 = arith.constant 0 : index
    %33 = vector.load %arg3[%c0_27, %c0_28] : memref<56x28xf32, #tpu.memory_space<vmem>>, vector<56x28xf32>
    tpu.vector_store %arg3[%c0_27, %c0_28], %32 {strides = array<i32>} : memref<56x28xf32, #tpu.memory_space<vmem>>, vector<56x28xf32>,
    return
  }
  func.func @transform_0(%arg0: i32) -> (i32, i32, i32) {
    %c0_i32 = arith.constant 0 : i32
    %c0_i32_0 = arith.constant 0 : i32
    %c0_i32_1 = arith.constant 0 : i32
    return %arg0, %c0_i32, %c0_i32_0 : i32, i32, i32
  }
  func.func @transform_1(%arg0: i32) -> (i32, i32, i32) {
    %c0_i32 = arith.constant 0 : i32
    %c0_i32_0 = arith.constant 0 : i32
    %c0_i32_1 = arith.constant 0 : i32
    %c0_i32_2 = arith.constant 0 : i32
    return %c0_i32, %c0_i32_0, %c0_i32_1 : i32, i32, i32
  }
  func.func @transform_2(%arg0: i32) -> (i32, i32) {
    %c0_i32 = arith.constant 0 : i32
    %c0_i32_0 = arith.constant 0 : i32
    return %arg0, %c0_i32 : i32, i32
  }
}

module attributes {stable_mosaic.version = 11 : i64} {
  func.func @_mlp_kernel(%arg0: i32, %arg1: memref<2x2352xf32, #tpu.memory_space<vmem>>, %arg2: memref<2352x128xf32, #tpu.memory_space<vmem>>, %arg3: memref<1x128xf32, #tpu.memory_space<vmem>>, %arg4: memref<128x128xf32, #tpu.memory_space<vmem>>, %arg5: memref<1x128xf32, #tpu.memory_space<vmem>>, %arg6: memref<128x128xf32, #tpu.memory_space<vmem>>, %arg7: memref<1x128xf32, #tpu.memory_space<vmem>>, %arg8: memref<2x128xf32, #tpu.memory_space<vmem>>) attributes {dimension_semantics = [#tpu.dimension_semantics<parallel>], iteration_bounds = array<i64: 1>, scalar_prefetch = 0 : i64, scratch_operands = 0 : i64, tpu.core_type = #tpu.core_type<tc>, window_params = [{transform_indices = @transform_0, window_bounds = array<i64: 2, 2352>}, {pipeline_mode = #tpu.pipeline_mode<synchronous>, transform_indices = @transform_1, window_bounds = array<i64: 2352, 128>}, {pipeline_mode = #tpu.pipeline_mode<synchronous>, transform_indices = @transform_2, window_bounds = array<i64: 1, 128>}, {pipeline_mode = #tpu.pipeline_mode<synchronous>, transform_indices = @transform_3, window_bounds = array<i64: 128, 128>}, {pipeline_mode = #tpu.pipeline_mode<synchronous>, transform_indices = @transform_4, window_bounds = array<i64: 1, 128>}, {pipeline_mode = #tpu.pipeline_mode<synchronous>, transform_indices = @transform_5, window_bounds = array<i64: 128, 128>}, {pipeline_mode = #tpu.pipeline_mode<synchronous>, transform_indices = @transform_6, window_bounds = array<i64: 1, 128>}, {transform_indices = @transform_7, window_bounds = array<i64: 2, 128>}]} {
    %c0 = arith.constant 0 : index
    %c0_0 = arith.constant 0 : index
    %0 = vector.load %arg1[%c0, %c0_0] : memref<2x2352xf32, #tpu.memory_space<vmem>>, vector<2x2352xf32>
    %c0_1 = arith.constant 0 : index
    %c0_2 = arith.constant 0 : index
    %1 = vector.load %arg2[%c0_1, %c0_2] : memref<2352x128xf32, #tpu.memory_space<vmem>>, vector<2352x128xf32>
    %cst = arith.constant dense<0.000000e+00> : vector<2x128xf32>
    %2 = tpu.matmul %0, %1, %cst {dimension_numbers = #tpu.dot_dimension_numbers<[1], [0], [0], [1], [0, 0, 1, 1], [], []>} : vector<2x2352xf32>, vector<2352x128xf32>, vector<2x128xf32> -> vector<2x128xf32>
    %c0_3 = arith.constant 0 : index
    %c0_4 = arith.constant 0 : index
    %3 = vector.load %arg3[%c0_3, %c0_4] : memref<1x128xf32, #tpu.memory_space<vmem>>, vector<1x128xf32>
    %4 = vector.broadcast %3 : vector<1x128xf32> to vector<2x128xf32>
    %5 = arith.addf %2, %4 : vector<2x128xf32>
    %cst_5 = arith.constant 0.000000e+00 : f32
    %6 = vector.broadcast %cst_5 : f32 to vector<2x128xf32>
    %7 = arith.maximumf %5, %6 : vector<2x128xf32>
    %c0_6 = arith.constant 0 : index
    %c0_7 = arith.constant 0 : index
    %8 = vector.load %arg4[%c0_6, %c0_7] : memref<128x128xf32, #tpu.memory_space<vmem>>, vector<128x128xf32>
    %cst_8 = arith.constant dense<0.000000e+00> : vector<2x128xf32>
    %9 = tpu.matmul %7, %8, %cst_8 {dimension_numbers = #tpu.dot_dimension_numbers<[1], [0], [0], [1], [0, 0, 1, 1], [], []>} : vector<2x128xf32>, vector<128x128xf32>, vector<2x128xf32> -> vector<2x128xf32>
    %c0_9 = arith.constant 0 : index
    %c0_10 = arith.constant 0 : index
    %10 = vector.load %arg5[%c0_9, %c0_10] : memref<1x128xf32, #tpu.memory_space<vmem>>, vector<1x128xf32>
    %11 = vector.broadcast %10 : vector<1x128xf32> to vector<2x128xf32>
    %12 = arith.addf %9, %11 : vector<2x128xf32>
    %cst_11 = arith.constant 0.000000e+00 : f32
    %13 = vector.broadcast %cst_11 : f32 to vector<2x128xf32>
    %14 = arith.maximumf %12, %13 : vector<2x128xf32>
    %c0_12 = arith.constant 0 : index
    %c0_13 = arith.constant 0 : index
    %15 = vector.load %arg6[%c0_12, %c0_13] : memref<128x128xf32, #tpu.memory_space<vmem>>, vector<128x128xf32>
    %cst_14 = arith.constant dense<0.000000e+00> : vector<2x128xf32>
    %16 = tpu.matmul %14, %15, %cst_14 {dimension_numbers = #tpu.dot_dimension_numbers<[1], [0], [0], [1], [0, 0, 1, 1], [], []>} : vector<2x128xf32>, vector<128x128xf32>, vector<2x128xf32> -> vector<2x128xf32>
    %c0_15 = arith.constant 0 : index
    %c0_16 = arith.constant 0 : index
    %17 = vector.load %arg7[%c0_15, %c0_16] : memref<1x128xf32, #tpu.memory_space<vmem>>, vector<1x128xf32>
    %18 = vector.broadcast %17 : vector<1x128xf32> to vector<2x128xf32>
    %19 = arith.addf %16, %18 : vector<2x128xf32>
    %c0_17 = arith.constant 0 : index
    %c0_18 = arith.constant 0 : index
    %20 = vector.load %arg8[%c0_17, %c0_18] : memref<2x128xf32, #tpu.memory_space<vmem>>, vector<2x128xf32>
    tpu.vector_store %arg8[%c0_17, %c0_18], %19 {strides = array<i32>} : memref<2x128xf32, #tpu.memory_space<vmem>>, vector<2x128xf32>,
    return
  }
  func.func @transform_0(%arg0: i32) -> (i32, i32) {
    %c0_i32 = arith.constant 0 : i32
    %c0_i32_0 = arith.constant 0 : i32
    return %arg0, %c0_i32 : i32, i32
  }
  func.func @transform_1(%arg0: i32) -> (i32, i32) {
    %c0_i32 = arith.constant 0 : i32
    %c0_i32_0 = arith.constant 0 : i32
    %c0_i32_1 = arith.constant 0 : i32
    return %c0_i32, %c0_i32_0 : i32, i32
  }
  func.func @transform_2(%arg0: i32) -> (i32, i32) {
    %c0_i32 = arith.constant 0 : i32
    %c0_i32_0 = arith.constant 0 : i32
    %c0_i32_1 = arith.constant 0 : i32
    return %c0_i32, %c0_i32_0 : i32, i32
  }
  func.func @transform_3(%arg0: i32) -> (i32, i32) {
    %c0_i32 = arith.constant 0 : i32
    %c0_i32_0 = arith.constant 0 : i32
    %c0_i32_1 = arith.constant 0 : i32
    return %c0_i32, %c0_i32_0 : i32, i32
  }
  func.func @transform_4(%arg0: i32) -> (i32, i32) {
    %c0_i32 = arith.constant 0 : i32
    %c0_i32_0 = arith.constant 0 : i32
    %c0_i32_1 = arith.constant 0 : i32
    return %c0_i32, %c0_i32_0 : i32, i32
  }
  func.func @transform_5(%arg0: i32) -> (i32, i32) {
    %c0_i32 = arith.constant 0 : i32
    %c0_i32_0 = arith.constant 0 : i32
    %c0_i32_1 = arith.constant 0 : i32
    return %c0_i32, %c0_i32_0 : i32, i32
  }
  func.func @transform_6(%arg0: i32) -> (i32, i32) {
    %c0_i32 = arith.constant 0 : i32
    %c0_i32_0 = arith.constant 0 : i32
    %c0_i32_1 = arith.constant 0 : i32
    return %c0_i32, %c0_i32_0 : i32, i32
  }
  func.func @transform_7(%arg0: i32) -> (i32, i32) {
    %c0_i32 = arith.constant 0 : i32
    %c0_i32_0 = arith.constant 0 : i32
    return %arg0, %c0_i32 : i32, i32
  }
}

</mosaic_0001>

<bundles_post_ra>
// kernel: tpu_custom_call.1
= control target key start
LH: loop header
LB: loop body
LE: loop exit
PB: predicated region body
PF: predicated region fallthrough
CT: control target
= control target key end

     0   :  { %6 = vsyncpa [#allocation3], 0  ;;  %s142_s0 = inlined_call_operand.hbm [shape: f32[8,224], index: 0, kind: input, shape index: {}]   ;;  %s143_s1 = inlined_call_operand.hbm [shape: f32[8,224], index: 1, kind: output, shape index: {}]  }
   0x1   :  { %7 = vsyncpa [#allocation4], 0  ;;  %s13_s8 = sshll.u32 %s142_s0, 4  ;;  %s122_s9 = smov [#allocation2]   ;;  %s14_s8 = int_to_ptr.hbm [resolvable:$true] %s13_s8 }
   0x2   :  { %s15_s10 = sshll.u32 %s122_s9, 4  ;;  %s16_s10 = int_to_ptr.vmem [resolvable:$true] %s15_s10 }
   0x3   :  { %18 = dma.hbm_to_vmem [thread:$0]  %s14_s8, 256, %s16_s10, [#allocation3]  }
   0x4   :  { %118 = dma.done.wait [#allocation3], 256  }
   0x5   :  { %119 = vsyncadd [#allocation3], 4294967040  ;;  %v23_v0 = vld [vmem:[#allocation2] sm:$0xff]  ;;  %s123_s11 = smov 96   ;;  %v24_v1 = vld [vmem:[#allocation2 + $0x8] sm:$0xff]  ;;  %vm25_vm0 = vcmask 1048320  }
   0x6   :  { %26 = vrot.lane.b32.xlu0 %v23_v0, %s123_s11  ;;  %s124_s12 = smov 33   ;;  %vm41_vm1 = vcmask 269312   ;;  %s125_s0 = smov [#allocation5]   ;;  %vm47_vm2 = vcmask 785408  }
   0x7   :  { %s54_s13 = sshll.u32 %s125_s0, 4  ;;  %s56_s16 = sshll.u32 %s143_s1, 4  ;;  %s55_s13 = int_to_ptr.vmem [resolvable:$true] %s54_s13  ;;  %s57_s16 = int_to_ptr.hbm [resolvable:$true] %s56_s16 }
  0x78   :  { %v27_v2 = vpop.permute.xlu0 %26 }
  0x79   :  { %v28_v3 = vsel %vm25_vm0, %v27_v2, %v24_v1 }
  0x7a   :  { %35 = vrot.lane.b32.xlu1 %v28_v3, %s124_s12  ;;  %29 = vrot.lane.b32.xlu0 %v28_v3, %s123_s11 }
  0xec   :  { %v30_v4 = vpop.permute.xlu0 %29  ;;  %v36_v6 = vpop.permute.xlu1 %35 }
  0xed   :  { %39 = vrot.lane.b32.xlu2 %v30_v4, %s124_s12  ;;  %v31_v5 = vsel %vm25_vm0, %v30_v4, %v27_v2 }
  0xee   :  { %37 = vrot.lane.b32.xlu1 %v31_v5, %s124_s12 }
 0x147   :  { %v40_v7 = vpop.permute.xlu2 %39 }
 0x160   :  { %v38_v8 = vpop.permute.xlu1 %37 }
 0x161   :  { %v42_v9 = vsel %vm41_vm1, %v36_v6, %v38_v8  ;;  %v43_v10 = vsel %vm41_vm1, %v38_v8, %v40_v7 }
 0x162   :  { %46 = vst [vmem:[#allocation5] sm:$0xff] %v42_v9 }
 0x163   :  { %48 = vst.msk [vmem:[#allocation5 + $0x8] sm:$0xff] %vm47_vm2, %v43_v10 }
 0x164   :  { %59 = dma.vmem_to_hbm [thread:$0]  %s55_s13, 256, %s57_s16, [#allocation4]  }
 0x165   :  { %120 = dma.done.wait [#allocation4], 256  }
 0x166   :  { %121 = vsyncadd [#allocation4], 4294967040 }
 0x167   :  { %64 = vsyncpa [#allocation3], 1 }
 0x168   :  { %65 = vsyncpa [#allocation4], 1 }

// kernel: discriminator_forward.3
= control target key start
LH: loop header
LB: loop body
LE: loop exit
PB: predicated region body
PF: predicated region fallthrough
CT: control target
= control target key end

     0   :  { %s1970_s0 = inlined_call_operand.vmem [shape: f32[2,2352], index: 0, kind: input, shape index: {}]   ;;  %s1971_s1 = inlined_call_operand.vmem [shape: f32[2352,128], index: 1, kind: input, shape index: {}]   ;;  %s1972_s2 = inlined_call_operand.vmem [shape: f32[1,128], index: 2, kind: input, shape index: {}]   ;;  %s1973_s3 = inlined_call_operand.vmem [shape: f32[128,128], index: 3, kind: input, shape index: {}]   ;;  %s1974_s4 = inlined_call_operand.vmem [shape: f32[1,128], index: 4, kind: input, shape index: {}]   ;;  %s1975_s5 = inlined_call_operand.vmem [shape: f32[128,128], index: 5, kind: input, shape index: {}]   ;;  %s1976_s6 = inlined_call_operand.vmem [shape: f32[1,128], index: 6, kind: input, shape index: {}]   ;;  %s1977_s7 = inlined_call_operand.hbm [shape: f32[2,128], index: 7, kind: output, shape index: {}]  }
   0x1   :  { %v47_v0 = vld [vmem:[%s1971_s1 + $0x78] sm:$0xff]  ;;  %v46_v2 = vld [vmem:[%s1971_s1 + $0x70] sm:$0xff]  ;;  %v45_v6 = vld [vmem:[%s1971_s1 + $0x68] sm:$0xff] }
   0x2   :  { %v79_v1 = vld [vmem:[%s1971_s1 + $0x178] sm:$0xff]  ;;  %381 = vmatpush.msra.mxu0 %v47_v0  ;;  %v78_v4 = vld [vmem:[%s1971_s1 + $0x170] sm:$0xff]  ;;  %v77_v8 = vld [vmem:[%s1971_s1 + $0x168] sm:$0xff] }
   0x3   :  { %421 = vmatpush.msra.mxu2 %v79_v1  ;;  %v63_v3 = vld [vmem:[%s1971_s1 + $0xf8] sm:$0xff]  ;;  %v62_v7 = vld [vmem:[%s1971_s1 + $0xf0] sm:$0xff]  ;;  %v61_v10 = vld [vmem:[%s1971_s1 + $0xe8] sm:$0xff] }
   0x4   :  { %v95_v5 = vld [vmem:[%s1971_s1 + $0x1f8] sm:$0xff]  ;;  %401 = vmatpush.msra.mxu1 %v63_v3  ;;  %382 = vmatpush.msra.mxu0 %v46_v2  ;;  %v94_v9 = vld [vmem:[%s1971_s1 + $0x1f0] sm:$0xff]  ;;  %v44_v11 = vld [vmem:[%s1971_s1 + $0x60] sm:$0xff] }
   0x5   :  { %441 = vmatpush.msra.mxu3 %v95_v5  ;;  %422 = vmatpush.msra.mxu2 %v78_v4  ;;  %v76_v12 = vld [vmem:[%s1971_s1 + $0x160] sm:$0xff]  ;;  %v93_v13 = vld [vmem:[%s1971_s1 + $0x1e8] sm:$0xff]  ;;  %v43_v16 = vld [vmem:[%s1971_s1 + $0x58] sm:$0xff] }
   0x6   :  { %402 = vmatpush.msra.mxu1 %v62_v7  ;;  %383 = vmatpush.msra.mxu0 %v45_v6  ;;  %v60_v14 = vld [vmem:[%s1971_s1 + $0xe0] sm:$0xff]  ;;  %v75_v17 = vld [vmem:[%s1971_s1 + $0x158] sm:$0xff]  ;;  %v42_v20 = vld [vmem:[%s1971_s1 + $0x50] sm:$0xff] }
   0x7   :  { %442 = vmatpush.msra.mxu3 %v94_v9  ;;  %423 = vmatpush.msra.mxu2 %v77_v8  ;;  %v92_v15 = vld [vmem:[%s1971_s1 + $0x1e0] sm:$0xff]  ;;  %v59_v18 = vld [vmem:[%s1971_s1 + $0xd8] sm:$0xff]  ;;  %v74_v21 = vld [vmem:[%s1971_s1 + $0x150] sm:$0xff] }
   0x8   :  { %403 = vmatpush.msra.mxu1 %v61_v10  ;;  %384 = vmatpush.msra.mxu0 %v44_v11  ;;  %v91_v19 = vld [vmem:[%s1971_s1 + $0x1d8] sm:$0xff]  ;;  %v58_v22 = vld [vmem:[%s1971_s1 + $0xd0] sm:$0xff]  ;;  %v41_v24 = vld [vmem:[%s1971_s1 + $0x48] sm:$0xff] }
   0x9   :  { %443 = vmatpush.msra.mxu3 %v93_v13  ;;  %424 = vmatpush.msra.mxu2 %v76_v12  ;;  %v90_v23 = vld [vmem:[%s1971_s1 + $0x1d0] sm:$0xff]  ;;  %v73_v25 = vld [vmem:[%s1971_s1 + $0x148] sm:$0xff]  ;;  %v40_v28 = vld [vmem:[%s1971_s1 + $0x40] sm:$0xff] }
   0xa   :  { %404 = vmatpush.msra.mxu1 %v60_v14  ;;  %385 = vmatpush.msra.mxu0 %v43_v16  ;;  %v57_v26 = vld [vmem:[%s1971_s1 + $0xc8] sm:$0xff]  ;;  %v72_v29 = vld [vmem:[%s1971_s1 + $0x140] sm:$0xff]  ;;  %v39_v32 = vld [vmem:[%s1971_s1 + $0x38] sm:$0xff] }
   0xb   :  { %444 = vmatpush.msra.mxu3 %v92_v15  ;;  %425 = vmatpush.msra.mxu2 %v75_v17  ;;  %v89_v27 = vld [vmem:[%s1971_s1 + $0x1c8] sm:$0xff]  ;;  %v56_v30 = vld [vmem:[%s1971_s1 + $0xc0] sm:$0xff]  ;;  %v71_v33 = vld [vmem:[%s1971_s1 + $0x138] sm:$0xff] }
   0xc   :  { %405 = vmatpush.msra.mxu1 %v59_v18  ;;  %386 = vmatpush.msra.mxu0 %v42_v20  ;;  %v88_v31 = vld [vmem:[%s1971_s1 + $0x1c0] sm:$0xff]  ;;  %v55_v34 = vld [vmem:[%s1971_s1 + $0xb8] sm:$0xff]  ;;  %v38_v36 = vld [vmem:[%s1971_s1 + $0x30] sm:$0xff] }
   0xd   :  { %445 = vmatpush.msra.mxu3 %v91_v19  ;;  %426 = vmatpush.msra.mxu2 %v74_v21  ;;  %v87_v35 = vld [vmem:[%s1971_s1 + $0x1b8] sm:$0xff]  ;;  %v70_v37 = vld [vmem:[%s1971_s1 + $0x130] sm:$0xff]  ;;  %v37_v40 = vld [vmem:[%s1971_s1 + $0x28] sm:$0xff] }
   0xe   :  { %406 = vmatpush.msra.mxu1 %v58_v22  ;;  %387 = vmatpush.msra.mxu0 %v41_v24  ;;  %v54_v38 = vld [vmem:[%s1971_s1 + $0xb0] sm:$0xff]  ;;  %v69_v41 = vld [vmem:[%s1971_s1 + $0x128] sm:$0xff]  ;;  %v36_v44 = vld [vmem:[%s1971_s1 + $0x20] sm:$0xff] }
   0xf   :  { %446 = vmatpush.msra.mxu3 %v90_v23  ;;  %427 = vmatpush.msra.mxu2 %v73_v25  ;;  %v86_v39 = vld [vmem:[%s1971_s1 + $0x1b0] sm:$0xff]  ;;  %v53_v42 = vld [vmem:[%s1971_s1 + $0xa8] sm:$0xff]  ;;  %v68_v45 = vld [vmem:[%s1971_s1 + $0x120] sm:$0xff] }
  0x10   :  { %407 = vmatpush.msra.mxu1 %v57_v26  ;;  %388 = vmatpush.msra.mxu0 %v40_v28  ;;  %v85_v43 = vld [vmem:[%s1971_s1 + $0x1a8] sm:$0xff]  ;;  %v52_v46 = vld [vmem:[%s1971_s1 + $0xa0] sm:$0xff]  ;;  %v35_v48 = vld [vmem:[%s1971_s1 + $0x18] sm:$0xff] }
  0x11   :  { %447 = vmatpush.msra.mxu3 %v89_v27  ;;  %428 = vmatpush.msra.mxu2 %v72_v29  ;;  %v84_v47 = vld [vmem:[%s1971_s1 + $0x1a0] sm:$0xff]  ;;  %v67_v49 = vld [vmem:[%s1971_s1 + $0x118] sm:$0xff]  ;;  %v34_v52 = vld [vmem:[%s1971_s1 + $0x10] sm:$0xff] }
  0x12   :  { %408 = vmatpush.msra.mxu1 %v56_v30  ;;  %389 = vmatpush.msra.mxu0 %v39_v32  ;;  %v51_v50 = vld [vmem:[%s1971_s1 + $0x98] sm:$0xff]  ;;  %v66_v53 = vld [vmem:[%s1971_s1 + $0x110] sm:$0xff]  ;;  %v33_v56 = vld [vmem:[%s1971_s1 + $0x8] sm:$0xff] }
  0x13   :  { %448 = vmatpush.msra.mxu3 %v88_v31  ;;  %429 = vmatpush.msra.mxu2 %v71_v33  ;;  %v83_v51 = vld [vmem:[%s1971_s1 + $0x198] sm:$0xff]  ;;  %v50_v54 = vld [vmem:[%s1971_s1 + $0x90] sm:$0xff]  ;;  %v65_v57 = vld [vmem:[%s1971_s1 + $0x108] sm:$0xff] }
  0x14   :  { %409 = vmatpush.msra.mxu1 %v55_v34  ;;  %390 = vmatpush.msra.mxu0 %v38_v36  ;;  %v82_v55 = vld [vmem:[%s1971_s1 + $0x190] sm:$0xff]  ;;  %v49_v58 = vld [vmem:[%s1971_s1 + $0x88] sm:$0xff]  ;;  %v32_v60 = vld [vmem:[%s1971_s1] sm:$0xff] }
  0x15   :  { %449 = vmatpush.msra.mxu3 %v87_v35  ;;  %430 = vmatpush.msra.mxu2 %v70_v37  ;;  %v81_v59 = vld [vmem:[%s1971_s1 + $0x188] sm:$0xff]  ;;  %v64_v61 = vld [vmem:[%s1971_s1 + $0x100] sm:$0xff]  ;;  %v111_v62 = vld [vmem:[%s1971_s1 + $0x278] sm:$0xff] }
  0x16   :  { %410 = vmatpush.msra.mxu1 %v54_v38  ;;  %391 = vmatpush.msra.mxu0 %v37_v40  ;;  %v143_v63 = vld [vmem:[%s1971_s1 + $0x378] sm:$0xff]  ;;  %v48_v0 = vld [vmem:[%s1971_s1 + $0x80] sm:$0xff]  ;;  %v110_v2 = vld [vmem:[%s1971_s1 + $0x270] sm:$0xff] }
  0x17   :  { %450 = vmatpush.msra.mxu3 %v86_v39  ;;  %431 = vmatpush.msra.mxu2 %v69_v41  ;;  %v80_v1 = vld [vmem:[%s1971_s1 + $0x180] sm:$0xff]  ;;  %v127_v3 = vld [vmem:[%s1971_s1 + $0x2f8] sm:$0xff]  ;;  %v142_v4 = vld [vmem:[%s1971_s1 + $0x370] sm:$0xff] }
  0x18   :  { %411 = vmatpush.msra.mxu1 %v53_v42  ;;  %392 = vmatpush.msra.mxu0 %v36_v44  ;;  %v159_v5 = vld [vmem:[%s1971_s1 + $0x3f8] sm:$0xff]  ;;  %v109_v6 = vld [vmem:[%s1971_s1 + $0x268] sm:$0xff]  ;;  %v126_v7 = vld [vmem:[%s1971_s1 + $0x2f0] sm:$0xff] }
  0x19   :  { %451 = vmatpush.msra.mxu3 %v85_v43  ;;  %432 = vmatpush.msra.mxu2 %v68_v45  ;;  %v141_v8 = vld [vmem:[%s1971_s1 + $0x368] sm:$0xff]  ;;  %v158_v9 = vld [vmem:[%s1971_s1 + $0x3f0] sm:$0xff]  ;;  %v108_v10 = vld [vmem:[%s1971_s1 + $0x260] sm:$0xff] }
  0x1a   :  { %412 = vmatpush.msra.mxu1 %v52_v46  ;;  %393 = vmatpush.msra.mxu0 %v35_v48  ;;  %v125_v11 = vld [vmem:[%s1971_s1 + $0x2e8] sm:$0xff]  ;;  %v140_v12 = vld [vmem:[%s1971_s1 + $0x360] sm:$0xff]  ;;  %v107_v14 = vld [vmem:[%s1971_s1 + $0x258] sm:$0xff] }
  0x1b   :  { %452 = vmatpush.msra.mxu3 %v84_v47  ;;  %433 = vmatpush.msra.mxu2 %v67_v49  ;;  %v157_v13 = vld [vmem:[%s1971_s1 + $0x3e8] sm:$0xff]  ;;  %v124_v15 = vld [vmem:[%s1971_s1 + $0x2e0] sm:$0xff]  ;;  %v139_v16 = vld [vmem:[%s1971_s1 + $0x358] sm:$0xff] }
  0x1c   :  { %413 = vmatpush.msra.mxu1 %v51_v50  ;;  %394 = vmatpush.msra.mxu0 %v34_v52  ;;  %v156_v17 = vld [vmem:[%s1971_s1 + $0x3e0] sm:$0xff]  ;;  %v106_v18 = vld [vmem:[%s1971_s1 + $0x250] sm:$0xff]  ;;  %v123_v19 = vld [vmem:[%s1971_s1 + $0x2d8] sm:$0xff] }
  0x1d   :  { %453 = vmatpush.msra.mxu3 %v83_v51  ;;  %434 = vmatpush.msra.mxu2 %v66_v53  ;;  %v138_v20 = vld [vmem:[%s1971_s1 + $0x350] sm:$0xff]  ;;  %v155_v21 = vld [vmem:[%s1971_s1 + $0x3d8] sm:$0xff]  ;;  %v27_v22 = vld [vmem:[%s1970_s0] sm:$0xff] }
  0x1e   :  { %414 = vmatpush.msra.mxu1 %v50_v54  ;;  %395 = vmatpush.msra.mxu0 %v33_v56  ;;  %v105_v23 = vld [vmem:[%s1971_s1 + $0x248] sm:$0xff]  ;;  %v122_v24 = vld [vmem:[%s1971_s1 + $0x2d0] sm:$0xff]  ;;  %335 = vst [vmem:[#allocation1] ss:$4 sm:$0xff] %v27_v22  ;;  %v104_v27 = vld [vmem:[%s1971_s1 + $0x240] sm:$0xff] }
  0x1f   :  { %454 = vmatpush.msra.mxu3 %v82_v55  ;;  %435 = vmatpush.msra.mxu2 %v65_v57  ;;  %v137_v25 = vld [vmem:[%s1971_s1 + $0x348] sm:$0xff]  ;;  %v154_v26 = vld [vmem:[%s1971_s1 + $0x3d0] sm:$0xff]  ;;  %v136_v29 = vld [vmem:[%s1971_s1 + $0x340] sm:$0xff] }
  0x20   :  { %415 = vmatpush.msra.mxu1 %v49_v58  ;;  %396 = vmatpush.msra.mxu0 %v32_v60  ;;  %v121_v28 = vld [vmem:[%s1971_s1 + $0x2c8] sm:$0xff]  ;;  %v103_v31 = vld [vmem:[%s1971_s1 + $0x238] sm:$0xff]  ;;  %v120_v32 = vld [vmem:[%s1971_s1 + $0x2c0] sm:$0xff] }
  0x21   :  { %455 = vmatpush.msra.mxu3 %v81_v59  ;;  %436 = vmatpush.msra.mxu2 %v64_v61  ;;  %v153_v30 = vld [vmem:[%s1971_s1 + $0x3c8] sm:$0xff]  ;;  %v135_v33 = vld [vmem:[%s1971_s1 + $0x338] sm:$0xff]  ;;  %v152_v34 = vld [vmem:[%s1971_s1 + $0x3c0] sm:$0xff] }
  0x22   :  { %461 = vmatpush.msrb.mxu0 %v111_v62  ;;  %416 = vmatpush.msra.mxu1 %v48_v0  ;;  %v102_v35 = vld [vmem:[%s1971_s1 + $0x230] sm:$0xff]  ;;  %v119_v36 = vld [vmem:[%s1971_s1 + $0x2b8] sm:$0xff]  ;;  %v28_v39 = vld [vmem:[%s1970_s0 + $0x8] sm:$0xff] }
  0x23   :  { %501 = vmatpush.msrb.mxu2 %v143_v63  ;;  %456 = vmatpush.msra.mxu3 %v80_v1  ;;  %v134_v37 = vld [vmem:[%s1971_s1 + $0x330] sm:$0xff]  ;;  %v151_v38 = vld [vmem:[%s1971_s1 + $0x3b8] sm:$0xff]  ;;  %v101_v40 = vld [vmem:[%s1971_s1 + $0x228] sm:$0xff]  ;;  %337 = vst [vmem:[#allocation1 + $0x20] ss:$4 sm:$0xff] %v28_v39 }
  0x24   :  { %462 = vmatpush.msrb.mxu0 %v110_v2  ;;  %481 = vmatpush.msrb.mxu1 %v127_v3  ;;  %v118_v41 = vld [vmem:[%s1971_s1 + $0x2b0] sm:$0xff]  ;;  %v133_v43 = vld [vmem:[%s1971_s1 + $0x328] sm:$0xff]  ;;  %v100_v49 = vld [vmem:[%s1971_s1 + $0x220] sm:$0xff] }
  0x25   :  { %502 = vmatpush.msrb.mxu2 %v142_v4  ;;  %521 = vmatpush.msrb.mxu3 %v159_v5  ;;  %v29_v42 = vld [vmem:[%s1970_s0 + $0x10] sm:$0xff]  ;;  %v1256_v45 = vld.sshfl [vmem:[#allocation1] sm:$0xff pattern:$0x73625140]  ;;  %v117_v50 = vld [vmem:[%s1971_s1 + $0x2a8] sm:$0xff] }
  0x26   :  { %463 = vmatpush.msrb.mxu0 %v109_v6  ;;  %482 = vmatpush.msrb.mxu1 %v126_v7  ;;  %v340_v44 = vld.sshfl [vmem:[#allocation1 + $0x10] sm:$0xff pattern:$0x73625140]  ;;  %v1258_v46 = vld.sshfl [vmem:[#allocation1 + $0x18] sm:$0xff pattern:$0x73625140] }
  0x27   :  { %503 = vmatpush.msrb.mxu2 %v141_v8  ;;  %522 = vmatpush.msrb.mxu3 %v158_v9  ;;  %v1260_v47 = vld.sshfl [vmem:[#allocation1 + $0x8] sm:$0xff pattern:$0x73625140]  ;;  %v150_v48 = vld [vmem:[%s1971_s1 + $0x3b0] sm:$0xff]  ;;  %v132_v51 = vld [vmem:[%s1971_s1 + $0x320] sm:$0xff] }
  0x28   :  { %464 = vmatpush.msrb.mxu0 %v108_v10  ;;  %483 = vmatpush.msrb.mxu1 %v125_v11  ;;  %346 = vst [vmem:[#allocation1] ss:$4 sm:$0xff] %v29_v42  ;;  %v149_v52 = vld [vmem:[%s1971_s1 + $0x3a8] sm:$0xff]  ;;  %v99_v53 = vld [vmem:[%s1971_s1 + $0x218] sm:$0xff]  ;;  %v116_v54 = vld [vmem:[%s1971_s1 + $0x2a0] sm:$0xff] }
  0x29   :  { %504 = vmatpush.msrb.mxu2 %v140_v12  ;;  %523 = vmatpush.msrb.mxu3 %v157_v13  ;;  %v131_v55 = vld [vmem:[%s1971_s1 + $0x318] sm:$0xff]  ;;  %v148_v56 = vld [vmem:[%s1971_s1 + $0x3a0] sm:$0xff]  ;;  %v98_v57 = vld [vmem:[%s1971_s1 + $0x210] sm:$0xff] }
  0x2a   :  { %465 = vmatpush.msrb.mxu0 %v107_v14  ;;  %484 = vmatpush.msrb.mxu1 %v124_v15  ;;  %v115_v58 = vld [vmem:[%s1971_s1 + $0x298] sm:$0xff]  ;;  %v1298_v60 = vld.sshfl [vmem:[#allocation1 + $0x30] sm:$0xff pattern:$0x73625140]  ;;  %v97_v2 = vld [vmem:[%s1971_s1 + $0x208] sm:$0xff] }
  0x2b   :  { %505 = vmatpush.msrb.mxu2 %v139_v16  ;;  %524 = vmatpush.msrb.mxu3 %v156_v17  ;;  %v30_v59 = vld [vmem:[%s1970_s0 + $0x18] sm:$0xff]  ;;  %v1300_v61 = vld.sshfl [vmem:[#allocation1 + $0x20] sm:$0xff pattern:$0x73625140]  ;;  %v130_v0 = vld [vmem:[%s1971_s1 + $0x310] sm:$0xff] }
  0x2c   :  { %466 = vmatpush.msrb.mxu0 %v106_v18  ;;  %485 = vmatpush.msrb.mxu1 %v123_v19  ;;  %v1302_v62 = vld.sshfl [vmem:[#allocation1 + $0x38] sm:$0xff pattern:$0x73625140]  ;;  %v1304_v63 = vld.sshfl [vmem:[#allocation1 + $0x28] sm:$0xff pattern:$0x73625140] }
  0x2d   :  { %506 = vmatpush.msrb.mxu2 %v138_v20  ;;  %525 = vmatpush.msrb.mxu3 %v155_v21  ;;  %v147_v1 = vld [vmem:[%s1971_s1 + $0x398] sm:$0xff]  ;;  %347 = vst [vmem:[#allocation1 + $0x20] ss:$4 sm:$0xff] %v30_v59  ;;  %v114_v3 = vld [vmem:[%s1971_s1 + $0x290] sm:$0xff]  ;;  %v129_v4 = vld [vmem:[%s1971_s1 + $0x308] sm:$0xff] }
  0x2e   :  { %467 = vmatpush.msrb.mxu0 %v105_v23  ;;  %486 = vmatpush.msrb.mxu1 %v122_v24  ;;  %v146_v5 = vld [vmem:[%s1971_s1 + $0x390] sm:$0xff]  ;;  %v96_v6 = vld [vmem:[%s1971_s1 + $0x200] sm:$0xff]  ;;  %v113_v7 = vld [vmem:[%s1971_s1 + $0x288] sm:$0xff] }
  0x2f   :  { %507 = vmatpush.msrb.mxu2 %v137_v25  ;;  %526 = vmatpush.msrb.mxu3 %v154_v26  ;;  %v128_v8 = vld [vmem:[%s1971_s1 + $0x300] sm:$0xff]  ;;  %v145_v9 = vld [vmem:[%s1971_s1 + $0x388] sm:$0xff]  ;;  %v175_v10 = vld [vmem:[%s1971_s1 + $0x478] sm:$0xff] }
  0x30   :  { %468 = vmatpush.msrb.mxu0 %v104_v27  ;;  %487 = vmatpush.msrb.mxu1 %v121_v28  ;;  %v207_v11 = vld [vmem:[%s1971_s1 + $0x578] sm:$0xff]  ;;  %v112_v12 = vld [vmem:[%s1971_s1 + $0x280] sm:$0xff]  ;;  %v174_v14 = vld [vmem:[%s1971_s1 + $0x470] sm:$0xff] }
  0x31   :  { %508 = vmatpush.msrb.mxu2 %v136_v29  ;;  %527 = vmatpush.msrb.mxu3 %v153_v30  ;;  %v144_v13 = vld [vmem:[%s1971_s1 + $0x380] sm:$0xff]  ;;  %v191_v15 = vld [vmem:[%s1971_s1 + $0x4f8] sm:$0xff]  ;;  %v206_v16 = vld [vmem:[%s1971_s1 + $0x570] sm:$0xff] }
  0x32   :  { %469 = vmatpush.msrb.mxu0 %v103_v31  ;;  %488 = vmatpush.msrb.mxu1 %v120_v32  ;;  %v223_v17 = vld [vmem:[%s1971_s1 + $0x5f8] sm:$0xff]  ;;  %v173_v18 = vld [vmem:[%s1971_s1 + $0x468] sm:$0xff]  ;;  %v190_v19 = vld [vmem:[%s1971_s1 + $0x4f0] sm:$0xff] }
  0x33   :  { %509 = vmatpush.msrb.mxu2 %v135_v33  ;;  %528 = vmatpush.msrb.mxu3 %v152_v34  ;;  %v205_v20 = vld [vmem:[%s1971_s1 + $0x568] sm:$0xff]  ;;  %v222_v21 = vld [vmem:[%s1971_s1 + $0x5f0] sm:$0xff]  ;;  %v172_v22 = vld [vmem:[%s1971_s1 + $0x460] sm:$0xff] }
  0x34   :  { %470 = vmatpush.msrb.mxu0 %v102_v35  ;;  %489 = vmatpush.msrb.mxu1 %v119_v36  ;;  %v189_v23 = vld [vmem:[%s1971_s1 + $0x4e8] sm:$0xff]  ;;  %v204_v24 = vld [vmem:[%s1971_s1 + $0x560] sm:$0xff]  ;;  %v1386_v26 = vld.sshfl [vmem:[#allocation1 + $0x10] sm:$0xff pattern:$0x73625140] }
  0x35   :  { %510 = vmatpush.msrb.mxu2 %v134_v37  ;;  %529 = vmatpush.msrb.mxu3 %v151_v38  ;;  %v1384_v25 = vld.sshfl [vmem:[#allocation1] sm:$0xff pattern:$0x73625140]  ;;  %v1388_v27 = vld.sshfl [vmem:[#allocation1 + $0x8] sm:$0xff pattern:$0x73625140] }
  0x36   :  { %471 = vmatpush.msrb.mxu0 %v101_v40  ;;  %490 = vmatpush.msrb.mxu1 %v118_v41  ;;  %v221_v28 = vld [vmem:[%s1971_s1 + $0x5e8] sm:$0xff]  ;;  %v31_v29 = vld [vmem:[%s1970_s0 + $0x20] sm:$0x3f]  ;;  %v1396_v30 = vld.sshfl [vmem:[#allocation1 + $0x18] sm:$0xff pattern:$0x73625140] }
  0x37   :  { %511 = vmatpush.msrb.mxu2 %v133_v43  ;;  %530 = vmatpush.msrb.mxu3 %v150_v48  ;;  %v171_v31 = vld [vmem:[%s1971_s1 + $0x458] sm:$0xff]  ;;  %v188_v32 = vld [vmem:[%s1971_s1 + $0x4e0] sm:$0xff]  ;;  %356 = vst [vmem:[#allocation1] ss:$4 sm:$0xff] %v31_v29  ;;  %v170_v35 = vld [vmem:[%s1971_s1 + $0x450] sm:$0xff] }
  0x38   :  { %472 = vmatpush.msrb.mxu0 %v100_v49  ;;  %491 = vmatpush.msrb.mxu1 %v117_v50  ;;  %v203_v33 = vld [vmem:[%s1971_s1 + $0x558] sm:$0xff]  ;;  %v220_v34 = vld [vmem:[%s1971_s1 + $0x5e0] sm:$0xff] }
  0x39   :  { %512 = vmatpush.msrb.mxu2 %v132_v51  ;;  %531 = vmatpush.msrb.mxu3 %v149_v52  ;;  %v187_v36 = vld [vmem:[%s1971_s1 + $0x4d8] sm:$0xff] }
  0x3a   :  { %473 = vmatpush.msrb.mxu0 %v99_v53  ;;  %492 = vmatpush.msrb.mxu1 %v116_v54 }
  0x3b   :  { %513 = vmatpush.msrb.mxu2 %v131_v55  ;;  %532 = vmatpush.msrb.mxu3 %v148_v56 }
  0x3c   :  { %474 = vmatpush.msrb.mxu0 %v98_v57  ;;  %493 = vmatpush.msrb.mxu1 %v115_v58 }
  0x3d   :  { %514 = vmatpush.msrb.mxu2 %v130_v0  ;;  %533 = vmatpush.msrb.mxu3 %v147_v1 }
  0x3e   :  { %475 = vmatpush.msrb.mxu0 %v97_v2  ;;  %494 = vmatpush.msrb.mxu1 %v114_v3 }
  0x3f   :  { %515 = vmatpush.msrb.mxu2 %v129_v4  ;;  %534 = vmatpush.msrb.mxu3 %v146_v5 }
  0x40   :  { %437 = vmatmul.f32.vlgmr.msra.gmra.mxu2 %v340_v44  ;;  %476 = vmatpush.msrb.mxu0 %v96_v6 }
  0x41   :  { %495 = vmatpush.msrb.mxu1 %v113_v7  ;;  %516 = vmatpush.msrb.mxu2 %v128_v8 }
  0x42   :  { %535 = vmatpush.msrb.mxu3 %v145_v9  ;;  %397 = vmatmul.f32.vlgmr.msra.gmra.mxu0 %v1256_v45 }
  0x43   :  { %457 = vmatmul.f32.vlgmr.msra.gmra.mxu3 %v1258_v46  ;;  %541 = vmatpush.msra.mxu0 %v175_v10 }
  0x44   :  { %581 = vmatpush.msra.mxu2 %v207_v11  ;;  %496 = vmatpush.msrb.mxu1 %v112_v12 }
  0x45   :  { %536 = vmatpush.msrb.mxu3 %v144_v13  ;;  %417 = vmatmul.f32.vlgmr.msra.gmra.mxu1 %v1260_v47 }
  0x46   :  { %542 = vmatpush.msra.mxu0 %v174_v14  ;;  %561 = vmatpush.msra.mxu1 %v191_v15 }
  0x47   :  { %582 = vmatpush.msra.mxu2 %v206_v16  ;;  %601 = vmatpush.msra.mxu3 %v223_v17 }
  0x48   :  { %543 = vmatpush.msra.mxu0 %v173_v18  ;;  %562 = vmatpush.msra.mxu1 %v190_v19 }
  0x49   :  { %583 = vmatpush.msra.mxu2 %v205_v20  ;;  %602 = vmatpush.msra.mxu3 %v222_v21 }
  0x4a   :  { %517 = vmatmul.f32.vlgmr.msrb.gmra.mxu2 %v1298_v60  ;;  %544 = vmatpush.msra.mxu0 %v172_v22 }
  0x4b   :  { %563 = vmatpush.msra.mxu1 %v189_v23  ;;  %584 = vmatpush.msra.mxu2 %v204_v24 }
  0x4c   :  { %603 = vmatpush.msra.mxu3 %v221_v28  ;;  %477 = vmatmul.f32.vlgmr.msrb.gmra.mxu0 %v1300_v61 }
  0x4d   :  { %537 = vmatmul.f32.vlgmr.msrb.gmra.mxu3 %v1302_v62  ;;  %545 = vmatpush.msra.mxu0 %v171_v31 }
  0x4e   :  { %12 = vsyncpa [#allocation3], 0  ;;  %564 = vmatpush.msra.mxu1 %v188_v32  ;;  %585 = vmatpush.msra.mxu2 %v203_v33  ;;  %v202_v37 = vld [vmem:[%s1971_s1 + $0x550] sm:$0xff]  ;;  %v219_v38 = vld [vmem:[%s1971_s1 + $0x5d8] sm:$0xff]  ;;  %vm378_vm0 = vcmask 392192   ;;  %s891_s0 = smov [#allocation2]  }
  0x4f   :  { %604 = vmatpush.msra.mxu3 %v220_v34  ;;  %497 = vmatmul.f32.vlgmr.msrb.gmra.mxu1 %v1304_v63  ;;  %v169_v39 = vld [vmem:[%s1971_s1 + $0x448] sm:$0xff]  ;;  %v186_v40 = vld [vmem:[%s1971_s1 + $0x4d0] sm:$0xff]  ;;  %v168_v43 = vld [vmem:[%s1971_s1 + $0x440] sm:$0xff]  ;;  %s849_s25 = sshll.u32 %s891_s0, 4  ;;  %s851_s28 = sshll.u32 %s1977_s7, 4  ;;  %s850_s25 = int_to_ptr.vmem [resolvable:$true] %s849_s25  ;;  %s852_s28 = int_to_ptr.hbm [resolvable:$true] %s851_s28 }
  0x50   :  { %546 = vmatpush.msra.mxu0 %v170_v35  ;;  %565 = vmatpush.msra.mxu1 %v187_v36  ;;  %v201_v41 = vld [vmem:[%s1971_s1 + $0x548] sm:$0xff]  ;;  %v218_v42 = vld [vmem:[%s1971_s1 + $0x5d0] sm:$0xff]  ;;  %v200_v45 = vld [vmem:[%s1971_s1 + $0x540] sm:$0xff] }
  0x51   :  { %586 = vmatpush.msra.mxu2 %v202_v37  ;;  %605 = vmatpush.msra.mxu3 %v219_v38  ;;  %v185_v44 = vld [vmem:[%s1971_s1 + $0x4c8] sm:$0xff]  ;;  %v167_v47 = vld [vmem:[%s1971_s1 + $0x438] sm:$0xff]  ;;  %v184_v48 = vld [vmem:[%s1971_s1 + $0x4c0] sm:$0xff] }
  0x52   :  { %547 = vmatpush.msra.mxu0 %v169_v39  ;;  %566 = vmatpush.msra.mxu1 %v186_v40  ;;  %v217_v46 = vld [vmem:[%s1971_s1 + $0x5c8] sm:$0xff]  ;;  %v199_v49 = vld [vmem:[%s1971_s1 + $0x538] sm:$0xff]  ;;  %v216_v50 = vld [vmem:[%s1971_s1 + $0x5c0] sm:$0xff] }
  0x53   :  { %587 = vmatpush.msra.mxu2 %v201_v41  ;;  %606 = vmatpush.msra.mxu3 %v218_v42  ;;  %v166_v51 = vld [vmem:[%s1971_s1 + $0x430] sm:$0xff]  ;;  %v183_v52 = vld [vmem:[%s1971_s1 + $0x4b8] sm:$0xff]  ;;  %v165_v55 = vld [vmem:[%s1971_s1 + $0x428] sm:$0xff] }
  0x54   :  { %548 = vmatpush.msra.mxu0 %v168_v43  ;;  %567 = vmatpush.msra.mxu1 %v185_v44  ;;  %v198_v53 = vld [vmem:[%s1971_s1 + $0x530] sm:$0xff]  ;;  %v215_v54 = vld [vmem:[%s1971_s1 + $0x5b8] sm:$0xff]  ;;  %v197_v57 = vld [vmem:[%s1971_s1 + $0x528] sm:$0xff] }
  0x55   :  { %588 = vmatpush.msra.mxu2 %v200_v45  ;;  %607 = vmatpush.msra.mxu3 %v217_v46  ;;  %v182_v56 = vld [vmem:[%s1971_s1 + $0x4b0] sm:$0xff]  ;;  %v164_v59 = vld [vmem:[%s1971_s1 + $0x420] sm:$0xff]  ;;  %v181_v60 = vld [vmem:[%s1971_s1 + $0x4a8] sm:$0xff] }
  0x56   :  { %549 = vmatpush.msra.mxu0 %v167_v47  ;;  %568 = vmatpush.msra.mxu1 %v184_v48  ;;  %v214_v58 = vld [vmem:[%s1971_s1 + $0x5b0] sm:$0xff]  ;;  %v196_v61 = vld [vmem:[%s1971_s1 + $0x520] sm:$0xff]  ;;  %v213_v62 = vld [vmem:[%s1971_s1 + $0x5a8] sm:$0xff] }
  0x57   :  { %589 = vmatpush.msra.mxu2 %v199_v49  ;;  %608 = vmatpush.msra.mxu3 %v216_v50  ;;  %v163_v63 = vld [vmem:[%s1971_s1 + $0x418] sm:$0xff]  ;;  %v180_v0 = vld [vmem:[%s1971_s1 + $0x4a0] sm:$0xff]  ;;  %v162_v3 = vld [vmem:[%s1971_s1 + $0x410] sm:$0xff] }
  0x58   :  { %550 = vmatpush.msra.mxu0 %v166_v51  ;;  %569 = vmatpush.msra.mxu1 %v183_v52  ;;  %v195_v1 = vld [vmem:[%s1971_s1 + $0x518] sm:$0xff]  ;;  %v212_v2 = vld [vmem:[%s1971_s1 + $0x5a0] sm:$0xff]  ;;  %v194_v5 = vld [vmem:[%s1971_s1 + $0x510] sm:$0xff] }
  0x59   :  { %590 = vmatpush.msra.mxu2 %v198_v53  ;;  %609 = vmatpush.msra.mxu3 %v215_v54  ;;  %v179_v4 = vld [vmem:[%s1971_s1 + $0x498] sm:$0xff]  ;;  %v161_v7 = vld [vmem:[%s1971_s1 + $0x408] sm:$0xff]  ;;  %v178_v8 = vld [vmem:[%s1971_s1 + $0x490] sm:$0xff] }
  0x5a   :  { %551 = vmatpush.msra.mxu0 %v165_v55  ;;  %570 = vmatpush.msra.mxu1 %v182_v56  ;;  %v211_v6 = vld [vmem:[%s1971_s1 + $0x598] sm:$0xff]  ;;  %v193_v9 = vld [vmem:[%s1971_s1 + $0x508] sm:$0xff]  ;;  %v210_v10 = vld [vmem:[%s1971_s1 + $0x590] sm:$0xff] }
  0x5b   :  { %591 = vmatpush.msra.mxu2 %v197_v57  ;;  %610 = vmatpush.msra.mxu3 %v214_v58  ;;  %v160_v11 = vld [vmem:[%s1971_s1 + $0x400] sm:$0xff]  ;;  %v177_v12 = vld [vmem:[%s1971_s1 + $0x488] sm:$0xff]  ;;  %v239_v15 = vld [vmem:[%s1971_s1 + $0x678] sm:$0xff] }
  0x5c   :  { %552 = vmatpush.msra.mxu0 %v164_v59  ;;  %571 = vmatpush.msra.mxu1 %v181_v60  ;;  %v192_v13 = vld [vmem:[%s1971_s1 + $0x500] sm:$0xff]  ;;  %v209_v14 = vld [vmem:[%s1971_s1 + $0x588] sm:$0xff]  ;;  %v271_v16 = vld [vmem:[%s1971_s1 + $0x778] sm:$0xff] }
  0x5d   :  { %592 = vmatpush.msra.mxu2 %v196_v61  ;;  %611 = vmatpush.msra.mxu3 %v213_v62  ;;  %v176_v17 = vld [vmem:[%s1971_s1 + $0x480] sm:$0xff]  ;;  %v238_v19 = vld [vmem:[%s1971_s1 + $0x670] sm:$0xff]  ;;  %v255_v20 = vld [vmem:[%s1971_s1 + $0x6f8] sm:$0xff] }
  0x5e   :  { %553 = vmatpush.msra.mxu0 %v163_v63  ;;  %572 = vmatpush.msra.mxu1 %v180_v0  ;;  %v208_v18 = vld [vmem:[%s1971_s1 + $0x580] sm:$0xff]  ;;  %v270_v21 = vld [vmem:[%s1971_s1 + $0x770] sm:$0xff]  ;;  %v287_v22 = vld [vmem:[%s1971_s1 + $0x7f8] sm:$0xff] }
  0x5f   :  { %593 = vmatpush.msra.mxu2 %v195_v1  ;;  %612 = vmatpush.msra.mxu3 %v212_v2  ;;  %v237_v23 = vld [vmem:[%s1971_s1 + $0x668] sm:$0xff]  ;;  %v254_v24 = vld [vmem:[%s1971_s1 + $0x6f0] sm:$0xff]  ;;  %v268_v29 = vld [vmem:[%s1971_s1 + $0x760] sm:$0xff] }
  0x60   :  { %554 = vmatpush.msra.mxu0 %v162_v3  ;;  %573 = vmatpush.msra.mxu1 %v179_v4  ;;  %v253_v28 = vld [vmem:[%s1971_s1 + $0x6e8] sm:$0xff]  ;;  %v235_v31 = vld [vmem:[%s1971_s1 + $0x658] sm:$0xff]  ;;  %v252_v32 = vld [vmem:[%s1971_s1 + $0x6e0] sm:$0xff] }
  0x61   :  { %594 = vmatpush.msra.mxu2 %v194_v5  ;;  %613 = vmatpush.msra.mxu3 %v211_v6  ;;  %v267_v33 = vld [vmem:[%s1971_s1 + $0x758] sm:$0xff]  ;;  %v284_v34 = vld [vmem:[%s1971_s1 + $0x7e0] sm:$0xff]  ;;  %v234_v35 = vld [vmem:[%s1971_s1 + $0x650] sm:$0xff] }
  0x62   :  { %555 = vmatpush.msra.mxu0 %v161_v7  ;;  %574 = vmatpush.msra.mxu1 %v178_v8  ;;  %v251_v36 = vld [vmem:[%s1971_s1 + $0x6d8] sm:$0xff]  ;;  %v266_v37 = vld [vmem:[%s1971_s1 + $0x750] sm:$0xff]  ;;  %v233_v39 = vld [vmem:[%s1971_s1 + $0x648] sm:$0xff] }
  0x63   :  { %595 = vmatpush.msra.mxu2 %v193_v9  ;;  %614 = vmatpush.msra.mxu3 %v210_v10  ;;  %v283_v38 = vld [vmem:[%s1971_s1 + $0x7d8] sm:$0xff]  ;;  %v250_v40 = vld [vmem:[%s1971_s1 + $0x6d0] sm:$0xff]  ;;  %v265_v41 = vld [vmem:[%s1971_s1 + $0x748] sm:$0xff] }
  0x64   :  { %556 = vmatpush.msra.mxu0 %v160_v11  ;;  %575 = vmatpush.msra.mxu1 %v177_v12  ;;  %v282_v42 = vld [vmem:[%s1971_s1 + $0x7d0] sm:$0xff]  ;;  %v232_v43 = vld [vmem:[%s1971_s1 + $0x640] sm:$0xff]  ;;  %v249_v44 = vld [vmem:[%s1971_s1 + $0x6c8] sm:$0xff] }
  0x65   :  { %596 = vmatpush.msra.mxu2 %v192_v13  ;;  %615 = vmatpush.msra.mxu3 %v209_v14  ;;  %v264_v45 = vld [vmem:[%s1971_s1 + $0x740] sm:$0xff]  ;;  %v281_v46 = vld [vmem:[%s1971_s1 + $0x7c8] sm:$0xff]  ;;  %v231_v47 = vld [vmem:[%s1971_s1 + $0x638] sm:$0xff] }
  0x66   :  { %557 = vmatmul.f32.vlgmr.msra.gmra.mxu0 %v1384_v25  ;;  %597 = vmatmul.f32.vlgmr.msra.gmra.mxu2 %v1386_v26  ;;  %v269_v25 = vld [vmem:[%s1971_s1 + $0x768] sm:$0xff]  ;;  %v286_v26 = vld [vmem:[%s1971_s1 + $0x7f0] sm:$0xff]  ;;  %v248_v48 = vld [vmem:[%s1971_s1 + $0x6c0] sm:$0xff] }
  0x67   :  { %621 = vmatpush.msrb.mxu0 %v239_v15  ;;  %661 = vmatpush.msrb.mxu2 %v271_v16  ;;  %v263_v49 = vld [vmem:[%s1971_s1 + $0x738] sm:$0xff]  ;;  %v280_v50 = vld [vmem:[%s1971_s1 + $0x7c0] sm:$0xff]  ;;  %v230_v51 = vld [vmem:[%s1971_s1 + $0x630] sm:$0xff] }
  0x68   :  { %576 = vmatpush.msra.mxu1 %v176_v17  ;;  %616 = vmatpush.msra.mxu3 %v208_v18  ;;  %v247_v52 = vld [vmem:[%s1971_s1 + $0x6b8] sm:$0xff]  ;;  %v262_v53 = vld [vmem:[%s1971_s1 + $0x730] sm:$0xff]  ;;  %v229_v55 = vld [vmem:[%s1971_s1 + $0x628] sm:$0xff] }
  0x69   :  { %577 = vmatmul.f32.vlgmr.msra.gmra.mxu1 %v1388_v27  ;;  %617 = vmatmul.f32.vlgmr.msra.gmra.mxu3 %v1396_v30  ;;  %v236_v27 = vld [vmem:[%s1971_s1 + $0x660] sm:$0xff]  ;;  %v285_v30 = vld [vmem:[%s1971_s1 + $0x7e8] sm:$0xff]  ;;  %v279_v54 = vld [vmem:[%s1971_s1 + $0x7b8] sm:$0xff] }
  0x6a   :  { %622 = vmatpush.msrb.mxu0 %v238_v19  ;;  %641 = vmatpush.msrb.mxu1 %v255_v20  ;;  %v246_v56 = vld [vmem:[%s1971_s1 + $0x6b0] sm:$0xff]  ;;  %v261_v57 = vld [vmem:[%s1971_s1 + $0x728] sm:$0xff]  ;;  %v228_v59 = vld [vmem:[%s1971_s1 + $0x620] sm:$0xff] }
  0x6b   :  { %662 = vmatpush.msrb.mxu2 %v270_v21  ;;  %681 = vmatpush.msrb.mxu3 %v287_v22  ;;  %v278_v58 = vld [vmem:[%s1971_s1 + $0x7b0] sm:$0xff]  ;;  %v245_v60 = vld [vmem:[%s1971_s1 + $0x6a8] sm:$0xff]  ;;  %v260_v61 = vld [vmem:[%s1971_s1 + $0x720] sm:$0xff] }
  0x6c   :  { %623 = vmatpush.msrb.mxu0 %v237_v23  ;;  %642 = vmatpush.msrb.mxu1 %v254_v24  ;;  %v277_v62 = vld [vmem:[%s1971_s1 + $0x7a8] sm:$0xff]  ;;  %v227_v63 = vld [vmem:[%s1971_s1 + $0x618] sm:$0xff]  ;;  %v244_v0 = vld [vmem:[%s1971_s1 + $0x6a0] sm:$0xff] }
  0x6d   :  { %663 = vmatpush.msrb.mxu2 %v269_v25  ;;  %682 = vmatpush.msrb.mxu3 %v286_v26  ;;  %v259_v1 = vld [vmem:[%s1971_s1 + $0x718] sm:$0xff]  ;;  %v276_v2 = vld [vmem:[%s1971_s1 + $0x7a0] sm:$0xff]  ;;  %v226_v3 = vld [vmem:[%s1971_s1 + $0x610] sm:$0xff] }
  0x6e   :  { %624 = vmatpush.msrb.mxu0 %v236_v27  ;;  %643 = vmatpush.msrb.mxu1 %v253_v28  ;;  %v243_v4 = vld [vmem:[%s1971_s1 + $0x698] sm:$0xff]  ;;  %v258_v5 = vld [vmem:[%s1971_s1 + $0x710] sm:$0xff]  ;;  %v225_v7 = vld [vmem:[%s1971_s1 + $0x608] sm:$0xff] }
  0x6f   :  { %664 = vmatpush.msrb.mxu2 %v268_v29  ;;  %683 = vmatpush.msrb.mxu3 %v285_v30  ;;  %v275_v6 = vld [vmem:[%s1971_s1 + $0x798] sm:$0xff]  ;;  %v242_v8 = vld [vmem:[%s1971_s1 + $0x690] sm:$0xff]  ;;  %v257_v9 = vld [vmem:[%s1971_s1 + $0x708] sm:$0xff] }
  0x70   :  { %625 = vmatpush.msrb.mxu0 %v235_v31  ;;  %644 = vmatpush.msrb.mxu1 %v252_v32  ;;  %v274_v10 = vld [vmem:[%s1971_s1 + $0x790] sm:$0xff]  ;;  %v224_v11 = vld [vmem:[%s1971_s1 + $0x600] sm:$0xff]  ;;  %v241_v12 = vld [vmem:[%s1971_s1 + $0x688] sm:$0xff] }
  0x71   :  { %665 = vmatpush.msrb.mxu2 %v267_v33  ;;  %684 = vmatpush.msrb.mxu3 %v284_v34  ;;  %v256_v13 = vld [vmem:[%s1971_s1 + $0x700] sm:$0xff]  ;;  %v273_v14 = vld [vmem:[%s1971_s1 + $0x788] sm:$0xff]  ;;  %v354_v16 = vld.sshfl [vmem:[#allocation1 + $0x30] sm:$0xff pattern:$0x73625140] }
  0x72   :  { %626 = vmatpush.msrb.mxu0 %v234_v35  ;;  %645 = vmatpush.msrb.mxu1 %v251_v36  ;;  %v352_v15 = vld.sshfl [vmem:[#allocation1 + $0x20] sm:$0xff pattern:$0x73625140]  ;;  %v303_v17 = vld [vmem:[%s1971_s1 + $0x878] sm:$0xff]  ;;  %v302_v22 = vld [vmem:[%s1971_s1 + $0x870] sm:$0xff] }
  0x73   :  { %666 = vmatpush.msrb.mxu2 %v266_v37  ;;  %685 = vmatpush.msrb.mxu3 %v283_v38  ;;  %v240_v18 = vld [vmem:[%s1971_s1 + $0x680] sm:$0xff]  ;;  %v353_v20 = vld.sshfl [vmem:[#allocation1 + $0x28] sm:$0xff pattern:$0x73625140]  ;;  %v319_v23 = vld [vmem:[%s1971_s1 + $0x8f8] sm:$0xff] }
  0x74   :  { %627 = vmatpush.msrb.mxu0 %v233_v39  ;;  %646 = vmatpush.msrb.mxu1 %v250_v40  ;;  %v272_v19 = vld [vmem:[%s1971_s1 + $0x780] sm:$0xff]  ;;  %v355_v21 = vld.sshfl [vmem:[#allocation1 + $0x38] sm:$0xff pattern:$0x73625140]  ;;  %v325_v24 = vld [vmem:[%s1971_s1 + $0x928] sm:$0xff] }
  0x75   :  { %667 = vmatpush.msrb.mxu2 %v265_v41  ;;  %686 = vmatpush.msrb.mxu3 %v282_v42  ;;  %v301_v25 = vld [vmem:[%s1971_s1 + $0x868] sm:$0xff]  ;;  %v318_v26 = vld [vmem:[%s1971_s1 + $0x8f0] sm:$0xff]  ;;  %v324_v27 = vld [vmem:[%s1971_s1 + $0x920] sm:$0xff] }
  0x76   :  { %628 = vmatpush.msrb.mxu0 %v232_v43  ;;  %647 = vmatpush.msrb.mxu1 %v249_v44  ;;  %v300_v28 = vld [vmem:[%s1971_s1 + $0x860] sm:$0xff]  ;;  %v317_v29 = vld [vmem:[%s1971_s1 + $0x8e8] sm:$0xff]  ;;  %v323_v30 = vld [vmem:[%s1971_s1 + $0x918] sm:$0xff] }
  0x77   :  { %668 = vmatpush.msrb.mxu2 %v264_v45  ;;  %687 = vmatpush.msrb.mxu3 %v281_v46  ;;  %v299_v31 = vld [vmem:[%s1971_s1 + $0x858] sm:$0xff]  ;;  %v316_v32 = vld [vmem:[%s1971_s1 + $0x8e0] sm:$0xff]  ;;  %v322_v33 = vld [vmem:[%s1971_s1 + $0x910] sm:$0xff] }
  0x78   :  { %629 = vmatpush.msrb.mxu0 %v231_v47  ;;  %648 = vmatpush.msrb.mxu1 %v248_v48  ;;  %v298_v34 = vld [vmem:[%s1971_s1 + $0x850] sm:$0xff]  ;;  %v315_v35 = vld [vmem:[%s1971_s1 + $0x8d8] sm:$0xff]  ;;  %v321_v36 = vld [vmem:[%s1971_s1 + $0x908] sm:$0xff] }
  0x79   :  { %669 = vmatpush.msrb.mxu2 %v263_v49  ;;  %688 = vmatpush.msrb.mxu3 %v280_v50  ;;  %v297_v37 = vld [vmem:[%s1971_s1 + $0x848] sm:$0xff]  ;;  %v314_v38 = vld [vmem:[%s1971_s1 + $0x8d0] sm:$0xff]  ;;  %v320_v39 = vld [vmem:[%s1971_s1 + $0x900] sm:$0xff] }
  0x7a   :  { %630 = vmatpush.msrb.mxu0 %v230_v51  ;;  %649 = vmatpush.msrb.mxu1 %v247_v52  ;;  %v296_v40 = vld [vmem:[%s1971_s1 + $0x840] sm:$0xff]  ;;  %v359_v41 = vld.sshfl [vmem:[#allocation1 + $0x10] sm:$0xff pattern:$0x73625140]  ;;  %v313_v42 = vld [vmem:[%s1971_s1 + $0x8c8] sm:$0xff] }
  0x7b   :  { %670 = vmatpush.msrb.mxu2 %v262_v53  ;;  %689 = vmatpush.msrb.mxu3 %v279_v54  ;;  %v295_v43 = vld [vmem:[%s1971_s1 + $0x838] sm:$0xff]  ;;  %v312_v44 = vld [vmem:[%s1971_s1 + $0x8c0] sm:$0xff]  ;;  %v294_v45 = vld [vmem:[%s1971_s1 + $0x830] sm:$0xff] }
  0x7c   :  { %631 = vmatpush.msrb.mxu0 %v229_v55  ;;  %650 = vmatpush.msrb.mxu1 %v246_v56  ;;  %v311_v46 = vld [vmem:[%s1971_s1 + $0x8b8] sm:$0xff]  ;;  %v293_v47 = vld [vmem:[%s1971_s1 + $0x828] sm:$0xff]  ;;  %v310_v48 = vld [vmem:[%s1971_s1 + $0x8b0] sm:$0xff] }
  0x7d   :  { %671 = vmatpush.msrb.mxu2 %v261_v57  ;;  %690 = vmatpush.msrb.mxu3 %v278_v58  ;;  %v292_v49 = vld [vmem:[%s1971_s1 + $0x820] sm:$0xff]  ;;  %v309_v50 = vld [vmem:[%s1971_s1 + $0x8a8] sm:$0xff]  ;;  %v291_v51 = vld [vmem:[%s1971_s1 + $0x818] sm:$0xff] }
  0x7e   :  { %632 = vmatpush.msrb.mxu0 %v228_v59  ;;  %651 = vmatpush.msrb.mxu1 %v245_v60  ;;  %v308_v52 = vld [vmem:[%s1971_s1 + $0x8a0] sm:$0xff]  ;;  %v290_v53 = vld [vmem:[%s1971_s1 + $0x810] sm:$0xff]  ;;  %v307_v54 = vld [vmem:[%s1971_s1 + $0x898] sm:$0xff] }
  0x7f   :  { %672 = vmatpush.msrb.mxu2 %v260_v61  ;;  %691 = vmatpush.msrb.mxu3 %v277_v62  ;;  %v289_v55 = vld [vmem:[%s1971_s1 + $0x808] sm:$0xff]  ;;  %v306_v56 = vld [vmem:[%s1971_s1 + $0x890] sm:$0xff]  ;;  %v288_v57 = vld [vmem:[%s1971_s1 + $0x800] sm:$0xff] }
  0x80   :  { %633 = vmatpush.msrb.mxu0 %v227_v63  ;;  %652 = vmatpush.msrb.mxu1 %v244_v0  ;;  %v305_v58 = vld [vmem:[%s1971_s1 + $0x888] sm:$0xff]  ;;  %v357_v59 = vld.sshfl [vmem:[#allocation1] sm:$0xff pattern:$0x73625140]  ;;  %v777_v0 = vld [vmem:[%s1973_s3 + $0x78] sm:$0xff] }
  0x81   :  { %673 = vmatpush.msrb.mxu2 %v259_v1  ;;  %692 = vmatpush.msrb.mxu3 %v276_v2  ;;  %v304_v60 = vld [vmem:[%s1971_s1 + $0x880] sm:$0xff]  ;;  %v358_v61 = vld.sshfl [vmem:[#allocation1 + $0x8] sm:$0xff pattern:$0x73625140]  ;;  %v776_v1 = vld [vmem:[%s1973_s3 + $0x70] sm:$0xff] }
  0x82   :  { %634 = vmatpush.msrb.mxu0 %v226_v3  ;;  %653 = vmatpush.msrb.mxu1 %v243_v4  ;;  %v862_v62 = vld [vmem:[%s1972_s2] ss:$0 sm:$0xff]  ;;  %v775_v4 = vld [vmem:[%s1973_s3 + $0x68] sm:$0xff] }
  0x83   :  { %674 = vmatpush.msrb.mxu2 %v258_v5  ;;  %693 = vmatpush.msrb.mxu3 %v275_v6  ;;  %v774_v5 = vld [vmem:[%s1973_s3 + $0x60] sm:$0xff] }
  0x84   :  { %635 = vmatpush.msrb.mxu0 %v225_v7  ;;  %654 = vmatpush.msrb.mxu1 %v242_v8  ;;  %v773_v8 = vld [vmem:[%s1973_s3 + $0x58] sm:$0xff] }
  0x85   :  { %675 = vmatpush.msrb.mxu2 %v257_v9  ;;  %694 = vmatpush.msrb.mxu3 %v274_v10  ;;  %v772_v9 = vld [vmem:[%s1973_s3 + $0x50] sm:$0xff] }
  0x86   :  { %636 = vmatpush.msrb.mxu0 %v224_v11  ;;  %655 = vmatpush.msrb.mxu1 %v241_v12  ;;  %v771_v12 = vld [vmem:[%s1973_s3 + $0x48] sm:$0xff] }
  0x87   :  { %676 = vmatpush.msrb.mxu2 %v256_v13  ;;  %695 = vmatpush.msrb.mxu3 %v273_v14  ;;  %v770_v13 = vld [vmem:[%s1973_s3 + $0x40] sm:$0xff] }
  0x88   :  { %637 = vmatmul.f32.vlgmr.msrb.gmra.mxu0 %v352_v15  ;;  %677 = vmatmul.f32.vlgmr.msrb.gmra.mxu2 %v354_v16  ;;  %v769_v16 = vld [vmem:[%s1973_s3 + $0x38] sm:$0xff] }
  0x89   :  { %701 = vmatpush.msra.mxu0 %v303_v17  ;;  %656 = vmatpush.msrb.mxu1 %v240_v18  ;;  %v768_v17 = vld [vmem:[%s1973_s3 + $0x30] sm:$0xff] }
  0x8a   :  { %696 = vmatpush.msrb.mxu3 %v272_v19  ;;  %657 = vmatmul.f32.vlgmr.msrb.gmra.mxu1 %v353_v20  ;;  %v767_v20 = vld [vmem:[%s1973_s3 + $0x28] sm:$0xff] }
  0x8b   :  { %697 = vmatmul.f32.vlgmr.msrb.gmra.mxu3 %v355_v21  ;;  %702 = vmatpush.msra.mxu0 %v302_v22 }
  0x8c   :  { %721 = vmatpush.msra.mxu1 %v319_v23  ;;  %751 = vmatpush.msra.mxu2 %v325_v24  ;;  %v766_v23 = vld [vmem:[%s1973_s3 + $0x20] sm:$0xff]  ;;  %v765_v24 = vld [vmem:[%s1973_s3 + $0x18] sm:$0xff] }
  0x8d   :  { %703 = vmatpush.msra.mxu0 %v301_v25  ;;  %782 = vmatpush.msra.mxu3 %v777_v0 }
  0x8e   :  { %722 = vmatpush.msra.mxu1 %v318_v26  ;;  %752 = vmatpush.msra.mxu2 %v324_v27  ;;  %v764_v27 = vld [vmem:[%s1973_s3 + $0x10] sm:$0xff] }
  0x8f   :  { %704 = vmatpush.msra.mxu0 %v300_v28  ;;  %783 = vmatpush.msra.mxu3 %v776_v1 }
  0x90   :  { %723 = vmatpush.msra.mxu1 %v317_v29  ;;  %753 = vmatpush.msra.mxu2 %v323_v30  ;;  %v763_v29 = vld [vmem:[%s1973_s3 + $0x8] sm:$0xff] }
  0x91   :  { %705 = vmatpush.msra.mxu0 %v299_v31  ;;  %784 = vmatpush.msra.mxu3 %v775_v4  ;;  %v762_v31 = vld [vmem:[%s1973_s3] sm:$0xff]  ;;  %v804_v4 = vld [vmem:[%s1975_s5 + $0x8] sm:$0xff] }
  0x92   :  { %724 = vmatpush.msra.mxu1 %v316_v32  ;;  %754 = vmatpush.msra.mxu2 %v322_v33 }
  0x93   :  { %706 = vmatpush.msra.mxu0 %v298_v34  ;;  %785 = vmatpush.msra.mxu3 %v774_v5  ;;  %v818_v34 = vld [vmem:[%s1975_s5 + $0x78] sm:$0xff]  ;;  %v803_v5 = vld [vmem:[%s1975_s5] sm:$0xff] }
  0x94   :  { %725 = vmatpush.msra.mxu1 %v315_v35  ;;  %755 = vmatpush.msra.mxu2 %v321_v36  ;;  %v817_v35 = vld [vmem:[%s1975_s5 + $0x70] sm:$0xff] }
  0x95   :  { %707 = vmatpush.msra.mxu0 %v297_v37  ;;  %786 = vmatpush.msra.mxu3 %v773_v8  ;;  %v816_v37 = vld [vmem:[%s1975_s5 + $0x68] sm:$0xff] }
  0x96   :  { %726 = vmatpush.msra.mxu1 %v314_v38  ;;  %756 = vmatpush.msra.mxu2 %v320_v39  ;;  %v815_v39 = vld [vmem:[%s1975_s5 + $0x60] sm:$0xff] }
  0x97   :  { %708 = vmatpush.msra.mxu0 %v296_v40  ;;  %860 = vmatmul.msk.f32.vlgmr.msra.gmra.mxu2 %vm378_vm0, %v359_v41 }
  0x98   :  { %727 = vmatpush.msra.mxu1 %v313_v42  ;;  %787 = vmatpush.msra.mxu3 %v772_v9  ;;  %v814_v42 = vld [vmem:[%s1975_s5 + $0x58] sm:$0xff] }
  0x99   :  { %709 = vmatpush.msra.mxu0 %v295_v43  ;;  %823 = vmatpush.msrb.mxu2 %v818_v34 }
  0x9a   :  { %728 = vmatpush.msra.mxu1 %v312_v44  ;;  %788 = vmatpush.msra.mxu3 %v771_v12  ;;  %v813_v44 = vld [vmem:[%s1975_s5 + $0x50] sm:$0xff] }
  0x9b   :  { %710 = vmatpush.msra.mxu0 %v294_v45  ;;  %824 = vmatpush.msrb.mxu2 %v817_v35 }
  0x9c   :  { %729 = vmatpush.msra.mxu1 %v311_v46  ;;  %789 = vmatpush.msra.mxu3 %v770_v13  ;;  %v812_v46 = vld [vmem:[%s1975_s5 + $0x48] sm:$0xff] }
  0x9d   :  { %711 = vmatpush.msra.mxu0 %v293_v47  ;;  %825 = vmatpush.msrb.mxu2 %v816_v37 }
  0x9e   :  { %730 = vmatpush.msra.mxu1 %v310_v48  ;;  %790 = vmatpush.msra.mxu3 %v769_v16 }
  0x9f   :  { %712 = vmatpush.msra.mxu0 %v292_v49  ;;  %826 = vmatpush.msrb.mxu2 %v815_v39  ;;  %v811_v49 = vld [vmem:[%s1975_s5 + $0x40] sm:$0xff] }
  0xa0   :  { %731 = vmatpush.msra.mxu1 %v309_v50  ;;  %791 = vmatpush.msra.mxu3 %v768_v17 }
  0xa1   :  { %713 = vmatpush.msra.mxu0 %v291_v51  ;;  %827 = vmatpush.msrb.mxu2 %v814_v42  ;;  %v810_v51 = vld [vmem:[%s1975_s5 + $0x38] sm:$0xff] }
  0xa2   :  { %732 = vmatpush.msra.mxu1 %v308_v52  ;;  %792 = vmatpush.msra.mxu3 %v767_v20 }
  0xa3   :  { %714 = vmatpush.msra.mxu0 %v290_v53  ;;  %828 = vmatpush.msrb.mxu2 %v813_v44  ;;  %v809_v53 = vld [vmem:[%s1975_s5 + $0x30] sm:$0xff] }
  0xa4   :  { %733 = vmatpush.msra.mxu1 %v307_v54  ;;  %793 = vmatpush.msra.mxu3 %v766_v23 }
  0xa5   :  { %715 = vmatpush.msra.mxu0 %v289_v55  ;;  %829 = vmatpush.msrb.mxu2 %v812_v46 }
  0xa6   :  { %734 = vmatpush.msra.mxu1 %v306_v56  ;;  %794 = vmatpush.msra.mxu3 %v765_v24  ;;  %v808_v56 = vld [vmem:[%s1975_s5 + $0x28] sm:$0xff] }
  0xa7   :  { %716 = vmatpush.msra.mxu0 %v288_v57  ;;  %830 = vmatpush.msrb.mxu2 %v811_v49  ;;  %v807_v57 = vld [vmem:[%s1975_s5 + $0x20] sm:$0xff] }
  0xa8   :  { %735 = vmatpush.msra.mxu1 %v305_v58  ;;  %717 = vmatmul.f32.vlgmr.msra.gmra.mxu0 %v357_v59 }
  0xa9   :  { %795 = vmatpush.msra.mxu3 %v764_v27  ;;  %831 = vmatpush.msrb.mxu2 %v810_v51 }
  0xaa   :  { %736 = vmatpush.msra.mxu1 %v304_v60  ;;  %v806_v60 = vld [vmem:[%s1975_s5 + $0x18] sm:$0xff] }
  0xab   :  { %737 = vmatmul.f32.vlgmr.msra.gmra.mxu1 %v358_v61  ;;  %796 = vmatpush.msra.mxu3 %v763_v29 }
  0xac   :  { %832 = vmatpush.msrb.mxu2 %v809_v53 }
  0xad   :  { %797 = vmatpush.msra.mxu3 %v762_v31 }
  0xae   :  { %833 = vmatpush.msrb.mxu2 %v808_v56 }
  0xb0   :  { %834 = vmatpush.msrb.mxu2 %v807_v57 }
  0xb2   :  { %835 = vmatpush.msrb.mxu2 %v806_v60 }
  0xbf   :  { %v398_v63 = vpop.f32.mrf.mxu0 }
  0xc0   :  { %v399_v2 = vadd.f32 %v862_v62, %v398_v63 }
  0xc2   :  { %v418_v3 = vpop.f32.mrf.mxu1 }
  0xc3   :  { %v419_v6 = vadd.f32 %v418_v3, %v399_v2  ;;  %v438_v7 = vpop.f32.mrf.mxu2  ;;  %v805_v3 = vld [vmem:[%s1975_s5 + $0x10] sm:$0xff] }
  0xc4   :  { %836 = vmatpush.msrb.mxu2 %v805_v3 }
  0xc5   :  { %v439_v10 = vadd.f32 %v438_v7, %v419_v6  ;;  %v863_v6 = vld [vmem:[%s1974_s4] ss:$0 sm:$0xff] }
  0xc6   :  { %v458_v11 = vpop.f32.mrf.mxu3  ;;  %837 = vmatpush.msrb.mxu2 %v804_v4 }
  0xc7   :  { %v459_v14 = vadd.f32 %v458_v11, %v439_v10  ;;  %v864_v10 = vld [vmem:[%s1976_s6] ss:$0 sm:$0xff] }
  0xc8   :  { %838 = vmatpush.msrb.mxu2 %v803_v5 }
  0xc9   :  { %v478_v15 = vpop.f32.mrf.mxu0 }
  0xca   :  { %v479_v18 = vadd.f32 %v478_v15, %v459_v14 }
  0xcc   :  { %v498_v19 = vpop.f32.mrf.mxu1 }
  0xcd   :  { %v499_v21 = vadd.f32 %v498_v19, %v479_v18  ;;  %v518_v22 = vpop.f32.mrf.mxu2 }
  0xcf   :  { %v519_v25 = vadd.f32 %v518_v22, %v499_v21 }
  0xd0   :  { %v538_v26 = vpop.f32.mrf.mxu3 }
  0xd1   :  { %v539_v30 = vadd.f32 %v538_v26, %v519_v25 }
  0xe3   :  { %v558_v28 = vpop.f32.mrf.mxu0 }
  0xe4   :  { %v559_v32 = vadd.f32 %v558_v28, %v539_v30 }
  0xe6   :  { %v578_v33 = vpop.f32.mrf.mxu1 }
  0xe7   :  { %v579_v38 = vadd.f32 %v578_v33, %v559_v32 }
  0xe9   :  { %v598_v36 = vpop.f32.mrf.mxu2 }
  0xea   :  { %v599_v40 = vadd.f32 %v598_v36, %v579_v38 }
  0xec   :  { %v618_v41 = vpop.f32.mrf.mxu3 }
  0xed   :  { %v619_v45 = vadd.f32 %v618_v41, %v599_v40 }
 0x105   :  { %v638_v43 = vpop.f32.mrf.mxu0 }
 0x106   :  { %v639_v47 = vadd.f32 %v638_v43, %v619_v45 }
 0x107   :  { %v658_v48 = vpop.f32.mrf.mxu1 }
 0x108   :  { %v659_v52 = vadd.f32 %v658_v48, %v639_v47 }
 0x10b   :  { %v678_v50 = vpop.f32.mrf.mxu2 }
 0x10c   :  { %v679_v54 = vadd.f32 %v678_v50, %v659_v52 }
 0x10e   :  { %v698_v55 = vpop.f32.mrf.mxu3 }
 0x10f   :  { %v699_v58 = vadd.f32 %v698_v55, %v679_v54 }
 0x11a   :  { %v758_v63 = vpop.f32.mrf.mxu2 }
 0x125   :  { %v718_v59 = vpop.f32.mrf.mxu0 }
 0x126   :  { %v719_v61 = vadd.f32 %v718_v59, %v699_v58 }
 0x128   :  { %v738_v62 = vpop.f32.mrf.mxu1 }
 0x129   :  { %v739_v0 = vadd.f32 %v738_v62, %v719_v61 }
 0x12b   :  { %v759_v1 = vadd.f32 %v758_v63, %v739_v0 }
 0x12d   :  { %v761_v2 = vmax.f32 %v759_v1, 0.0 }
 0x12f   :  { %798 = vmatmul.f32.vlgmr.msra.gmra.mxu3 %v761_v2 }
 0x1b2   :  { %v799_v7 = vpop.f32.mrf.mxu3 }
 0x1b3   :  { %v800_v8 = vadd.f32 %v863_v6, %v799_v7 }
 0x1b5   :  { %v802_v9 = vmax.f32 %v800_v8, 0.0 }
 0x1b7   :  { %839 = vmatmul.f32.vlgmr.msrb.gmra.mxu2 %v802_v9 }
 0x23a   :  { %v840_v11 = vpop.f32.mrf.mxu2 }
 0x23b   :  { %v841_v12 = vadd.f32 %v864_v10, %v840_v11 }
 0x23d   :  { %843 = vst [vmem:[#allocation2] sm:$0x3] %v841_v12 }
 0x23e   :  { %854 = dma.vmem_to_hbm [thread:$0]  %s850_s25, 32, %s852_s28, [#allocation3]  }
 0x23f   :  { %889 = dma.done.wait [#allocation3], 32  }
 0x240   :  { %890 = vsyncadd [#allocation3], 4294967264 }
 0x241   :  { %859 = vsyncpa [#allocation3], 1 }

// kernel: discriminator_forward.2
= control target key start
LH: loop header
LB: loop body
LE: loop exit
PB: predicated region body
PF: predicated region fallthrough
CT: control target
= control target key end

     0   :  { %s2475_s9 = smov 0   ;;  %s3826_s0 = inlined_call_operand.vmem [shape: f32[168,8,224], index: 0, kind: input, shape index: {}]   ;;  %s3827_s1 = inlined_call_operand.vmem [shape: f32[8,224,28], index: 1, kind: input, shape index: {}]   ;;  %s3828_s2 = inlined_call_operand.vmem [shape: f32[168,28], index: 2, kind: output, shape index: {}]  }
   0x1 LB: > { %s2181_s10 = sadd.s32 4294967295, %s2458_s9   ;;  %p2185_p0 = scmp.ge.s32.totalorder %s2458_s9, 1  ;;  %s2458_s9 = sphi %s2475_s9, %s12_s9  }
   0x2   : > { %p114_p1 = scmp.lt.s32.totalorder %s2458_s9, 4 }
   0x4   : > { %p115_p2 = pnand %p2185_p0, %p114_p1 }
   0x5   : > { %s137_s17 = smul.u32 (!%p115_p2), 56, %s2181_s10 }
   0x6   : > { %118 = sbr.rel (%p115_p2) target bundleno = 542 (0x21e), region = 28 }
   0x7   : > { %p138_p3 = scmp.lt.s32.totalorder (!%p115_p2), %s137_s17, 167  ;;  %s144_s30 = smul.u32 (!%p115_p2), 7, %s2181_s10 }
   0x9   : > { %p145_p4 = scmp.lt.s32.totalorder (!%p115_p2), %s144_s30, 20 }
   0xb   : > { %v2211_v0 = vld [vmem:[%s3827_s1 + $0x158] sm:$0xff]  ;;  %v2210_v1 = vld [vmem:[%s3827_s1 + $0x150] sm:$0xff]  ;;  %v2209_v5 = vld [vmem:[%s3827_s1 + $0x148] sm:$0xff]  ;;  %s3830_s17 = smov (!%p138_p3, %s137_s17), 167  ;;  %vm268_vm0 = vcmask 785408   ;;  %vm1131_vm1 = vcmask 1041409  }
   0xc   : > { %v1006_v2 = vld [vmem:[%s3827_s1 + $0x78] sm:$0xff]  ;;  %1362 = vmatpush.msra.mxu2 %v2211_v0  ;;  %v1005_v4 = vld [vmem:[%s3827_s1 + $0x70] sm:$0xff]  ;;  %v1004_v7 = vld [vmem:[%s3827_s1 + $0x68] sm:$0xff]  ;;  %s2443_s7 = sshll.u32 %s3830_s17, 4  ;;  %vm1133_vm2 = vcmask 1042434   ;;  %vm1135_vm3 = vcmask 1043459  }
   0xd   : > { %1257 = vmatpush.msra.mxu0 %v1006_v2  ;;  %v2223_v3 = vld [vmem:[%s3827_s1 + $0x1b8] sm:$0xff]  ;;  %v2222_v6 = vld [vmem:[%s3827_s1 + $0x1b0] sm:$0xff]  ;;  %v2221_v8 = vld [vmem:[%s3827_s1 + $0x1a8] sm:$0xff]  ;;  %s2585_s26 = scalar_lea.vmem %s3826_s0, %s2443_s7  ;;  %vm1137_vm4 = vcmask 1044484   ;;  %vm1139_vm5 = vcmask 1045509   ;;  %vm1141_vm6 = vcmask 1046534  }
   0xe   : > { %1404 = vmatpush.msra.mxu3 %v2223_v3  ;;  %1363 = vmatpush.msra.mxu2 %v2210_v1  ;;  %v2208_v9 = vld [vmem:[%s3827_s1 + $0x140] sm:$0xff]  ;;  %v1018_v11 = vld [vmem:[%s3827_s1 + $0xd8] sm:$0xff]  ;;  %v1017_v13 = vld [vmem:[%s3827_s1 + $0xd0] sm:$0xff]  ;;  %vm1143_vm7 = vcmask 1047559   ;;  %s3832_s30 = smov (!%p145_p4, %s144_s30), 20  ;;  %vm2117_vm8 = vcmask 228352  }
   0xf   : > { %1258 = vmatpush.msra.mxu0 %v1005_v4  ;;  %v1003_v10 = vld [vmem:[%s3827_s1 + $0x60] sm:$0xff]  ;;  %v2207_v14 = vld [vmem:[%s3827_s1 + $0x138] sm:$0xff]  ;;  %1299 = vmatpush.msra.mxu1 %v1018_v11  ;;  %v1016_v17 = vld [vmem:[%s3827_s1 + $0xc8] sm:$0xff]  ;;  %s2188_s3 = sshll.u32 %s3832_s30, 3 }
  0x10   : > { %1405 = vmatpush.msra.mxu3 %v2222_v6  ;;  %1364 = vmatpush.msra.mxu2 %v2209_v5  ;;  %v2220_v12 = vld [vmem:[%s3827_s1 + $0x1a0] sm:$0xff]  ;;  %v1002_v15 = vld [vmem:[%s3827_s1 + $0x58] sm:$0xff]  ;;  %v2206_v18 = vld [vmem:[%s3827_s1 + $0x130] sm:$0xff]  ;;  %s3780_s4 = scalar_lea.vmem %s3828_s2, %s2188_s3 }
  0x11   : > { %1259 = vmatpush.msra.mxu0 %v1004_v7  ;;  %v2219_v16 = vld [vmem:[%s3827_s1 + $0x198] sm:$0xff]  ;;  %1300 = vmatpush.msra.mxu1 %v1017_v13  ;;  %v1001_v19 = vld [vmem:[%s3827_s1 + $0x50] sm:$0xff]  ;;  %v1015_v21 = vld [vmem:[%s3827_s1 + $0xc0] sm:$0xff] }
  0x12   : > { %1406 = vmatpush.msra.mxu3 %v2221_v8  ;;  %1365 = vmatpush.msra.mxu2 %v2208_v9  ;;  %v2218_v20 = vld [vmem:[%s3827_s1 + $0x190] sm:$0xff]  ;;  %v2205_v22 = vld [vmem:[%s3827_s1 + $0x128] sm:$0xff]  ;;  %v1014_v25 = vld [vmem:[%s3827_s1 + $0xb8] sm:$0xff] }
  0x13   : > { %1260 = vmatpush.msra.mxu0 %v1003_v10  ;;  %1301 = vmatpush.msra.mxu1 %v1016_v17  ;;  %v1000_v23 = vld [vmem:[%s3827_s1 + $0x48] sm:$0xff]  ;;  %v2204_v26 = vld [vmem:[%s3827_s1 + $0x120] sm:$0xff]  ;;  %v2203_v28 = vld [vmem:[%s3827_s1 + $0x118] sm:$0xff] }
  0x14   : > { %1407 = vmatpush.msra.mxu3 %v2220_v12  ;;  %1366 = vmatpush.msra.mxu2 %v2207_v14  ;;  %v2217_v24 = vld [vmem:[%s3827_s1 + $0x188] sm:$0xff]  ;;  %v999_v27 = vld [vmem:[%s3827_s1 + $0x40] sm:$0xff]  ;;  %v1013_v30 = vld [vmem:[%s3827_s1 + $0xb0] sm:$0xff] }
  0x15   : > { %1261 = vmatpush.msra.mxu0 %v1002_v15  ;;  %1302 = vmatpush.msra.mxu1 %v1015_v21  ;;  %v2216_v29 = vld [vmem:[%s3827_s1 + $0x180] sm:$0xff]  ;;  %v2202_v31 = vld [vmem:[%s3827_s1 + $0x110] sm:$0xff]  ;;  %v998_v32 = vld [vmem:[%s3827_s1 + $0x38] sm:$0xff] }
  0x16   : > { %1408 = vmatpush.msra.mxu3 %v2219_v16  ;;  %1367 = vmatpush.msra.mxu2 %v2206_v18  ;;  %v2215_v33 = vld [vmem:[%s3827_s1 + $0x178] sm:$0xff]  ;;  %v997_v34 = vld [vmem:[%s3827_s1 + $0x30] sm:$0xff]  ;;  %v1012_v35 = vld [vmem:[%s3827_s1 + $0xa8] sm:$0xff] }
  0x17   : > { %1262 = vmatpush.msra.mxu0 %v1001_v19  ;;  %1303 = vmatpush.msra.mxu1 %v1014_v25  ;;  %v2214_v36 = vld [vmem:[%s3827_s1 + $0x170] sm:$0xff]  ;;  %v2201_v37 = vld [vmem:[%s3827_s1 + $0x108] sm:$0xff]  ;;  %v1011_v39 = vld [vmem:[%s3827_s1 + $0xa0] sm:$0xff] }
  0x18   : > { %1409 = vmatpush.msra.mxu3 %v2218_v20  ;;  %1368 = vmatpush.msra.mxu2 %v2205_v22  ;;  %v996_v38 = vld [vmem:[%s3827_s1 + $0x28] sm:$0xff]  ;;  %v153_v41 = vld [vmem:[%s2585_s26 + $0x18] sm:$0xff]  ;;  %v2200_v59 = vld [vmem:[%s3827_s1 + $0x100] sm:$0xff] }
  0x19   : > { %1263 = vmatpush.msra.mxu0 %v1000_v23  ;;  %1304 = vmatpush.msra.mxu1 %v1013_v30  ;;  %v151_v40 = vld [vmem:[%s2585_s26 + $0x8] sm:$0xff]  ;;  %v157_v43 = vld [vmem:[%s2585_s26 + $0x38] sm:$0xff]  ;;  %v282_v46 = vsel %vm268_vm0, %v153_v41, -inf  ;;  %v995_v60 = vld [vmem:[%s3827_s1 + $0x20] sm:$0xff] }
  0x1a   : > { %1410 = vmatpush.msra.mxu3 %v2217_v24  ;;  %1369 = vmatpush.msra.mxu2 %v2204_v26  ;;  %v155_v42 = vld [vmem:[%s2585_s26 + $0x28] sm:$0xff]  ;;  %v269_v45 = vsel %vm268_vm0, %v151_v40, -inf  ;;  %v161_v47 = vld [vmem:[%s2585_s26 + $0x58] sm:$0xff]  ;;  %v283_v51 = vrot.slane %v282_v46, 4  ;;  %v308_v56 = vsel %vm268_vm0, %v157_v43, -inf  ;;  %v2212_v1 = vld [vmem:[%s3827_s1 + $0x160] sm:$0xff] }
  0x1b   : > { %1264 = vmatpush.msra.mxu0 %v999_v27  ;;  %v159_v44 = vld [vmem:[%s2585_s26 + $0x48] sm:$0xff]  ;;  %1305 = vmatpush.msra.mxu1 %v1012_v35  ;;  %v165_v49 = vld [vmem:[%s2585_s26 + $0x78] sm:$0xff]  ;;  %v270_v50 = vrot.slane %v269_v45, 4  ;;  %v295_v52 = vsel %vm268_vm0, %v155_v42, -inf  ;;  %v334_v58 = vsel %vm268_vm0, %v161_v47, -inf  ;;  %v309_v63 = vrot.slane %v308_v56, 4 }
  0x1c   : > { %1411 = vmatpush.msra.mxu3 %v2216_v29  ;;  %1370 = vmatpush.msra.mxu2 %v2203_v28  ;;  %v163_v48 = vld [vmem:[%s2585_s26 + $0x68] sm:$0xff]  ;;  %v1010_v54 = vld [vmem:[%s3827_s1 + $0x98] sm:$0xff]  ;;  %v296_v55 = vrot.slane %v295_v52, 4  ;;  %v321_v57 = vsel %vm268_vm0, %v159_v44, -inf  ;;  %v284_v62 = vmax.f32 %v282_v46, %v283_v51  ;;  %v335_v3 = vrot.slane %v334_v58, 4  ;;  %v1009_v6 = vld [vmem:[%s3827_s1 + $0x90] sm:$0xff] }
  0x1d   : > { %1265 = vmatpush.msra.mxu0 %v998_v32  ;;  %v2213_v53 = vld [vmem:[%s3827_s1 + $0x168] sm:$0xff]  ;;  %1306 = vmatpush.msra.mxu1 %v1011_v39  ;;  %v271_v61 = vmax.f32 %v269_v45, %v270_v50  ;;  %v322_v0 = vrot.slane %v321_v57, 4  ;;  %v347_v4 = vsel %vm268_vm0, %v163_v48, -inf  ;;  %v360_v5 = vsel %vm268_vm0, %v165_v49, -inf  ;;  %v2199_v7 = vld [vmem:[%s3827_s1 + $0xf8] sm:$0xff]  ;;  %v2198_v19 = vld [vmem:[%s3827_s1 + $0xf0] sm:$0xff] }
  0x1e   : > { %1412 = vmatpush.msra.mxu3 %v2215_v33  ;;  %1371 = vmatpush.msra.mxu2 %v2202_v31  ;;  %v297_v2 = vmax.f32 %v295_v52, %v296_v55  ;;  %v994_v8 = vld [vmem:[%s3827_s1 + $0x18] sm:$0xff]  ;;  %v285_v10 = vrot.slane %v284_v62, 2  ;;  %v310_v11 = vmax.f32 %v308_v56, %v309_v63  ;;  %v336_v14 = vmax.f32 %v334_v58, %v335_v3  ;;  %v1008_v18 = vld [vmem:[%s3827_s1 + $0x88] sm:$0xff]  ;;  %v993_v24 = vld [vmem:[%s3827_s1 + $0x10] sm:$0xff] }
  0x1f   : > { %1266 = vmatpush.msra.mxu0 %v997_v34  ;;  %1307 = vmatpush.msra.mxu1 %v1010_v54  ;;  %v272_v9 = vrot.slane %v271_v61, 2  ;;  %v323_v12 = vmax.f32 %v321_v57, %v322_v0  ;;  %v348_v15 = vrot.slane %v347_v4, 4  ;;  %v361_v16 = vrot.slane %v360_v5, 4  ;;  %v2258_v17 = vld [vmem:[%s3827_s1 + $0x298] sm:$0xff]  ;;  %v1007_v29 = vld [vmem:[%s3827_s1 + $0x80] sm:$0xff]  ;;  %v2257_v30 = vld [vmem:[%s3827_s1 + $0x290] sm:$0xff] }
  0x20   : > { %1413 = vmatpush.msra.mxu3 %v2214_v36  ;;  %1372 = vmatpush.msra.mxu2 %v2201_v37  ;;  %v298_v13 = vrot.slane %v297_v2, 2  ;;  %v286_v21 = vmax.f32 %v284_v62, %v285_v10  ;;  %v311_v22 = vrot.slane %v310_v11, 2  ;;  %v337_v26 = vrot.slane %v336_v14, 2  ;;  %v2197_v31 = vld [vmem:[%s3827_s1 + $0xe8] sm:$0xff]  ;;  %v150_v41 = vld [vmem:[%s2585_s26] sm:$0xff]  ;;  %v2246_v42 = vld [vmem:[%s3827_s1 + $0x238] sm:$0xff] }
  0x21   : > { %1267 = vmatpush.msra.mxu0 %v996_v38  ;;  %v273_v20 = vmax.f32 %v271_v61, %v272_v9  ;;  %v324_v23 = vrot.slane %v323_v12, 2  ;;  %1308 = vmatpush.msra.mxu1 %v1009_v6  ;;  %v349_v27 = vmax.f32 %v347_v4, %v348_v15  ;;  %v362_v28 = vmax.f32 %v360_v5, %v361_v16  ;;  %v992_v36 = vld [vmem:[%s3827_s1 + $0x8] sm:$0xff]  ;;  %v2196_v47 = vld [vmem:[%s3827_s1 + $0xe0] sm:$0xff]  ;;  %v2293_v55 = vld [vmem:[%s3827_s1 + $0x378] sm:$0xff] }
  0x22   : > { %1414 = vmatpush.msra.mxu3 %v2213_v53  ;;  %1373 = vmatpush.msra.mxu2 %v2200_v59  ;;  %v299_v25 = vmax.f32 %v297_v2, %v298_v13  ;;  %v287_v33 = vrot.slane %v286_v21, 1  ;;  %v312_v34 = vmax.f32 %v310_v11, %v311_v22  ;;  %v338_v38 = vmax.f32 %v336_v14, %v337_v26  ;;  %v991_v48 = vld [vmem:[%s3827_s1] sm:$0xff]  ;;  %v152_v53 = vld [vmem:[%s2585_s26 + $0x10] sm:$0xff]  ;;  %v2281_v26 = vld [vmem:[%s3827_s1 + $0x318] sm:$0xff] }
  0x23   : > { %1268 = vmatpush.msra.mxu0 %v995_v60  ;;  %v274_v32 = vrot.slane %v273_v20, 1  ;;  %v325_v35 = vmax.f32 %v323_v12, %v324_v23  ;;  %1309 = vmatpush.msra.mxu1 %v1008_v18  ;;  %v350_v39 = vrot.slane %v349_v27, 2  ;;  %v363_v40 = vrot.slane %v362_v28, 2  ;;  %v154_v54 = vld [vmem:[%s2585_s26 + $0x20] sm:$0xff]  ;;  %v156_v59 = vld [vmem:[%s2585_s26 + $0x30] sm:$0xff] }
  0x24   : > { %1415 = vmatpush.msra.mxu3 %v2212_v1  ;;  %1374 = vmatpush.msra.mxu2 %v2199_v7  ;;  %v300_v37 = vrot.slane %v299_v25, 1  ;;  %v288_v44 = vmax.f32 %v286_v21, %v287_v33  ;;  %v313_v45 = vrot.slane %v312_v34, 1  ;;  %v339_v50 = vrot.slane %v338_v38, 1  ;;  %v158_v2 = vld [vmem:[%s2585_s26 + $0x40] sm:$0xff]  ;;  %v160_v3 = vld [vmem:[%s2585_s26 + $0x50] sm:$0xff] }
  0x25   : > { %1269 = vmatpush.msra.mxu0 %v994_v8  ;;  %v275_v43 = vmax.f32 %v273_v20, %v274_v32  ;;  %v326_v46 = vrot.slane %v325_v35, 1  ;;  %1310 = vmatpush.msra.mxu1 %v1007_v29  ;;  %v351_v51 = vmax.f32 %v349_v27, %v350_v39  ;;  %v364_v52 = vmax.f32 %v362_v28, %v363_v40  ;;  %v162_v12 = vld [vmem:[%s2585_s26 + $0x60] sm:$0xff]  ;;  %v167_v39 = vld [vmem:[%s2585_s26 + $0x88] sm:$0xff] }
  0x26   : > { %1516 = vmatpush.msrb.mxu3 %v2258_v17  ;;  %1375 = vmatpush.msra.mxu2 %v2198_v19  ;;  %v301_v49 = vmax.f32 %v299_v25, %v300_v37  ;;  %v314_v56 = vmax.f32 %v312_v34, %v313_v45  ;;  %v262_v60 = vrot.slane %v150_v41, 4  ;;  %v340_v61 = vmax.f32 %v338_v38, %v339_v50  ;;  %v164_v17 = vld [vmem:[%s2585_s26 + $0x70] sm:$0xff] }
  0x27   : > { %1270 = vmatpush.msra.mxu0 %v993_v24  ;;  %v327_v57 = vmax.f32 %v325_v35, %v326_v46  ;;  %v1145_v58 = vsel %vm1131_vm1, %v288_v44, %v275_v43  ;;  %1474 = vmatpush.msrb.mxu1 %v2246_v42  ;;  %v352_v62 = vrot.slane %v351_v51, 1  ;;  %v365_v63 = vrot.slane %v364_v52, 1  ;;  %v2292_v25 = vld [vmem:[%s3827_s1 + $0x370] sm:$0xff] }
  0x28   : > { %1517 = vmatpush.msrb.mxu3 %v2257_v30  ;;  %1376 = vmatpush.msra.mxu2 %v2197_v31  ;;  %v1146_v0 = vsel %vm1133_vm2, %v301_v49, %v1145_v58  ;;  %v263_v4 = vmax.f32 %v150_v41, %v262_v60  ;;  %v276_v5 = vrot.slane %v152_v53, 4  ;;  %v289_v6 = vrot.slane %v154_v54, 4  ;;  %v173_v60 = vld [vmem:[%s2585_s26 + $0xb8] sm:$0xff] }
  0x29   : > { %1271 = vmatpush.msra.mxu0 %v992_v36  ;;  %v1147_v1 = vsel %vm1135_vm3, %v314_v56, %v1146_v0  ;;  %v353_v7 = vmax.f32 %v351_v51, %v352_v62  ;;  %v366_v8 = vmax.f32 %v364_v52, %v365_v63  ;;  %v302_v10 = vrot.slane %v156_v59, 4 }
  0x2a   : > { %1377 = vmatpush.msra.mxu2 %v2196_v47  ;;  %v1148_v9 = vsel %vm1137_vm4, %v327_v57, %v1147_v1  ;;  %v264_v13 = vrot.slane %v263_v4, 2  ;;  %v277_v14 = vmax.f32 %v152_v53, %v276_v5  ;;  %v290_v15 = vmax.f32 %v154_v54, %v289_v6  ;;  %v175_v5 = vld [vmem:[%s2585_s26 + $0xc8] sm:$0xff] }
  0x2b   : > { %1272 = vmatpush.msra.mxu0 %v991_v48  ;;  %v1149_v11 = vsel %vm1139_vm5, %v340_v61, %v1148_v9  ;;  %v303_v18 = vmax.f32 %v156_v59, %v302_v10  ;;  %v315_v19 = vrot.slane %v158_v2, 4  ;;  %v328_v20 = vrot.slane %v160_v3, 4  ;;  %v169_v48 = vld [vmem:[%s2585_s26 + $0x98] sm:$0xff]  ;;  %v171_v59 = vld [vmem:[%s2585_s26 + $0xa8] sm:$0xff] }
  0x2c   : > { %1628 = vmatpush.msrb.mxu2 %v2293_v55  ;;  %v1150_v16 = vsel %vm1141_vm6, %v353_v7, %v1149_v11  ;;  %v265_v22 = vmax.f32 %v263_v4, %v264_v13  ;;  %v278_v23 = vrot.slane %v277_v14, 2  ;;  %v291_v24 = vrot.slane %v290_v15, 2 }
  0x2d   : > { %v2705_v21 = vsel %vm1143_vm7, %v366_v8, %v1150_v16  ;;  %v304_v27 = vrot.slane %v303_v18, 2  ;;  %v316_v28 = vmax.f32 %v158_v2, %v315_v19  ;;  %v329_v29 = vmax.f32 %v160_v3, %v328_v20  ;;  %1586 = vmatpush.msrb.mxu0 %v2281_v26  ;;  %v181_v16 = vld [vmem:[%s2585_s26 + $0xf8] sm:$0xff]  ;;  %v2280_v26 = vld [vmem:[%s3827_s1 + $0x310] sm:$0xff] }
  0x2e   : > { %2224 = vmatmul.msk.f32.vlgmr.msra.gmra.mxu3 %vm268_vm0, %v2705_v21  ;;  %v341_v30 = vrot.slane %v162_v12, 4  ;;  %2189 = vmatmul.msk.f32.vlgmr.msra.gmra.mxu1 %vm268_vm0, %v2705_v21  ;;  %v266_v31 = vrot.slane %v265_v22, 1  ;;  %v279_v32 = vmax.f32 %v277_v14, %v278_v23  ;;  %v292_v33 = vmax.f32 %v290_v15, %v291_v24  ;;  %v177_v14 = vld [vmem:[%s2585_s26 + $0xd8] sm:$0xff]  ;;  %v179_v15 = vld [vmem:[%s2585_s26 + $0xe8] sm:$0xff]  ;;  %v2245_v24 = vld [vmem:[%s3827_s1 + $0x230] sm:$0xff] }
  0x2f   : > { %v354_v34 = vrot.slane %v164_v17, 4  ;;  %1629 = vmatpush.msrb.mxu2 %v2292_v25  ;;  %v305_v35 = vmax.f32 %v303_v18, %v304_v27  ;;  %v317_v36 = vrot.slane %v316_v28, 2  ;;  %v330_v37 = vrot.slane %v329_v29, 2  ;;  %v2256_v25 = vld [vmem:[%s3827_s1 + $0x288] sm:$0xff]  ;;  %1475 = vmatpush.msrb.mxu1 %v2245_v24 }
  0x30   : > { %v342_v38 = vmax.f32 %v162_v12, %v341_v30  ;;  %v267_v40 = vmax.f32 %v265_v22, %v266_v31  ;;  %v280_v41 = vrot.slane %v279_v32, 1  ;;  %v293_v42 = vrot.slane %v292_v33, 1  ;;  %1518 = vmatpush.msrb.mxu3 %v2256_v25  ;;  %v2291_v31 = vld [vmem:[%s3827_s1 + $0x368] sm:$0xff]  ;;  %1587 = vmatpush.msrb.mxu0 %v2280_v26 }
  0x31   : > { %v355_v43 = vmax.f32 %v164_v17, %v354_v34  ;;  %v306_v44 = vrot.slane %v305_v35, 1  ;;  %v318_v45 = vmax.f32 %v316_v28, %v317_v36  ;;  %v331_v46 = vmax.f32 %v329_v29, %v330_v37  ;;  %1630 = vmatpush.msrb.mxu2 %v2291_v31  ;;  %v178_v31 = vld [vmem:[%s2585_s26 + $0xe0] sm:$0xff] }
  0x32   : > { %v343_v47 = vrot.slane %v342_v38, 2  ;;  %v281_v49 = vmax.f32 %v279_v32, %v280_v41  ;;  %v294_v50 = vmax.f32 %v292_v33, %v293_v42  ;;  %v373_v52 = vsel %vm268_vm0, %v167_v39, -inf  ;;  %v2244_v32 = vld [vmem:[%s3827_s1 + $0x228] sm:$0xff]  ;;  %v2255_v33 = vld [vmem:[%s3827_s1 + $0x280] sm:$0xff] }
  0x33   : > { %v356_v51 = vrot.slane %v355_v43, 2  ;;  %v307_v53 = vmax.f32 %v305_v35, %v306_v44  ;;  %v319_v54 = vrot.slane %v318_v45, 1  ;;  %v332_v55 = vrot.slane %v331_v46, 1  ;;  %1476 = vmatpush.msrb.mxu1 %v2244_v32  ;;  %1519 = vmatpush.msrb.mxu3 %v2255_v33  ;;  %v180_v32 = vld [vmem:[%s2585_s26 + $0xf0] sm:$0xff] }
  0x34   : > { %v344_v56 = vmax.f32 %v342_v38, %v343_v47  ;;  %v1132_v58 = vsel %vm1131_vm1, %v281_v49, %v267_v40  ;;  %v374_v61 = vrot.slane %v373_v52, 4  ;;  %v386_v62 = vsel %vm268_vm0, %v169_v48, -inf }
  0x35   : > { %v357_v57 = vmax.f32 %v355_v43, %v356_v51  ;;  %v320_v63 = vmax.f32 %v318_v45, %v319_v54  ;;  %v333_v0 = vmax.f32 %v331_v46, %v332_v55  ;;  %v1134_v2 = vsel %vm1133_vm2, %v294_v50, %v1132_v58  ;;  %v166_v46 = vld [vmem:[%s2585_s26 + $0x80] sm:$0xff] }
  0x36   : > { %v345_v1 = vrot.slane %v344_v56, 1  ;;  %v1136_v4 = vsel %vm1135_vm3, %v307_v53, %v1134_v2  ;;  %v375_v6 = vmax.f32 %v373_v52, %v374_v61  ;;  %v387_v7 = vrot.slane %v386_v62, 4 }
  0x37   : > { %v358_v3 = vrot.slane %v357_v57, 1  ;;  %v1138_v9 = vsel %vm1137_vm4, %v320_v63, %v1136_v4  ;;  %v399_v10 = vsel %vm268_vm0, %v171_v59, -inf  ;;  %v412_v11 = vsel %vm268_vm0, %v173_v60, -inf  ;;  %v168_v63 = vld [vmem:[%s2585_s26 + $0x90] sm:$0xff] }
  0x38   : > { %v346_v8 = vmax.f32 %v344_v56, %v345_v1  ;;  %v1140_v13 = vsel %vm1139_vm5, %v333_v0, %v1138_v9  ;;  %v376_v17 = vrot.slane %v375_v6, 2  ;;  %v388_v18 = vmax.f32 %v386_v62, %v387_v7 }
  0x39   : > { %v359_v12 = vmax.f32 %v357_v57, %v358_v3  ;;  %v400_v20 = vrot.slane %v399_v10, 4  ;;  %v413_v22 = vrot.slane %v412_v11, 4  ;;  %v425_v23 = vsel %vm268_vm0, %v175_v5, -inf  ;;  %v170_v3 = vld [vmem:[%s2585_s26 + $0xa0] sm:$0xff] }
  0x3a   : > { %v1142_v19 = vsel %vm1141_vm6, %v346_v8, %v1140_v13  ;;  %v377_v28 = vmax.f32 %v375_v6, %v376_v17  ;;  %v389_v29 = vrot.slane %v388_v18, 2  ;;  %v426_v30 = vrot.slane %v425_v23, 4 }
  0x3b   : > { %v2746_v27 = vsel %vm1143_vm7, %v359_v12, %v1142_v19  ;;  %v401_v34 = vmax.f32 %v399_v10, %v400_v20  ;;  %v414_v35 = vmax.f32 %v412_v11, %v413_v22  ;;  %v438_v36 = vsel %vm268_vm0, %v177_v14, -inf  ;;  %v174_v20 = vld [vmem:[%s2585_s26 + $0xc0] sm:$0xff] }
  0x3c   : > { %1378 = vmatmul.f32.vlgmr.msra.gmra.mxu2 %v2746_v27  ;;  %1273 = vmatmul.f32.vlgmr.msra.gmra.mxu0 %v2746_v27  ;;  %v451_v37 = vsel %vm268_vm0, %v179_v15, -inf  ;;  %v378_v38 = vrot.slane %v377_v28, 1  ;;  %v390_v39 = vmax.f32 %v388_v18, %v389_v29  ;;  %v427_v40 = vmax.f32 %v425_v23, %v426_v30 }
  0x3d   : > { %v439_v41 = vrot.slane %v438_v36, 4  ;;  %v402_v42 = vrot.slane %v401_v34, 2  ;;  %v415_v43 = vrot.slane %v414_v35, 2  ;;  %v452_v44 = vrot.slane %v451_v37, 4 }
  0x3e   : > { %v464_v45 = vsel %vm268_vm0, %v181_v16, -inf  ;;  %v379_v47 = vmax.f32 %v377_v28, %v378_v38  ;;  %v391_v48 = vrot.slane %v390_v39, 1  ;;  %v428_v49 = vrot.slane %v427_v40, 2  ;;  %v172_v16 = vld [vmem:[%s2585_s26 + $0xb0] sm:$0xff] }
  0x3f   : > { %v440_v50 = vmax.f32 %v438_v36, %v439_v41  ;;  %v403_v51 = vmax.f32 %v401_v34, %v402_v42  ;;  %v416_v52 = vmax.f32 %v414_v35, %v415_v43  ;;  %v453_v53 = vmax.f32 %v451_v37, %v452_v44  ;;  %v176_v28 = vld [vmem:[%s2585_s26 + $0xd0] sm:$0xff]  ;;  %v2290_v41 = vld [vmem:[%s3827_s1 + $0x360] sm:$0xff] }
  0x40   : > { %v465_v54 = vrot.slane %v464_v45, 4  ;;  %v392_v55 = vmax.f32 %v390_v39, %v391_v48  ;;  %v429_v56 = vmax.f32 %v427_v40, %v428_v49  ;;  %v367_v58 = vrot.slane %v166_v46, 4  ;;  %v2279_v40 = vld [vmem:[%s3827_s1 + $0x308] sm:$0xff]  ;;  %v2243_v42 = vld [vmem:[%s3827_s1 + $0x220] sm:$0xff]  ;;  %1631 = vmatpush.msrb.mxu2 %v2290_v41 }
  0x41   : > { %v441_v57 = vrot.slane %v440_v50, 2  ;;  %v404_v59 = vrot.slane %v403_v51, 1  ;;  %v417_v60 = vrot.slane %v416_v52, 1  ;;  %v454_v61 = vrot.slane %v453_v53, 2  ;;  %1588 = vmatpush.msrb.mxu0 %v2279_v40  ;;  %1477 = vmatpush.msrb.mxu1 %v2243_v42 }
  0x42   : > { %v466_v62 = vmax.f32 %v464_v45, %v465_v54  ;;  %v430_v0 = vrot.slane %v429_v56, 1  ;;  %v1159_v2 = vsel %vm1131_vm1, %v392_v55, %v379_v47  ;;  %v368_v4 = vmax.f32 %v166_v46, %v367_v58  ;;  %v183_v47 = vld [vmem:[%s2585_s26 + $0x108] sm:$0xff] }
  0x43   : > { %v442_v1 = vmax.f32 %v440_v50, %v441_v57  ;;  %v405_v5 = vmax.f32 %v403_v51, %v404_v59  ;;  %v418_v6 = vmax.f32 %v416_v52, %v417_v60  ;;  %v455_v7 = vmax.f32 %v453_v53, %v454_v61 }
  0x44   : > { %v467_v8 = vrot.slane %v466_v62, 2  ;;  %v431_v9 = vmax.f32 %v429_v56, %v430_v0  ;;  %v369_v11 = vrot.slane %v368_v4, 2  ;;  %v380_v12 = vrot.slane %v168_v63, 4 }
  0x45   : > { %v443_v10 = vrot.slane %v442_v1, 1  ;;  %v456_v13 = vrot.slane %v455_v7, 1  ;;  %v1160_v15 = vsel %vm1133_vm2, %v405_v5, %v1159_v2  ;;  %v393_v17 = vrot.slane %v170_v3, 4 }
  0x46   : > { %v468_v14 = vmax.f32 %v466_v62, %v467_v8  ;;  %v1161_v19 = vsel %vm1135_vm3, %v418_v6, %v1160_v15  ;;  %v370_v22 = vmax.f32 %v368_v4, %v369_v11  ;;  %v381_v23 = vmax.f32 %v168_v63, %v380_v12  ;;  %v187_v12 = vld [vmem:[%s2585_s26 + $0x128] sm:$0xff] }
  0x47   : > { %v444_v18 = vmax.f32 %v442_v1, %v443_v10  ;;  %v457_v24 = vmax.f32 %v455_v7, %v456_v13  ;;  %v1162_v26 = vsel %vm1137_vm4, %v431_v9, %v1161_v19  ;;  %v394_v29 = vmax.f32 %v170_v3, %v393_v17  ;;  %v185_v3 = vld [vmem:[%s2585_s26 + $0x118] sm:$0xff] }
  0x48   : > { %v469_v25 = vrot.slane %v468_v14, 1  ;;  %v371_v33 = vrot.slane %v370_v22, 1  ;;  %v382_v34 = vrot.slane %v381_v23, 2  ;;  %v406_v35 = vrot.slane %v172_v16, 4 }
  0x49   : > { %v1163_v30 = vsel %vm1139_vm5, %v444_v18, %v1162_v26  ;;  %v395_v38 = vrot.slane %v394_v29, 2  ;;  %v419_v39 = vrot.slane %v174_v20, 4  ;;  %v432_v46 = vrot.slane %v176_v28, 4 }
  0x4a   : > { %v470_v36 = vmax.f32 %v468_v14, %v469_v25  ;;  %v1164_v37 = vsel %vm1141_vm6, %v457_v24, %v1163_v30  ;;  %v372_v43 = vmax.f32 %v370_v22, %v371_v33  ;;  %v383_v44 = vmax.f32 %v381_v23, %v382_v34 }
  0x4b   : > { %v407_v45 = vmax.f32 %v172_v16, %v406_v35  ;;  %v396_v49 = vmax.f32 %v394_v29, %v395_v38  ;;  %v420_v50 = vmax.f32 %v174_v20, %v419_v39  ;;  %v445_v51 = vrot.slane %v178_v31, 4  ;;  %v189_v20 = vld [vmem:[%s2585_s26 + $0x138] sm:$0xff] }
  0x4c   : > { %v2787_v48 = vsel %vm1143_vm7, %v470_v36, %v1164_v37  ;;  %v384_v52 = vrot.slane %v383_v44, 1  ;;  %v433_v54 = vmax.f32 %v176_v28, %v432_v46  ;;  %v458_v55 = vrot.slane %v180_v32, 4  ;;  %v195_v37 = vld [vmem:[%s2585_s26 + $0x168] sm:$0xff]  ;;  %v197_v38 = vld [vmem:[%s2585_s26 + $0x178] sm:$0xff]  ;;  %v2278_v46 = vld [vmem:[%s3827_s1 + $0x300] sm:$0xff] }
  0x4d   : > { %2225 = vmatmul.msk.f32.gmra.mxu3 %vm268_vm0, %v2787_v48  ;;  %v408_v53 = vrot.slane %v407_v45, 2  ;;  %2190 = vmatmul.msk.f32.gmra.mxu1 %vm268_vm0, %v2787_v48  ;;  %v397_v56 = vrot.slane %v396_v49, 1  ;;  %v421_v57 = vrot.slane %v420_v50, 2  ;;  %v446_v58 = vmax.f32 %v178_v31, %v445_v51  ;;  %v191_v31 = vld [vmem:[%s2585_s26 + $0x148] sm:$0xff] }
  0x4e   : > { %v477_v59 = vsel %vm268_vm0, %v183_v47, -inf  ;;  %v385_v60 = vmax.f32 %v383_v44, %v384_v52  ;;  %v434_v62 = vrot.slane %v433_v54, 2  ;;  %v459_v63 = vmax.f32 %v180_v32, %v458_v55  ;;  %v193_v32 = vld [vmem:[%s2585_s26 + $0x158] sm:$0xff]  ;;  %1589 = vmatpush.msrb.mxu0 %v2278_v46 }
  0x4f   : > { %v409_v61 = vmax.f32 %v407_v45, %v408_v53  ;;  %v398_v0 = vmax.f32 %v396_v49, %v397_v56  ;;  %v422_v1 = vmax.f32 %v420_v50, %v421_v57  ;;  %v447_v2 = vrot.slane %v446_v58, 2  ;;  %v2254_v45 = vld [vmem:[%s3827_s1 + $0x278] sm:$0xff] }
  0x50   : > { %v478_v4 = vrot.slane %v477_v59, 4  ;;  %v435_v6 = vmax.f32 %v433_v54, %v434_v62  ;;  %v460_v7 = vrot.slane %v459_v63, 2  ;;  %v1152_v8 = vsel %vm1131_vm1, %v385_v60, %v372_v43  ;;  %v2242_v47 = vld [vmem:[%s3827_s1 + $0x218] sm:$0xff]  ;;  %1520 = vmatpush.msrb.mxu3 %v2254_v45 }
  0x51   : > { %v410_v5 = vrot.slane %v409_v61, 1  ;;  %v423_v9 = vrot.slane %v422_v1, 1  ;;  %v448_v10 = vmax.f32 %v446_v58, %v447_v2  ;;  %v1153_v11 = vsel %vm1133_vm2, %v398_v0, %v1152_v8  ;;  %v2289_v53 = vld [vmem:[%s3827_s1 + $0x358] sm:$0xff]  ;;  %1478 = vmatpush.msrb.mxu1 %v2242_v47 }
  0x52   : > { %v479_v13 = vmax.f32 %v477_v59, %v478_v4  ;;  %v436_v15 = vrot.slane %v435_v6, 1  ;;  %v461_v16 = vmax.f32 %v459_v63, %v460_v7  ;;  %v490_v17 = vsel %vm268_vm0, %v185_v3, -inf  ;;  %v2277_v54 = vld [vmem:[%s3827_s1 + $0x2f8] sm:$0xff]  ;;  %v182_v59 = vld [vmem:[%s2585_s26 + $0x100] sm:$0xff]  ;;  %1632 = vmatpush.msrb.mxu2 %v2289_v53 }
  0x53   : > { %v411_v14 = vmax.f32 %v409_v61, %v410_v5  ;;  %v424_v18 = vmax.f32 %v422_v1, %v423_v9  ;;  %v449_v19 = vrot.slane %v448_v10, 1  ;;  %v491_v23 = vrot.slane %v490_v17, 4  ;;  %1590 = vmatpush.msrb.mxu0 %v2277_v54 }
  0x54   : > { %v480_v22 = vrot.slane %v479_v13, 2  ;;  %v437_v24 = vmax.f32 %v435_v6, %v436_v15  ;;  %v462_v25 = vrot.slane %v461_v16, 1  ;;  %v503_v28 = vsel %vm268_vm0, %v187_v12, -inf  ;;  %v184_v15 = vld [vmem:[%s2585_s26 + $0x110] sm:$0xff] }
  0x55   : > { %v1154_v26 = vsel %vm1135_vm3, %v411_v14, %v1153_v11  ;;  %v450_v29 = vmax.f32 %v448_v10, %v449_v19  ;;  %v492_v34 = vmax.f32 %v490_v17, %v491_v23  ;;  %v504_v39 = vrot.slane %v503_v28, 4 }
  0x56   : > { %v1155_v30 = vsel %vm1137_vm4, %v424_v18, %v1154_v26  ;;  %v481_v33 = vmax.f32 %v479_v13, %v480_v22  ;;  %v463_v35 = vmax.f32 %v461_v16, %v462_v25  ;;  %v516_v40 = vsel %vm268_vm0, %v189_v20, -inf }
  0x57   : > { %v1156_v36 = vsel %vm1139_vm5, %v437_v24, %v1155_v30  ;;  %v493_v43 = vrot.slane %v492_v34, 2  ;;  %v517_v44 = vrot.slane %v516_v40, 4  ;;  %v505_v50 = vmax.f32 %v503_v28, %v504_v39  ;;  %v186_v30 = vld [vmem:[%s2585_s26 + $0x120] sm:$0xff] }
  0x58   : > { %v1157_v41 = vsel %vm1141_vm6, %v450_v29, %v1156_v36  ;;  %v482_v42 = vrot.slane %v481_v33, 1  ;;  %v529_v51 = vsel %vm268_vm0, %v191_v31, -inf  ;;  %v542_v52 = vsel %vm268_vm0, %v193_v32, -inf }
  0x59   : > { %v2820_v49 = vsel %vm1143_vm7, %v463_v35, %v1157_v41  ;;  %v494_v56 = vmax.f32 %v492_v34, %v493_v43  ;;  %v518_v57 = vmax.f32 %v516_v40, %v517_v44  ;;  %v530_v58 = vrot.slane %v529_v51, 4  ;;  %v188_v35 = vld [vmem:[%s2585_s26 + $0x130] sm:$0xff]  ;;  %v190_v43 = vld [vmem:[%s2585_s26 + $0x140] sm:$0xff] }
  0x5a   : > { %1381 = vmatmul.f32.gmra.mxu2 %v2820_v49  ;;  %1276 = vmatmul.f32.gmra.mxu0 %v2820_v49  ;;  %v483_v55 = vmax.f32 %v481_v33, %v482_v42  ;;  %v506_v60 = vrot.slane %v505_v50, 2  ;;  %v543_v61 = vrot.slane %v542_v52, 4  ;;  %v555_v62 = vsel %vm268_vm0, %v195_v37, -inf }
  0x5b   : > { %v568_v63 = vsel %vm268_vm0, %v197_v38, -inf  ;;  %v495_v0 = vrot.slane %v494_v56, 1  ;;  %v519_v1 = vrot.slane %v518_v57, 2  ;;  %v531_v2 = vmax.f32 %v529_v51, %v530_v58  ;;  %v194_v51 = vld [vmem:[%s2585_s26 + $0x160] sm:$0xff] }
  0x5c   : > { %v556_v3 = vrot.slane %v555_v62, 4  ;;  %v507_v4 = vmax.f32 %v505_v50, %v506_v60  ;;  %v544_v5 = vmax.f32 %v542_v52, %v543_v61  ;;  %v569_v6 = vrot.slane %v568_v63, 4  ;;  %v192_v50 = vld [vmem:[%s2585_s26 + $0x150] sm:$0xff] }
  0x5d   : > { %v471_v7 = vrot.slane %v182_v59, 4  ;;  %v496_v8 = vmax.f32 %v494_v56, %v495_v0  ;;  %v520_v9 = vmax.f32 %v518_v57, %v519_v1  ;;  %v532_v10 = vrot.slane %v531_v2, 2  ;;  %v196_v56 = vld [vmem:[%s2585_s26 + $0x170] sm:$0xff] }
  0x5e   : > { %v557_v11 = vmax.f32 %v555_v62, %v556_v3  ;;  %v508_v12 = vrot.slane %v507_v4, 1  ;;  %v545_v13 = vrot.slane %v544_v5, 2  ;;  %v570_v14 = vmax.f32 %v568_v63, %v569_v6  ;;  %v199_v63 = vld [vmem:[%s2585_s26 + $0x188] sm:$0xff] }
  0x5f   : > { %v472_v16 = vmax.f32 %v182_v59, %v471_v7  ;;  %v521_v17 = vrot.slane %v520_v9, 1  ;;  %v533_v18 = vmax.f32 %v531_v2, %v532_v10  ;;  %v1173_v20 = vsel %vm1131_vm1, %v496_v8, %v483_v55 }
  0x60   : > { %v558_v19 = vrot.slane %v557_v11, 2  ;;  %v509_v22 = vmax.f32 %v507_v4, %v508_v12  ;;  %v546_v23 = vmax.f32 %v544_v5, %v545_v13  ;;  %v571_v24 = vrot.slane %v570_v14, 2  ;;  %v2241_v4 = vld [vmem:[%s3827_s1 + $0x210] sm:$0xff] }
  0x61   : > { %v473_v25 = vrot.slane %v472_v16, 2  ;;  %v522_v26 = vmax.f32 %v520_v9, %v521_v17  ;;  %v534_v28 = vrot.slane %v533_v18, 1  ;;  %v484_v31 = vrot.slane %v184_v15, 4  ;;  %v2253_v5 = vld [vmem:[%s3827_s1 + $0x270] sm:$0xff]  ;;  %1479 = vmatpush.msrb.mxu1 %v2241_v4 }
  0x62   : > { %v559_v29 = vmax.f32 %v557_v11, %v558_v19  ;;  %v547_v32 = vrot.slane %v546_v23, 1  ;;  %v572_v33 = vmax.f32 %v570_v14, %v571_v24  ;;  %v1174_v34 = vsel %vm1133_vm2, %v509_v22, %v1173_v20  ;;  %1521 = vmatpush.msrb.mxu3 %v2253_v5  ;;  %v201_v22 = vld [vmem:[%s2585_s26 + $0x198] sm:$0xff]  ;;  %v2288_v4 = vld [vmem:[%s3827_s1 + $0x350] sm:$0xff]  ;;  %v2240_v5 = vld [vmem:[%s3827_s1 + $0x208] sm:$0xff] }
  0x63   : > { %v474_v36 = vmax.f32 %v472_v16, %v473_v25  ;;  %v535_v37 = vmax.f32 %v533_v18, %v534_v28  ;;  %v1175_v39 = vsel %vm1135_vm3, %v522_v26, %v1174_v34  ;;  %v485_v40 = vmax.f32 %v184_v15, %v484_v31  ;;  %1633 = vmatpush.msrb.mxu2 %v2288_v4  ;;  %v208_v4 = vld [vmem:[%s2585_s26 + $0x1d0] sm:$0xff] }
  0x64   : > { %v560_v38 = vrot.slane %v559_v29, 1  ;;  %v548_v41 = vmax.f32 %v546_v23, %v547_v32  ;;  %v573_v42 = vrot.slane %v572_v33, 1  ;;  %v497_v45 = vrot.slane %v186_v30, 4  ;;  %1480 = vmatpush.msrb.mxu1 %v2240_v5 }
  0x65   : > { %v475_v44 = vrot.slane %v474_v36, 1  ;;  %v1176_v47 = vsel %vm1137_vm4, %v535_v37, %v1175_v39  ;;  %v486_v52 = vrot.slane %v485_v40, 2  ;;  %v510_v53 = vrot.slane %v188_v35, 4 }
  0x66   : > { %v561_v46 = vmax.f32 %v559_v29, %v560_v38  ;;  %v574_v54 = vmax.f32 %v572_v33, %v573_v42  ;;  %v1177_v55 = vsel %vm1139_vm5, %v548_v41, %v1176_v47  ;;  %v498_v58 = vmax.f32 %v186_v30, %v497_v45  ;;  %v205_v45 = vld [vmem:[%s2585_s26 + $0x1b8] sm:$0xff] }
  0x67   : > { %v476_v57 = vmax.f32 %v474_v36, %v475_v44  ;;  %v487_v60 = vmax.f32 %v485_v40, %v486_v52  ;;  %v511_v61 = vmax.f32 %v188_v35, %v510_v53  ;;  %v523_v62 = vrot.slane %v190_v43, 4  ;;  %v203_v36 = vld [vmem:[%s2585_s26 + $0x1a8] sm:$0xff]  ;;  %v209_v52 = vld [vmem:[%s2585_s26 + $0x1d8] sm:$0xff] }
  0x68   : > { %v1178_v59 = vsel %vm1141_vm6, %v561_v46, %v1177_v55  ;;  %v499_v1 = vrot.slane %v498_v58, 2  ;;  %v536_v2 = vrot.slane %v192_v50, 4  ;;  %v549_v3 = vrot.slane %v194_v51, 4  ;;  %v207_v46 = vld [vmem:[%s2585_s26 + $0x1c8] sm:$0xff] }
  0x69   : > { %v2850_v0 = vsel %vm1143_vm7, %v574_v54, %v1178_v59  ;;  %v488_v6 = vrot.slane %v487_v60, 1  ;;  %v512_v7 = vrot.slane %v511_v61, 2  ;;  %v524_v8 = vmax.f32 %v190_v43, %v523_v62 }
  0x6a   : > { %2226 = vmatmul.msk.f32.gmra.mxu3 %vm268_vm0, %v2850_v0  ;;  %v562_v9 = vrot.slane %v196_v56, 4  ;;  %2191 = vmatmul.msk.f32.gmra.mxu1 %vm268_vm0, %v2850_v0  ;;  %v500_v10 = vmax.f32 %v498_v58, %v499_v1  ;;  %v537_v11 = vmax.f32 %v192_v50, %v536_v2  ;;  %v550_v12 = vmax.f32 %v194_v51, %v549_v3  ;;  %v213_v58 = vld [vmem:[%s2585_s26 + $0x1f8] sm:$0xff]  ;;  %v2276_v3 = vld [vmem:[%s3827_s1 + $0x2f0] sm:$0xff] }
  0x6b   : > { %v581_v13 = vsel %vm268_vm0, %v199_v63, -inf  ;;  %v489_v14 = vmax.f32 %v487_v60, %v488_v6  ;;  %v513_v15 = vmax.f32 %v511_v61, %v512_v7  ;;  %v525_v16 = vrot.slane %v524_v8, 2  ;;  %v198_v61 = vld [vmem:[%s2585_s26 + $0x180] sm:$0xff]  ;;  %1591 = vmatpush.msrb.mxu0 %v2276_v3 }
  0x6c   : > { %v563_v17 = vmax.f32 %v196_v56, %v562_v9  ;;  %v501_v18 = vrot.slane %v500_v10, 1  ;;  %v538_v19 = vrot.slane %v537_v11, 2  ;;  %v551_v20 = vrot.slane %v550_v12, 2  ;;  %v206_v3 = vld [vmem:[%s2585_s26 + $0x1c0] sm:$0xff] }
  0x6d   : > { %v582_v23 = vrot.slane %v581_v13, 4  ;;  %v514_v24 = vrot.slane %v513_v15, 1  ;;  %v526_v25 = vmax.f32 %v524_v8, %v525_v16  ;;  %v1166_v28 = vsel %vm1131_vm1, %v489_v14, %v476_v57  ;;  %v211_v57 = vld [vmem:[%s2585_s26 + $0x1e8] sm:$0xff] }
  0x6e   : > { %v564_v26 = vrot.slane %v563_v17, 2  ;;  %v502_v29 = vmax.f32 %v500_v10, %v501_v18  ;;  %v539_v30 = vmax.f32 %v537_v11, %v538_v19  ;;  %v552_v31 = vmax.f32 %v550_v12, %v551_v20  ;;  %v2252_v10 = vld [vmem:[%s3827_s1 + $0x268] sm:$0xff] }
  0x6f   : > { %v583_v32 = vmax.f32 %v581_v13, %v582_v23  ;;  %v515_v33 = vmax.f32 %v513_v15, %v514_v24  ;;  %v527_v34 = vrot.slane %v526_v25, 1  ;;  %v594_v37 = vsel %vm268_vm0, %v201_v22, -inf  ;;  %v2275_v11 = vld [vmem:[%s3827_s1 + $0x2e8] sm:$0xff]  ;;  %1522 = vmatpush.msrb.mxu3 %v2252_v10  ;;  %v210_v10 = vld [vmem:[%s2585_s26 + $0x1e0] sm:$0xff] }
  0x70   : > { %v565_v35 = vmax.f32 %v563_v17, %v564_v26  ;;  %v540_v38 = vrot.slane %v539_v30, 1  ;;  %v553_v39 = vrot.slane %v552_v31, 1  ;;  %v1167_v40 = vsel %vm1133_vm2, %v502_v29, %v1166_v28  ;;  %v2287_v12 = vld [vmem:[%s3827_s1 + $0x348] sm:$0xff]  ;;  %1592 = vmatpush.msrb.mxu0 %v2275_v11 }
  0x71   : > { %v584_v41 = vrot.slane %v583_v32, 2  ;;  %v528_v42 = vmax.f32 %v526_v25, %v527_v34  ;;  %v1168_v44 = vsel %vm1135_vm3, %v515_v33, %v1167_v40  ;;  %v595_v47 = vrot.slane %v594_v37, 4  ;;  %1634 = vmatpush.msrb.mxu2 %v2287_v12 }
  0x72   : > { %v566_v43 = vrot.slane %v565_v35, 1  ;;  %v541_v50 = vmax.f32 %v539_v30, %v540_v38  ;;  %v554_v51 = vmax.f32 %v552_v31, %v553_v39  ;;  %v607_v54 = vsel %vm268_vm0, %v203_v36, -inf }
  0x73   : > { %v585_v53 = vmax.f32 %v583_v32, %v584_v41  ;;  %v1169_v56 = vsel %vm1137_vm4, %v528_v42, %v1168_v44  ;;  %v596_v59 = vmax.f32 %v594_v37, %v595_v47  ;;  %v608_v60 = vrot.slane %v607_v54, 4  ;;  %v200_v42 = vld [vmem:[%s2585_s26 + $0x190] sm:$0xff] }
  0x74   : > { %v567_v55 = vmax.f32 %v565_v35, %v566_v43  ;;  %v1170_v62 = vsel %vm1139_vm5, %v541_v50, %v1169_v56  ;;  %v620_v1 = vsel %vm268_vm0, %v205_v45, -inf  ;;  %v633_v2 = vsel %vm268_vm0, %v207_v46, -inf }
  0x75   : > { %v586_v63 = vrot.slane %v585_v53, 1  ;;  %v1171_v6 = vsel %vm1141_vm6, %v554_v51, %v1170_v62  ;;  %v597_v7 = vrot.slane %v596_v59, 2  ;;  %v609_v8 = vmax.f32 %v607_v54, %v608_v60  ;;  %v204_v62 = vld [vmem:[%s2585_s26 + $0x1b0] sm:$0xff] }
  0x76   : > { %v621_v9 = vrot.slane %v620_v1, 4  ;;  %v2900_v13 = vsel %vm1143_vm7, %v567_v55, %v1171_v6  ;;  %v634_v15 = vrot.slane %v633_v2, 4  ;;  %v646_v16 = vsel %vm268_vm0, %v209_v52, -inf }
  0x77   : > { %v587_v14 = vmax.f32 %v585_v53, %v586_v63  ;;  %1384 = vmatmul.f32.gmra.mxu2 %v2900_v13  ;;  %1279 = vmatmul.f32.gmra.mxu0 %v2900_v13  ;;  %v598_v17 = vmax.f32 %v596_v59, %v597_v7  ;;  %v610_v18 = vrot.slane %v609_v8, 2  ;;  %v647_v20 = vrot.slane %v646_v16, 4  ;;  %v202_v53 = vld [vmem:[%s2585_s26 + $0x1a0] sm:$0xff] }
  0x78   : > { %v622_v19 = vmax.f32 %v620_v1, %v621_v9  ;;  %v635_v22 = vmax.f32 %v633_v2, %v634_v15  ;;  %v659_v23 = vsel %vm268_vm0, %v211_v57, -inf  ;;  %v672_v24 = vsel %vm268_vm0, %v213_v58, -inf }
  0x79   : > { %v575_v25 = vrot.slane %v198_v61, 4  ;;  %v599_v26 = vrot.slane %v598_v17, 1  ;;  %v611_v28 = vmax.f32 %v609_v8, %v610_v18  ;;  %v648_v30 = vmax.f32 %v646_v16, %v647_v20 }
  0x7a   : > { %v623_v29 = vrot.slane %v622_v19, 2  ;;  %v636_v31 = vrot.slane %v635_v22, 2  ;;  %v660_v32 = vrot.slane %v659_v23, 4  ;;  %v673_v33 = vrot.slane %v672_v24, 4 }
  0x7b   : > { %v576_v34 = vmax.f32 %v198_v61, %v575_v25  ;;  %v600_v35 = vmax.f32 %v598_v17, %v599_v26  ;;  %v612_v36 = vrot.slane %v611_v28, 1  ;;  %v649_v38 = vrot.slane %v648_v30, 2  ;;  %v2274_v25 = vld [vmem:[%s3827_s1 + $0x2e0] sm:$0xff] }
  0x7c   : > { %v624_v37 = vmax.f32 %v622_v19, %v623_v29  ;;  %v637_v39 = vmax.f32 %v635_v22, %v636_v31  ;;  %v661_v40 = vmax.f32 %v659_v23, %v660_v32  ;;  %v674_v41 = vmax.f32 %v672_v24, %v673_v33  ;;  %v2239_v23 = vld [vmem:[%s3827_s1 + $0x200] sm:$0xff]  ;;  %1593 = vmatpush.msrb.mxu0 %v2274_v25 }
  0x7d   : > { %v577_v43 = vrot.slane %v576_v34, 2  ;;  %v613_v44 = vmax.f32 %v611_v28, %v612_v36  ;;  %v650_v46 = vmax.f32 %v648_v30, %v649_v38  ;;  %v1187_v47 = vsel %vm1131_vm1, %v600_v35, %v587_v14  ;;  %v212_v14 = vld [vmem:[%s2585_s26 + $0x1f0] sm:$0xff]  ;;  %v2251_v24 = vld [vmem:[%s3827_s1 + $0x260] sm:$0xff]  ;;  %1481 = vmatpush.msrb.mxu1 %v2239_v23  ;;  %v215_v35 = vld [vmem:[%s2585_s26 + $0x208] sm:$0xff] }
  0x7e   : > { %v625_v45 = vrot.slane %v624_v37, 1  ;;  %v638_v50 = vrot.slane %v637_v39, 1  ;;  %v662_v51 = vrot.slane %v661_v40, 2  ;;  %v675_v52 = vrot.slane %v674_v41, 2  ;;  %1523 = vmatpush.msrb.mxu3 %v2251_v24  ;;  %v227_v23 = vld [vmem:[%s2585_s26 + $0x268] sm:$0xff] }
  0x7f   : > { %v578_v54 = vmax.f32 %v576_v34, %v577_v43  ;;  %v651_v56 = vrot.slane %v650_v46, 1  ;;  %v1188_v57 = vsel %vm1133_vm2, %v613_v44, %v1187_v47  ;;  %v588_v58 = vrot.slane %v200_v42, 4 }
  0x80   : > { %v626_v55 = vmax.f32 %v624_v37, %v625_v45  ;;  %v639_v59 = vmax.f32 %v637_v39, %v638_v50  ;;  %v663_v60 = vmax.f32 %v661_v40, %v662_v51  ;;  %v676_v61 = vmax.f32 %v674_v41, %v675_v52 }
  0x81   : > { %v579_v63 = vrot.slane %v578_v54, 1  ;;  %v652_v1 = vmax.f32 %v650_v46, %v651_v56  ;;  %v589_v5 = vmax.f32 %v200_v42, %v588_v58  ;;  %v601_v6 = vrot.slane %v202_v53, 4 }
  0x82   : > { %v1189_v2 = vsel %vm1135_vm3, %v626_v55, %v1188_v57  ;;  %v664_v7 = vrot.slane %v663_v60, 1  ;;  %v677_v8 = vrot.slane %v676_v61, 1  ;;  %v614_v17 = vrot.slane %v204_v62, 4 }
  0x83   : > { %v1190_v9 = vsel %vm1137_vm4, %v639_v59, %v1189_v2  ;;  %v580_v11 = vmax.f32 %v578_v54, %v579_v63  ;;  %v590_v15 = vrot.slane %v589_v5, 2  ;;  %v602_v16 = vmax.f32 %v202_v53, %v601_v6  ;;  %v217_v54 = vld [vmem:[%s2585_s26 + $0x218] sm:$0xff]  ;;  %v219_v63 = vld [vmem:[%s2585_s26 + $0x228] sm:$0xff] }
  0x84   : > { %v1191_v12 = vsel %vm1139_vm5, %v652_v1, %v1190_v9  ;;  %v665_v18 = vmax.f32 %v663_v60, %v664_v7  ;;  %v678_v19 = vmax.f32 %v676_v61, %v677_v8  ;;  %v627_v20 = vrot.slane %v206_v3, 4  ;;  %v221_v9 = vld [vmem:[%s2585_s26 + $0x238] sm:$0xff] }
  0x85   : > { %v640_v22 = vrot.slane %v208_v4, 4  ;;  %v591_v26 = vmax.f32 %v589_v5, %v590_v15  ;;  %v603_v28 = vrot.slane %v602_v16, 2  ;;  %v615_v29 = vmax.f32 %v204_v62, %v614_v17 }
  0x86   : > { %v653_v30 = vrot.slane %v210_v10, 4  ;;  %v1192_v31 = vsel %vm1141_vm6, %v665_v18, %v1191_v12  ;;  %v628_v32 = vmax.f32 %v206_v3, %v627_v20  ;;  %v666_v34 = vrot.slane %v212_v14, 4 }
  0x87   : > { %v641_v33 = vmax.f32 %v208_v4, %v640_v22  ;;  %v2931_v36 = vsel %vm1143_vm7, %v678_v19, %v1192_v31  ;;  %v592_v37 = vrot.slane %v591_v26, 1  ;;  %v604_v38 = vmax.f32 %v602_v16, %v603_v28  ;;  %v225_v22 = vld [vmem:[%s2585_s26 + $0x258] sm:$0xff] }
  0x88   : > { %v616_v39 = vrot.slane %v615_v29, 2  ;;  %2227 = vmatmul.msk.f32.gmra.mxu3 %vm268_vm0, %v2931_v36  ;;  %v629_v40 = vrot.slane %v628_v32, 2  ;;  %v654_v42 = vmax.f32 %v210_v10, %v653_v30  ;;  %v667_v43 = vmax.f32 %v212_v14, %v666_v34  ;;  %2192 = vmatmul.msk.f32.gmra.mxu1 %vm268_vm0, %v2931_v36  ;;  %v2273_v34 = vld [vmem:[%s3827_s1 + $0x2d8] sm:$0xff] }
  0x89   : > { %v642_v41 = vrot.slane %v641_v33, 2  ;;  %v593_v44 = vmax.f32 %v591_v26, %v592_v37  ;;  %v605_v45 = vrot.slane %v604_v38, 1  ;;  %v685_v47 = vsel %vm268_vm0, %v215_v35, -inf  ;;  %v229_v37 = vld [vmem:[%s2585_s26 + $0x278] sm:$0xff]  ;;  %1594 = vmatpush.msrb.mxu0 %v2273_v34 }
  0x8a   : > { %v617_v46 = vmax.f32 %v615_v29, %v616_v39  ;;  %v630_v50 = vmax.f32 %v628_v32, %v629_v40  ;;  %v655_v52 = vrot.slane %v654_v42, 2  ;;  %v668_v53 = vrot.slane %v667_v43, 2  ;;  %v2238_v32 = vld [vmem:[%s3827_s1 + $0x1f8] sm:$0xff] }
  0x8b   : > { %v643_v51 = vmax.f32 %v641_v33, %v642_v41  ;;  %v606_v55 = vmax.f32 %v604_v38, %v605_v45  ;;  %v1180_v57 = vsel %vm1131_vm1, %v593_v44, %v580_v11  ;;  %v686_v58 = vrot.slane %v685_v47, 4  ;;  %v223_v11 = vld [vmem:[%s2585_s26 + $0x248] sm:$0xff]  ;;  %v2286_v33 = vld [vmem:[%s3827_s1 + $0x340] sm:$0xff]  ;;  %1482 = vmatpush.msrb.mxu1 %v2238_v32  ;;  %v2237_v41 = vld [vmem:[%s3827_s1 + $0x1f0] sm:$0xff] }
  0x8c   : > { %v618_v56 = vrot.slane %v617_v46, 1  ;;  %v631_v59 = vrot.slane %v630_v50, 1  ;;  %v656_v61 = vmax.f32 %v654_v42, %v655_v52  ;;  %v669_v62 = vmax.f32 %v667_v43, %v668_v53  ;;  %1635 = vmatpush.msrb.mxu2 %v2286_v33  ;;  %v2250_v42 = vld [vmem:[%s3827_s1 + $0x258] sm:$0xff]  ;;  %v214_v53 = vld [vmem:[%s2585_s26 + $0x200] sm:$0xff] }
  0x8d   : > { %v644_v60 = vrot.slane %v643_v51, 1  ;;  %v1181_v2 = vsel %vm1133_vm2, %v606_v55, %v1180_v57  ;;  %v687_v3 = vmax.f32 %v685_v47, %v686_v58  ;;  %v698_v4 = vsel %vm268_vm0, %v217_v54, -inf  ;;  %1483 = vmatpush.msrb.mxu1 %v2237_v41  ;;  %1524 = vmatpush.msrb.mxu3 %v2250_v42  ;;  %v224_v41 = vld [vmem:[%s2585_s26 + $0x250] sm:$0xff] }
  0x8e   : > { %v619_v1 = vmax.f32 %v617_v46, %v618_v56  ;;  %v632_v5 = vmax.f32 %v630_v50, %v631_v59  ;;  %v657_v7 = vrot.slane %v656_v61, 1  ;;  %v670_v8 = vrot.slane %v669_v62, 1 }
  0x8f   : > { %v645_v6 = vmax.f32 %v643_v51, %v644_v60  ;;  %v688_v12 = vrot.slane %v687_v3, 2  ;;  %v699_v14 = vrot.slane %v698_v4, 4  ;;  %v711_v15 = vsel %vm268_vm0, %v219_v63, -inf }
  0x90   : > { %v1182_v10 = vsel %vm1135_vm3, %v619_v1, %v1181_v2  ;;  %v658_v16 = vmax.f32 %v656_v61, %v657_v7  ;;  %v671_v17 = vmax.f32 %v669_v62, %v670_v8  ;;  %v712_v19 = vrot.slane %v711_v15, 4 }
  0x91   : > { %v1183_v18 = vsel %vm1137_vm4, %v632_v5, %v1182_v10  ;;  %v689_v24 = vmax.f32 %v687_v3, %v688_v12  ;;  %v700_v25 = vmax.f32 %v698_v4, %v699_v14  ;;  %v724_v26 = vsel %vm268_vm0, %v221_v9, -inf  ;;  %v216_v10 = vld [vmem:[%s2585_s26 + $0x210] sm:$0xff] }
  0x92   : > { %v1184_v20 = vsel %vm1139_vm5, %v645_v6, %v1183_v18  ;;  %v713_v29 = vmax.f32 %v711_v15, %v712_v19  ;;  %v725_v30 = vrot.slane %v724_v26, 4  ;;  %v737_v31 = vsel %vm268_vm0, %v223_v11, -inf }
  0x93   : > { %v1185_v28 = vsel %vm1141_vm6, %v658_v16, %v1184_v20  ;;  %v690_v38 = vrot.slane %v689_v24, 1  ;;  %v701_v39 = vrot.slane %v700_v25, 2  ;;  %v738_v40 = vrot.slane %v737_v31, 4 }
  0x94   : > { %v2964_v35 = vsel %vm1143_vm7, %v671_v17, %v1185_v28  ;;  %v714_v43 = vrot.slane %v713_v29, 2  ;;  %v726_v44 = vmax.f32 %v724_v26, %v725_v30  ;;  %v750_v45 = vsel %vm268_vm0, %v225_v22, -inf  ;;  %v218_v17 = vld [vmem:[%s2585_s26 + $0x220] sm:$0xff]  ;;  %v220_v26 = vld [vmem:[%s2585_s26 + $0x230] sm:$0xff] }
  0x95   : > { %1387 = vmatmul.f32.gmra.mxu2 %v2964_v35  ;;  %1282 = vmatmul.f32.gmra.mxu0 %v2964_v35  ;;  %v763_v46 = vsel %vm268_vm0, %v227_v23, -inf  ;;  %v691_v47 = vmax.f32 %v689_v24, %v690_v38  ;;  %v702_v50 = vmax.f32 %v700_v25, %v701_v39  ;;  %v739_v51 = vmax.f32 %v737_v31, %v738_v40  ;;  %v222_v31 = vld [vmem:[%s2585_s26 + $0x240] sm:$0xff] }
  0x96   : > { %v751_v52 = vrot.slane %v750_v45, 4  ;;  %v715_v54 = vmax.f32 %v713_v29, %v714_v43  ;;  %v727_v55 = vrot.slane %v726_v44, 2  ;;  %v764_v56 = vrot.slane %v763_v46, 4 }
  0x97   : > { %v776_v57 = vsel %vm268_vm0, %v229_v37, -inf  ;;  %v703_v58 = vrot.slane %v702_v50, 1  ;;  %v740_v59 = vrot.slane %v739_v51, 2  ;;  %v679_v2 = vrot.slane %v214_v53, 4 }
  0x98   : > { %v752_v60 = vmax.f32 %v750_v45, %v751_v52  ;;  %v777_v61 = vrot.slane %v776_v57, 4  ;;  %v716_v62 = vrot.slane %v715_v54, 1  ;;  %v728_v63 = vmax.f32 %v726_v44, %v727_v55 }
  0x99   : > { %v765_v1 = vmax.f32 %v763_v46, %v764_v56  ;;  %v704_v3 = vmax.f32 %v702_v50, %v703_v58  ;;  %v741_v4 = vmax.f32 %v739_v51, %v740_v59  ;;  %v680_v11 = vmax.f32 %v214_v53, %v679_v2  ;;  %v228_v50 = vld [vmem:[%s2585_s26 + $0x270] sm:$0xff] }
  0x9a   : > { %v753_v5 = vrot.slane %v752_v60, 2  ;;  %v778_v6 = vmax.f32 %v776_v57, %v777_v61  ;;  %v717_v7 = vmax.f32 %v715_v54, %v716_v62  ;;  %v729_v8 = vrot.slane %v728_v63, 1  ;;  %v231_v57 = vld [vmem:[%s2585_s26 + $0x288] sm:$0xff]  ;;  %v2272_v62 = vld [vmem:[%s3827_s1 + $0x2d0] sm:$0xff] }
  0x9b   : > { %v766_v9 = vrot.slane %v765_v1, 2  ;;  %v742_v12 = vrot.slane %v741_v4, 1  ;;  %v1201_v16 = vsel %vm1131_vm1, %v704_v3, %v691_v47  ;;  %v681_v22 = vrot.slane %v680_v11, 2  ;;  %v226_v47 = vld [vmem:[%s2585_s26 + $0x260] sm:$0xff]  ;;  %1595 = vmatpush.msrb.mxu0 %v2272_v62 }
  0x9c   : > { %v754_v14 = vmax.f32 %v752_v60, %v753_v5  ;;  %v779_v15 = vrot.slane %v778_v6, 2  ;;  %v730_v18 = vmax.f32 %v728_v63, %v729_v8  ;;  %v1202_v20 = vsel %vm1133_vm2, %v717_v7, %v1201_v16  ;;  %v2285_v63 = vld [vmem:[%s3827_s1 + $0x338] sm:$0xff] }
  0x9d   : > { %v767_v19 = vmax.f32 %v765_v1, %v766_v9  ;;  %v743_v23 = vmax.f32 %v741_v4, %v742_v12  ;;  %v692_v28 = vrot.slane %v216_v10, 4  ;;  %v682_v32 = vmax.f32 %v680_v11, %v681_v22  ;;  %v2236_v1 = vld [vmem:[%s3827_s1 + $0x1e8] sm:$0xff]  ;;  %1636 = vmatpush.msrb.mxu2 %v2285_v63 }
  0x9e   : > { %v755_v24 = vrot.slane %v754_v14, 1  ;;  %v780_v25 = vmax.f32 %v778_v6, %v779_v15  ;;  %v1203_v30 = vsel %vm1135_vm3, %v730_v18, %v1202_v20  ;;  %v705_v33 = vrot.slane %v218_v17, 4  ;;  %1484 = vmatpush.msrb.mxu1 %v2236_v1  ;;  %v2249_v1 = vld [vmem:[%s3827_s1 + $0x250] sm:$0xff] }
  0x9f   : > { %v768_v29 = vrot.slane %v767_v19, 1  ;;  %v1204_v38 = vsel %vm1137_vm4, %v743_v23, %v1203_v30  ;;  %v693_v39 = vmax.f32 %v216_v10, %v692_v28  ;;  %v683_v42 = vrot.slane %v682_v32, 1  ;;  %1525 = vmatpush.msrb.mxu3 %v2249_v1  ;;  %v236_v1 = vld [vmem:[%s2585_s26 + $0x2b0] sm:$0xff] }
  0xa0   : > { %v756_v34 = vmax.f32 %v754_v14, %v755_v24  ;;  %v781_v37 = vrot.slane %v780_v25, 1  ;;  %v706_v43 = vmax.f32 %v218_v17, %v705_v33  ;;  %v718_v44 = vrot.slane %v220_v26, 4  ;;  %v233_v24 = vld [vmem:[%s2585_s26 + $0x298] sm:$0xff] }
  0xa1   : > { %v769_v40 = vmax.f32 %v767_v19, %v768_v29  ;;  %v694_v51 = vrot.slane %v693_v39, 2  ;;  %v731_v52 = vrot.slane %v222_v31, 4  ;;  %v684_v54 = vmax.f32 %v682_v32, %v683_v42 }
  0xa2   : > { %v782_v45 = vmax.f32 %v780_v25, %v781_v37  ;;  %v1205_v46 = vsel %vm1139_vm5, %v756_v34, %v1204_v38  ;;  %v707_v55 = vrot.slane %v706_v43, 2  ;;  %v719_v56 = vmax.f32 %v220_v26, %v718_v44  ;;  %v235_v34 = vld [vmem:[%s2585_s26 + $0x2a8] sm:$0xff]  ;;  %v237_v44 = vld [vmem:[%s2585_s26 + $0x2b8] sm:$0xff] }
  0xa3   : > { %v1206_v53 = vsel %vm1141_vm6, %v769_v40, %v1205_v46  ;;  %v695_v59 = vmax.f32 %v693_v39, %v694_v51  ;;  %v732_v60 = vmax.f32 %v222_v31, %v731_v52  ;;  %v744_v61 = vrot.slane %v224_v41, 4 }
  0xa4   : > { %v2994_v58 = vsel %vm1143_vm7, %v782_v45, %v1206_v53  ;;  %v708_v2 = vmax.f32 %v706_v43, %v707_v55  ;;  %v720_v3 = vrot.slane %v719_v56, 2  ;;  %v757_v4 = vrot.slane %v226_v47, 4  ;;  %v239_v45 = vld [vmem:[%s2585_s26 + $0x2c8] sm:$0xff]  ;;  %v241_v55 = vld [vmem:[%s2585_s26 + $0x2d8] sm:$0xff] }
  0xa5   : > { %2228 = vmatmul.msk.f32.gmra.mxu3 %vm268_vm0, %v2994_v58  ;;  %v770_v5 = vrot.slane %v228_v50, 4  ;;  %2193 = vmatmul.msk.f32.gmra.mxu1 %vm268_vm0, %v2994_v58  ;;  %v696_v6 = vrot.slane %v695_v59, 1  ;;  %v733_v7 = vrot.slane %v732_v60, 2  ;;  %v745_v8 = vmax.f32 %v224_v41, %v744_v61 }
  0xa6   : > { %v789_v9 = vsel %vm268_vm0, %v231_v57, -inf  ;;  %v709_v10 = vrot.slane %v708_v2, 1  ;;  %v721_v11 = vmax.f32 %v719_v56, %v720_v3  ;;  %v758_v12 = vmax.f32 %v226_v47, %v757_v4  ;;  %v243_v56 = vld [vmem:[%s2585_s26 + $0x2e8] sm:$0xff]  ;;  %v2284_v3 = vld [vmem:[%s3827_s1 + $0x330] sm:$0xff] }
  0xa7   : > { %v771_v14 = vmax.f32 %v228_v50, %v770_v5  ;;  %v697_v15 = vmax.f32 %v695_v59, %v696_v6  ;;  %v734_v16 = vmax.f32 %v732_v60, %v733_v7  ;;  %v746_v17 = vrot.slane %v745_v8, 2  ;;  %v245_v5 = vld [vmem:[%s2585_s26 + $0x2f8] sm:$0xff]  ;;  %1637 = vmatpush.msrb.mxu2 %v2284_v3 }
  0xa8   : > { %v790_v18 = vrot.slane %v789_v9, 4  ;;  %v710_v19 = vmax.f32 %v708_v2, %v709_v10  ;;  %v722_v20 = vrot.slane %v721_v11, 1  ;;  %v759_v22 = vrot.slane %v758_v12, 2  ;;  %v2271_v2 = vld [vmem:[%s3827_s1 + $0x2c8] sm:$0xff]  ;;  %v2235_v10 = vld [vmem:[%s3827_s1 + $0x1e0] sm:$0xff] }
  0xa9   : > { %v772_v23 = vrot.slane %v771_v14, 2  ;;  %v735_v25 = vrot.slane %v734_v16, 1  ;;  %v747_v26 = vmax.f32 %v745_v8, %v746_v17  ;;  %v1194_v28 = vsel %vm1131_vm1, %v697_v15, %v684_v54  ;;  %1596 = vmatpush.msrb.mxu0 %v2271_v2  ;;  %1485 = vmatpush.msrb.mxu1 %v2235_v10 }
  0xaa   : > { %v791_v29 = vmax.f32 %v789_v9, %v790_v18  ;;  %v723_v30 = vmax.f32 %v721_v11, %v722_v20  ;;  %v760_v31 = vmax.f32 %v758_v12, %v759_v22  ;;  %v1195_v33 = vsel %vm1133_vm2, %v710_v19, %v1194_v28  ;;  %v230_v9 = vld [vmem:[%s2585_s26 + $0x280] sm:$0xff] }
  0xab   : > { %v773_v32 = vmax.f32 %v771_v14, %v772_v23  ;;  %v736_v37 = vmax.f32 %v734_v16, %v735_v25  ;;  %v748_v38 = vrot.slane %v747_v26, 1  ;;  %v802_v40 = vsel %vm268_vm0, %v233_v24, -inf }
  0xac   : > { %v792_v39 = vrot.slane %v791_v29, 2  ;;  %v761_v41 = vrot.slane %v760_v31, 1  ;;  %v1196_v43 = vsel %vm1135_vm3, %v723_v30, %v1195_v33  ;;  %v803_v46 = vrot.slane %v802_v40, 4 }
  0xad   : > { %v774_v42 = vrot.slane %v773_v32, 1  ;;  %v749_v47 = vmax.f32 %v747_v26, %v748_v38  ;;  %v1197_v50 = vsel %vm1137_vm4, %v736_v37, %v1196_v43  ;;  %v815_v52 = vsel %vm268_vm0, %v235_v34, -inf  ;;  %v232_v43 = vld [vmem:[%s2585_s26 + $0x290] sm:$0xff] }
  0xae   : > { %v793_v51 = vmax.f32 %v791_v29, %v792_v39  ;;  %v762_v53 = vmax.f32 %v760_v31, %v761_v41  ;;  %v804_v57 = vmax.f32 %v802_v40, %v803_v46  ;;  %v816_v59 = vrot.slane %v815_v52, 4 }
  0xaf   : > { %v775_v54 = vmax.f32 %v773_v32, %v774_v42  ;;  %v1198_v60 = vsel %vm1139_vm5, %v749_v47, %v1197_v50  ;;  %v828_v62 = vsel %vm268_vm0, %v237_v44, -inf  ;;  %v841_v63 = vsel %vm268_vm0, %v239_v45, -inf }
  0xb0   : > { %v794_v61 = vrot.slane %v793_v51, 1  ;;  %v1199_v4 = vsel %vm1141_vm6, %v762_v53, %v1198_v60  ;;  %v805_v6 = vrot.slane %v804_v57, 2  ;;  %v817_v7 = vmax.f32 %v815_v52, %v816_v59 }
  0xb1   : > { %v829_v8 = vrot.slane %v828_v62, 4  ;;  %v3041_v11 = vsel %vm1143_vm7, %v775_v54, %v1199_v4  ;;  %v842_v14 = vrot.slane %v841_v63, 4  ;;  %v854_v15 = vsel %vm268_vm0, %v241_v55, -inf  ;;  %v234_v54 = vld [vmem:[%s2585_s26 + $0x2a0] sm:$0xff] }
  0xb2   : > { %v795_v12 = vmax.f32 %v793_v51, %v794_v61  ;;  %1390 = vmatmul.f32.gmra.mxu2 %v3041_v11  ;;  %1285 = vmatmul.f32.gmra.mxu0 %v3041_v11  ;;  %v806_v16 = vmax.f32 %v804_v57, %v805_v6  ;;  %v818_v17 = vrot.slane %v817_v7, 2  ;;  %v855_v19 = vrot.slane %v854_v15, 4  ;;  %v240_v6 = vld [vmem:[%s2585_s26 + $0x2d0] sm:$0xff] }
  0xb3   : > { %v830_v18 = vmax.f32 %v828_v62, %v829_v8  ;;  %v843_v20 = vmax.f32 %v841_v63, %v842_v14  ;;  %v867_v22 = vsel %vm268_vm0, %v243_v56, -inf  ;;  %v880_v23 = vsel %vm268_vm0, %v245_v5, -inf  ;;  %v238_v5 = vld [vmem:[%s2585_s26 + $0x2c0] sm:$0xff] }
  0xb4   : > { %v783_v24 = vrot.slane %v230_v9, 4  ;;  %v807_v25 = vrot.slane %v806_v16, 1  ;;  %v819_v26 = vmax.f32 %v817_v7, %v818_v17  ;;  %v856_v29 = vmax.f32 %v854_v15, %v855_v19  ;;  %v242_v14 = vld [vmem:[%s2585_s26 + $0x2e0] sm:$0xff]  ;;  %v244_v17 = vld [vmem:[%s2585_s26 + $0x2f0] sm:$0xff] }
  0xb5   : > { %v831_v28 = vrot.slane %v830_v18, 2  ;;  %v844_v30 = vrot.slane %v843_v20, 2  ;;  %v868_v31 = vrot.slane %v867_v22, 4  ;;  %v881_v32 = vrot.slane %v880_v23, 4 }
  0xb6   : > { %v784_v33 = vmax.f32 %v230_v9, %v783_v24  ;;  %v808_v34 = vmax.f32 %v806_v16, %v807_v25  ;;  %v820_v37 = vrot.slane %v819_v26, 1  ;;  %v857_v39 = vrot.slane %v856_v29, 2 }
  0xb7   : > { %v832_v38 = vmax.f32 %v830_v18, %v831_v28  ;;  %v845_v40 = vmax.f32 %v843_v20, %v844_v30  ;;  %v869_v41 = vmax.f32 %v867_v22, %v868_v31  ;;  %v882_v42 = vmax.f32 %v880_v23, %v881_v32  ;;  %v2270_v28 = vld [vmem:[%s3827_s1 + $0x2c0] sm:$0xff] }
  0xb8   : > { %v785_v44 = vrot.slane %v784_v33, 2  ;;  %v821_v45 = vmax.f32 %v819_v26, %v820_v37  ;;  %v858_v47 = vmax.f32 %v856_v29, %v857_v39  ;;  %v1215_v50 = vsel %vm1131_vm1, %v808_v34, %v795_v12  ;;  %v2248_v26 = vld [vmem:[%s3827_s1 + $0x248] sm:$0xff]  ;;  %v2234_v29 = vld [vmem:[%s3827_s1 + $0x1d8] sm:$0xff]  ;;  %1597 = vmatpush.msrb.mxu0 %v2270_v28 }
  0xb9   : > { %v833_v46 = vrot.slane %v832_v38, 1  ;;  %v846_v51 = vrot.slane %v845_v40, 1  ;;  %v870_v52 = vrot.slane %v869_v41, 2  ;;  %v883_v53 = vrot.slane %v882_v42, 2  ;;  %1526 = vmatpush.msrb.mxu3 %v2248_v26  ;;  %v2283_v34 = vld [vmem:[%s3827_s1 + $0x328] sm:$0xff]  ;;  %1486 = vmatpush.msrb.mxu1 %v2234_v29 }
  0xba   : > { %v786_v55 = vmax.f32 %v784_v33, %v785_v44  ;;  %v859_v57 = vrot.slane %v858_v47, 1  ;;  %v1216_v59 = vsel %vm1133_vm2, %v821_v45, %v1215_v50  ;;  %v796_v60 = vrot.slane %v232_v43, 4  ;;  %1638 = vmatpush.msrb.mxu2 %v2283_v34 }
  0xbb   : > { %v834_v56 = vmax.f32 %v832_v38, %v833_v46  ;;  %v847_v61 = vmax.f32 %v845_v40, %v846_v51  ;;  %v871_v62 = vmax.f32 %v869_v41, %v870_v52  ;;  %v884_v63 = vmax.f32 %v882_v42, %v883_v53  ;;  %v247_v41 = vld [vmem:[%s2585_s26 + $0x308] sm:$0xff] }
  0xbc   : > { %v787_v2 = vrot.slane %v786_v55, 1  ;;  %v860_v3 = vmax.f32 %v858_v47, %v859_v57  ;;  %v797_v7 = vmax.f32 %v232_v43, %v796_v60  ;;  %v809_v8 = vrot.slane %v234_v54, 4 }
  0xbd   : > { %v1217_v4 = vsel %vm1135_vm3, %v834_v56, %v1216_v59  ;;  %v872_v9 = vrot.slane %v871_v62, 1  ;;  %v885_v10 = vrot.slane %v884_v63, 1  ;;  %v822_v20 = vrot.slane %v236_v1, 4 }
  0xbe   : > { %v1218_v12 = vsel %vm1137_vm4, %v847_v61, %v1217_v4  ;;  %v788_v15 = vmax.f32 %v786_v55, %v787_v2  ;;  %v798_v18 = vrot.slane %v797_v7, 2  ;;  %v810_v19 = vmax.f32 %v234_v54, %v809_v8  ;;  %v249_v61 = vld [vmem:[%s2585_s26 + $0x318] sm:$0xff] }
  0xbf   : > { %v1219_v16 = vsel %vm1139_vm5, %v860_v3, %v1218_v12  ;;  %v873_v22 = vmax.f32 %v871_v62, %v872_v9  ;;  %v886_v23 = vmax.f32 %v884_v63, %v885_v10  ;;  %v835_v24 = vrot.slane %v238_v5, 4 }
  0xc0   : > { %v848_v25 = vrot.slane %v240_v6, 4  ;;  %v799_v30 = vmax.f32 %v797_v7, %v798_v18  ;;  %v811_v31 = vrot.slane %v810_v19, 2  ;;  %v823_v32 = vmax.f32 %v236_v1, %v822_v20  ;;  %v251_v7 = vld [vmem:[%s2585_s26 + $0x328] sm:$0xff]  ;;  %v253_v18 = vld [vmem:[%s2585_s26 + $0x338] sm:$0xff] }
  0xc1   : > { %v861_v33 = vrot.slane %v242_v14, 4  ;;  %v1220_v37 = vsel %vm1141_vm6, %v873_v22, %v1219_v16  ;;  %v836_v38 = vmax.f32 %v238_v5, %v835_v24  ;;  %v874_v40 = vrot.slane %v244_v17, 4  ;;  %v255_v20 = vld [vmem:[%s2585_s26 + $0x348] sm:$0xff] }
  0xc2   : > { %v849_v39 = vmax.f32 %v240_v6, %v848_v25  ;;  %v3075_v42 = vsel %vm1143_vm7, %v886_v23, %v1220_v37  ;;  %v800_v43 = vrot.slane %v799_v30, 1  ;;  %v812_v44 = vmax.f32 %v810_v19, %v811_v31  ;;  %v257_v31 = vld [vmem:[%s2585_s26 + $0x358] sm:$0xff] }
  0xc3   : > { %v824_v45 = vrot.slane %v823_v32, 2  ;;  %2229 = vmatmul.msk.f32.gmra.mxu3 %vm268_vm0, %v3075_v42  ;;  %v837_v46 = vrot.slane %v836_v38, 2  ;;  %v862_v50 = vmax.f32 %v242_v14, %v861_v33  ;;  %v875_v51 = vmax.f32 %v244_v17, %v874_v40  ;;  %2194 = vmatmul.msk.f32.gmra.mxu1 %vm268_vm0, %v3075_v42  ;;  %v261_v33 = vld [vmem:[%s2585_s26 + $0x378] sm:$0xff] }
  0xc4   : > { %v850_v47 = vrot.slane %v849_v39, 2  ;;  %v801_v52 = vmax.f32 %v799_v30, %v800_v43  ;;  %v813_v53 = vrot.slane %v812_v44, 1  ;;  %v893_v55 = vsel %vm268_vm0, %v247_v41, -inf }
  0xc5   : > { %v825_v54 = vmax.f32 %v823_v32, %v824_v45  ;;  %v838_v56 = vmax.f32 %v836_v38, %v837_v46  ;;  %v863_v59 = vrot.slane %v862_v50, 2  ;;  %v876_v60 = vrot.slane %v875_v51, 2  ;;  %v259_v32 = vld [vmem:[%s2585_s26 + $0x368] sm:$0xff]  ;;  %v2233_v45 = vld [vmem:[%s3827_s1 + $0x1d0] sm:$0xff]  ;;  %v2247_v46 = vld [vmem:[%s3827_s1 + $0x240] sm:$0xff] }
  0xc6   : > { %v851_v57 = vmax.f32 %v849_v39, %v850_v47  ;;  %v814_v62 = vmax.f32 %v812_v44, %v813_v53  ;;  %v1208_v1 = vsel %vm1131_vm1, %v801_v52, %v788_v15  ;;  %v894_v2 = vrot.slane %v893_v55, 4  ;;  %v2269_v44 = vld [vmem:[%s3827_s1 + $0x2b8] sm:$0xff]  ;;  %1487 = vmatpush.msrb.mxu1 %v2233_v45  ;;  %v2268_v53 = vld [vmem:[%s3827_s1 + $0x2b0] sm:$0xff]  ;;  %1527 = vmatpush.msrb.mxu3 %v2247_v46 }
  0xc7   : > { %v826_v63 = vrot.slane %v825_v54, 1  ;;  %v839_v3 = vrot.slane %v838_v56, 1  ;;  %v864_v5 = vmax.f32 %v862_v50, %v863_v59  ;;  %v877_v6 = vmax.f32 %v875_v51, %v876_v60  ;;  %1598 = vmatpush.msrb.mxu0 %v2269_v44 }
  0xc8   : > { %v852_v4 = vrot.slane %v851_v57, 1  ;;  %v1209_v9 = vsel %vm1133_vm2, %v814_v62, %v1208_v1  ;;  %v895_v10 = vmax.f32 %v893_v55, %v894_v2  ;;  %v906_v12 = vsel %vm268_vm0, %v249_v61, -inf  ;;  %v2232_v55 = vld [vmem:[%s3827_s1 + $0x1c8] sm:$0xff]  ;;  %v2328_v61 = vld [vmem:[%s3827_s1 + $0x458] sm:$0xff] }
  0xc9   : > { %v827_v8 = vmax.f32 %v825_v54, %v826_v63  ;;  %v840_v14 = vmax.f32 %v838_v56, %v839_v3  ;;  %v865_v17 = vrot.slane %v864_v5, 1  ;;  %v878_v15 = vrot.slane %v877_v6, 1  ;;  %v2282_v54 = vld [vmem:[%s3827_s1 + $0x320] sm:$0xff]  ;;  %v2267_v62 = vld [vmem:[%s3827_s1 + $0x2a8] sm:$0xff]  ;;  %1599 = vmatpush.msrb.mxu0 %v2268_v53  ;;  %1488 = vmatpush.msrb.mxu1 %v2232_v55  ;;  %v252_v55 = vld [vmem:[%s2585_s26 + $0x330] sm:$0xff] }
  0xca   : > { %v853_v16 = vmax.f32 %v851_v57, %v852_v4  ;;  %v896_v22 = vrot.slane %v895_v10, 2  ;;  %v907_v23 = vrot.slane %v906_v12, 4  ;;  %v919_v24 = vsel %vm268_vm0, %v251_v7, -inf  ;;  %v246_v4 = vld [vmem:[%s2585_s26 + $0x300] sm:$0xff]  ;;  %1639 = vmatpush.msrb.mxu2 %v2282_v54  ;;  %1740 = vmatpush.msra.mxu3 %v2328_v61 }
  0xcb   : > { %v1210_v19 = vsel %vm1135_vm3, %v827_v8, %v1209_v9  ;;  %v866_v25 = vmax.f32 %v864_v5, %v865_v17  ;;  %v879_v26 = vmax.f32 %v877_v6, %v878_v15  ;;  %v920_v29 = vrot.slane %v919_v24, 4  ;;  %1600 = vmatpush.msrb.mxu0 %v2267_v62 }
  0xcc   : > { %v1211_v28 = vsel %vm1137_vm4, %v840_v14, %v1210_v19  ;;  %v897_v34 = vmax.f32 %v895_v10, %v896_v22  ;;  %v908_v37 = vmax.f32 %v906_v12, %v907_v23  ;;  %v932_v38 = vsel %vm268_vm0, %v253_v18, -inf }
  0xcd   : > { %v1212_v30 = vsel %vm1139_vm5, %v853_v16, %v1211_v28  ;;  %v921_v40 = vmax.f32 %v919_v24, %v920_v29  ;;  %v933_v41 = vrot.slane %v932_v38, 4  ;;  %v945_v43 = vsel %vm268_vm0, %v255_v20, -inf  ;;  %v248_v24 = vld [vmem:[%s2585_s26 + $0x310] sm:$0xff] }
  0xce   : > { %v1213_v39 = vsel %vm1141_vm6, %v866_v25, %v1212_v30  ;;  %v898_v50 = vrot.slane %v897_v34, 1  ;;  %v909_v51 = vrot.slane %v908_v37, 2  ;;  %v946_v52 = vrot.slane %v945_v43, 4  ;;  %v250_v25 = vld [vmem:[%s2585_s26 + $0x320] sm:$0xff] }
  0xcf   : > { %v3109_v47 = vsel %vm1143_vm7, %v879_v26, %v1213_v39  ;;  %v922_v56 = vrot.slane %v921_v40, 2  ;;  %v934_v57 = vmax.f32 %v932_v38, %v933_v41  ;;  %v958_v59 = vsel %vm268_vm0, %v257_v31, -inf  ;;  %v2363_v31 = vld [vmem:[%s3827_s1 + $0x538] sm:$0xff] }
  0xd0   : > { %1393 = vmatmul.f32.gmra.mxu2 %v3109_v47  ;;  %1288 = vmatmul.f32.gmra.mxu0 %v3109_v47  ;;  %v971_v60 = vsel %vm268_vm0, %v259_v32, -inf  ;;  %v899_v63 = vmax.f32 %v897_v34, %v898_v50  ;;  %v910_v1 = vmax.f32 %v908_v37, %v909_v51  ;;  %v947_v2 = vmax.f32 %v945_v43, %v946_v52  ;;  %v2231_v32 = vld [vmem:[%s3827_s1 + $0x1c0] sm:$0xff]  ;;  %v2316_v41 = vld [vmem:[%s3827_s1 + $0x3f8] sm:$0xff]  ;;  %v2362_v43 = vld [vmem:[%s3827_s1 + $0x530] sm:$0xff] }
  0xd1   : > { %v959_v3 = vrot.slane %v958_v59, 4  ;;  %v923_v5 = vmax.f32 %v921_v40, %v922_v56  ;;  %v935_v6 = vrot.slane %v934_v57, 2  ;;  %v972_v7 = vrot.slane %v971_v60, 4  ;;  %1852 = vmatpush.msra.mxu2 %v2363_v31  ;;  %1489 = vmatpush.msrb.mxu1 %v2231_v32  ;;  %v2327_v40 = vld [vmem:[%s3827_s1 + $0x450] sm:$0xff]  ;;  %v2351_v51 = vld [vmem:[%s3827_s1 + $0x4d8] sm:$0xff]  ;;  %v2325_v31 = vld [vmem:[%s3827_s1 + $0x440] sm:$0xff] }
  0xd2   : > { %v984_v8 = vsel %vm268_vm0, %v261_v33, -inf  ;;  %v911_v9 = vrot.slane %v910_v1, 1  ;;  %v948_v10 = vrot.slane %v947_v2, 2  ;;  %v887_v18 = vrot.slane %v246_v4, 4  ;;  %v2266_v33 = vld [vmem:[%s3827_s1 + $0x2a0] sm:$0xff]  ;;  %1741 = vmatpush.msra.mxu3 %v2327_v40 }
  0xd3   : > { %v960_v12 = vmax.f32 %v958_v59, %v959_v3  ;;  %v985_v14 = vrot.slane %v984_v8, 4  ;;  %v924_v16 = vrot.slane %v923_v5, 1  ;;  %v936_v17 = vmax.f32 %v934_v57, %v935_v6  ;;  %1601 = vmatpush.msrb.mxu0 %v2266_v33  ;;  %1698 = vmatpush.msra.mxu1 %v2316_v41 }
  0xd4   : > { %v973_v15 = vmax.f32 %v971_v60, %v972_v7  ;;  %v912_v19 = vmax.f32 %v910_v1, %v911_v9  ;;  %v949_v20 = vmax.f32 %v947_v2, %v948_v10  ;;  %v888_v30 = vmax.f32 %v246_v4, %v887_v18  ;;  %1853 = vmatpush.msra.mxu2 %v2362_v43  ;;  %v254_v60 = vld [vmem:[%s2585_s26 + $0x340] sm:$0xff] }
  0xd5   : > { %v961_v22 = vrot.slane %v960_v12, 2  ;;  %v986_v23 = vmax.f32 %v984_v8, %v985_v14  ;;  %v925_v26 = vmax.f32 %v923_v5, %v924_v16  ;;  %v937_v28 = vrot.slane %v936_v17, 1  ;;  %1810 = vmatpush.msra.mxu0 %v2351_v51  ;;  %v256_v5 = vld [vmem:[%s2585_s26 + $0x350] sm:$0xff] }
  0xd6   : > { %v974_v29 = vrot.slane %v973_v15, 2  ;;  %v950_v34 = vrot.slane %v949_v20, 1  ;;  %v1229_v39 = vsel %vm1131_vm1, %v912_v19, %v899_v63  ;;  %v889_v50 = vrot.slane %v888_v30, 2  ;;  %v260_v14 = vld [vmem:[%s2585_s26 + $0x370] sm:$0xff] }
  0xd7   : > { %v962_v37 = vmax.f32 %v960_v12, %v961_v22  ;;  %v987_v38 = vrot.slane %v986_v23, 2  ;;  %v938_v44 = vmax.f32 %v936_v17, %v937_v28  ;;  %v1230_v46 = vsel %vm1133_vm2, %v925_v26, %v1229_v39  ;;  %v258_v12 = vld [vmem:[%s2585_s26 + $0x360] sm:$0xff]  ;;  %v2326_v22 = vld [vmem:[%s3827_s1 + $0x448] sm:$0xff] }
  0xd8   : > { %v975_v45 = vmax.f32 %v973_v15, %v974_v29  ;;  %v951_v52 = vmax.f32 %v949_v20, %v950_v34  ;;  %v900_v56 = vrot.slane %v248_v24, 4  ;;  %v890_v61 = vmax.f32 %v888_v30, %v889_v50  ;;  %v2315_v20 = vld [vmem:[%s3827_s1 + $0x3f0] sm:$0xff]  ;;  %1742 = vmatpush.msra.mxu3 %v2326_v22  ;;  %v2361_v29 = vld [vmem:[%s3827_s1 + $0x528] sm:$0xff]  ;;  %v2360_v39 = vld [vmem:[%s3827_s1 + $0x520] sm:$0xff] }
  0xd9   : > { %v963_v53 = vrot.slane %v962_v37, 1  ;;  %v988_v54 = vmax.f32 %v986_v23, %v987_v38  ;;  %v1231_v59 = vsel %vm1135_vm3, %v938_v44, %v1230_v46  ;;  %v913_v62 = vrot.slane %v250_v25, 4  ;;  %v2350_v23 = vld [vmem:[%s3827_s1 + $0x4d0] sm:$0xff]  ;;  %1699 = vmatpush.msra.mxu1 %v2315_v20  ;;  %v2314_v30 = vld [vmem:[%s3827_s1 + $0x3e8] sm:$0xff]  ;;  %1854 = vmatpush.msra.mxu2 %v2361_v29 }
  0xda   : > { %v976_v57 = vrot.slane %v975_v45, 1  ;;  %v1232_v2 = vsel %vm1137_vm4, %v951_v52, %v1231_v59  ;;  %v901_v3 = vmax.f32 %v248_v24, %v900_v56  ;;  %v891_v6 = vrot.slane %v890_v61, 1  ;;  %v2349_v38 = vld [vmem:[%s3827_s1 + $0x4c8] sm:$0xff]  ;;  %1811 = vmatpush.msra.mxu0 %v2350_v23  ;;  %1743 = vmatpush.msra.mxu3 %v2325_v31  ;;  %v2346_v29 = vld [vmem:[%s3827_s1 + $0x4b0] sm:$0xff] }
  0xdb   : > { %v964_v63 = vmax.f32 %v962_v37, %v963_v53  ;;  %v989_v1 = vrot.slane %v988_v54, 1  ;;  %v914_v7 = vmax.f32 %v250_v25, %v913_v62  ;;  %v926_v8 = vrot.slane %v252_v55, 4  ;;  %1700 = vmatpush.msra.mxu1 %v2314_v30  ;;  %1855 = vmatpush.msra.mxu2 %v2360_v39  ;;  %v2358_v30 = vld [vmem:[%s3827_s1 + $0x510] sm:$0xff]  ;;  %v2310_v31 = vld [vmem:[%s3827_s1 + $0x3c8] sm:$0xff]  ;;  %v2344_v39 = vld [vmem:[%s3827_s1 + $0x4a0] sm:$0xff] }
  0xdc   : > { %v977_v4 = vmax.f32 %v975_v45, %v976_v57  ;;  %v902_v16 = vrot.slane %v901_v3, 2  ;;  %v939_v17 = vrot.slane %v254_v60, 4  ;;  %v952_v28 = vrot.slane %v256_v5, 4  ;;  %v2313_v45 = vld [vmem:[%s3827_s1 + $0x3e0] sm:$0xff]  ;;  %1812 = vmatpush.msra.mxu0 %v2349_v38 }
  0xdd   : > { %v990_v9 = vmax.f32 %v988_v54, %v989_v1  ;;  %v1233_v10 = vsel %vm1139_vm5, %v964_v63, %v1232_v2  ;;  %v915_v18 = vrot.slane %v914_v7, 2  ;;  %v927_v19 = vmax.f32 %v252_v55, %v926_v8  ;;  %1701 = vmatpush.msra.mxu1 %v2313_v45  ;;  %v2321_v38 = vld [vmem:[%s3827_s1 + $0x420] sm:$0xff]  ;;  %v2320_v45 = vld [vmem:[%s3827_s1 + $0x418] sm:$0xff] }
  0xde   : > { %v1234_v15 = vsel %vm1141_vm6, %v977_v4, %v1233_v10  ;;  %v903_v25 = vmax.f32 %v901_v3, %v902_v16  ;;  %v940_v26 = vmax.f32 %v254_v60, %v939_v17  ;;  %v965_v34 = vrot.slane %v258_v12, 4  ;;  %v2359_v10 = vld [vmem:[%s3827_s1 + $0x518] sm:$0xff] }
  0xdf   : > { %v3176_v24 = vsel %vm1143_vm7, %v990_v9, %v1234_v15  ;;  %v916_v32 = vmax.f32 %v914_v7, %v915_v18  ;;  %v928_v33 = vrot.slane %v927_v19, 2  ;;  %v978_v37 = vrot.slane %v260_v14, 4  ;;  %v2312_v7 = vld [vmem:[%s3827_s1 + $0x3d8] sm:$0xff]  ;;  %v2311_v15 = vld [vmem:[%s3827_s1 + $0x3d0] sm:$0xff]  ;;  %1856 = vmatpush.msra.mxu2 %v2359_v10 }
  0xe0   : > { %2230 = vmatmul.msk.f32.gmra.mxu3 %vm268_vm0, %v3176_v24  ;;  %2195 = vmatmul.msk.f32.gmra.mxu1 %vm268_vm0, %v3176_v24  ;;  %v892_v40 = vmax.f32 %v890_v61, %v891_v6  ;;  %v904_v41 = vrot.slane %v903_v25, 1  ;;  %v941_v43 = vrot.slane %v940_v26, 2  ;;  %v953_v44 = vmax.f32 %v256_v5, %v952_v28  ;;  %v2324_v5 = vld [vmem:[%s3827_s1 + $0x438] sm:$0xff]  ;;  %v2348_v6 = vld [vmem:[%s3827_s1 + $0x4c0] sm:$0xff]  ;;  %v2323_v18 = vld [vmem:[%s3827_s1 + $0x430] sm:$0xff] }
  0xe1   : > { %v917_v46 = vrot.slane %v916_v32, 1  ;;  %v929_v50 = vmax.f32 %v927_v19, %v928_v33  ;;  %v966_v51 = vmax.f32 %v258_v12, %v965_v34  ;;  %v979_v52 = vmax.f32 %v260_v14, %v978_v37  ;;  %1744 = vmatpush.msra.mxu3 %v2324_v5  ;;  %1813 = vmatpush.msra.mxu0 %v2348_v6  ;;  %v2347_v12 = vld [vmem:[%s3827_s1 + $0x4b8] sm:$0xff]  ;;  %v2345_v33 = vld [vmem:[%s3827_s1 + $0x4a8] sm:$0xff]  ;;  %v2309_v37 = vld [vmem:[%s3827_s1 + $0x3c0] sm:$0xff] }
  0xe2   : > { %v905_v53 = vmax.f32 %v903_v25, %v904_v41  ;;  %v942_v54 = vmax.f32 %v940_v26, %v941_v43  ;;  %v954_v55 = vrot.slane %v953_v44, 2  ;;  %1702 = vmatpush.msra.mxu1 %v2312_v7  ;;  %1857 = vmatpush.msra.mxu2 %v2358_v30  ;;  %v2357_v34 = vld [vmem:[%s3827_s1 + $0x508] sm:$0xff]  ;;  %v2356_v41 = vld [vmem:[%s3827_s1 + $0x500] sm:$0xff]  ;;  %v2343_v43 = vld [vmem:[%s3827_s1 + $0x498] sm:$0xff]  ;;  %v3422_v30 = vpop.f32.mrf.mxu0 }
  0xe3   : > { %v918_v56 = vmax.f32 %v916_v32, %v917_v46  ;;  %v930_v57 = vrot.slane %v929_v50, 1  ;;  %v967_v59 = vrot.slane %v966_v51, 2  ;;  %v980_v60 = vrot.slane %v979_v52, 2  ;;  %1814 = vmatpush.msra.mxu0 %v2347_v12  ;;  %1745 = vmatpush.msra.mxu3 %v2323_v18  ;;  %v2322_v32 = vld [vmem:[%s3827_s1 + $0x428] sm:$0xff]  ;;  %v2342_v46 = vld [vmem:[%s3827_s1 + $0x490] sm:$0xff]  ;;  %v2433_v6 = vld [vmem:[%s3827_s1 + $0x6f8] sm:$0xff]  ;;  %v3394_v18 = vpop.f32.mrf.mxu1 }
  0xe4   : > { %v943_v61 = vrot.slane %v942_v54, 1  ;;  %v955_v62 = vmax.f32 %v953_v44, %v954_v55  ;;  %v1222_v63 = vsel %vm1131_vm1, %v905_v53, %v892_v40  ;;  %1703 = vmatpush.msra.mxu1 %v2311_v15  ;;  %1858 = vmatpush.msra.mxu2 %v2357_v34  ;;  %v2308_v40 = vld [vmem:[%s3827_s1 + $0x3b8] sm:$0xff]  ;;  %v2307_v44 = vld [vmem:[%s3827_s1 + $0x3b0] sm:$0xff]  ;;  %v2341_v53 = vld [vmem:[%s3827_s1 + $0x488] sm:$0xff]  ;;  %v3433_v34 = vpop.f32.mrf.mxu2 }
  0xe5   : > { %v931_v1 = vmax.f32 %v929_v50, %v930_v57  ;;  %v968_v2 = vmax.f32 %v966_v51, %v967_v59  ;;  %v981_v3 = vmax.f32 %v979_v52, %v980_v60  ;;  %v1223_v4 = vsel %vm1133_vm2, %v918_v56, %v1222_v63  ;;  %1815 = vmatpush.msra.mxu0 %v2346_v29  ;;  %v2355_v50 = vld [vmem:[%s3827_s1 + $0x4f8] sm:$0xff]  ;;  %v2306_v51 = vld [vmem:[%s3827_s1 + $0x3a8] sm:$0xff]  ;;  %v2319_v52 = vld [vmem:[%s3827_s1 + $0x410] sm:$0xff] }
  0xe6   : > { %v944_v8 = vmax.f32 %v942_v54, %v943_v61  ;;  %v956_v9 = vrot.slane %v955_v62, 1  ;;  %1704 = vmatpush.msra.mxu1 %v2310_v31  ;;  %1746 = vmatpush.msra.mxu3 %v2322_v32  ;;  %v2354_v54 = vld [vmem:[%s3827_s1 + $0x4f0] sm:$0xff]  ;;  %v2305_v55 = vld [vmem:[%s3827_s1 + $0x3a0] sm:$0xff]  ;;  %v2318_v56 = vld [vmem:[%s3827_s1 + $0x408] sm:$0xff] }
  0xe7   : > { %v969_v14 = vrot.slane %v968_v2, 1  ;;  %v982_v16 = vrot.slane %v981_v3, 1  ;;  %v1224_v17 = vsel %vm1135_vm3, %v931_v1, %v1223_v4  ;;  %1816 = vmatpush.msra.mxu0 %v2345_v33  ;;  %1859 = vmatpush.msra.mxu2 %v2356_v41  ;;  %v2340_v57 = vld [vmem:[%s3827_s1 + $0x480] sm:$0xff]  ;;  %v2304_v59 = vld [vmem:[%s3827_s1 + $0x398] sm:$0xff]  ;;  %v2353_v60 = vld [vmem:[%s3827_s1 + $0x4e8] sm:$0xff] }
  0xe8   : > { %2259 = vmatmul.msk.f32.vlgmr.msrb.gmra.mxu3 %vm268_vm0, %v2705_v21  ;;  %1490 = vmatmul.f32.vlgmr.msrb.gmra.mxu1 %v2746_v27  ;;  %v957_v19 = vmax.f32 %v955_v62, %v956_v9  ;;  %v1225_v20 = vsel %vm1137_vm4, %v944_v8, %v1224_v17  ;;  %v2339_v61 = vld [vmem:[%s3827_s1 + $0x478] sm:$0xff]  ;;  %v2303_v62 = vld [vmem:[%s3827_s1 + $0x390] sm:$0xff]  ;;  %v2317_v63 = vld [vmem:[%s3827_s1 + $0x400] sm:$0xff] }
  0xe9   : > { %v970_v22 = vmax.f32 %v968_v2, %v969_v14  ;;  %v983_v23 = vmax.f32 %v981_v3, %v982_v16  ;;  %1705 = vmatpush.msra.mxu1 %v2309_v37  ;;  %1747 = vmatpush.msra.mxu3 %v2321_v38  ;;  %v2338_v1 = vld [vmem:[%s3827_s1 + $0x470] sm:$0xff]  ;;  %v2352_v2 = vld [vmem:[%s3827_s1 + $0x4e0] sm:$0xff]  ;;  %v2302_v3 = vld [vmem:[%s3827_s1 + $0x388] sm:$0xff] }
  0xea   : > { %v1226_v25 = vsel %vm1139_vm5, %v957_v19, %v1225_v20  ;;  %1817 = vmatpush.msra.mxu0 %v2344_v39  ;;  %1860 = vmatpush.msra.mxu2 %v2355_v50  ;;  %v2398_v4 = vld [vmem:[%s3827_s1 + $0x618] sm:$0xff]  ;;  %v2337_v5 = vld [vmem:[%s3827_s1 + $0x468] sm:$0xff]  ;;  %v2301_v7 = vld [vmem:[%s3827_s1 + $0x380] sm:$0xff]  ;;  %v3396_v19 = vpop.f32.mrf.mxu3 }
  0xeb   : > { %v1227_v26 = vsel %vm1141_vm6, %v970_v22, %v1226_v25  ;;  %1706 = vmatpush.msra.mxu1 %v2308_v40  ;;  %1748 = vmatpush.msra.mxu3 %v2320_v45  ;;  %v2336_v8 = vld [vmem:[%s3827_s1 + $0x460] sm:$0xff]  ;;  %v2397_v9 = vld [vmem:[%s3827_s1 + $0x610] sm:$0xff]  ;;  %v2386_v10 = vld [vmem:[%s3827_s1 + $0x5b8] sm:$0xff]  ;;  %v3441_v39 = vpop.f32.mrf.mxu1 }
  0xec   : > { %v3231_v28 = vsel %vm1143_vm7, %v983_v23, %v1227_v26  ;;  %1818 = vmatpush.msra.mxu0 %v2343_v43  ;;  %1861 = vmatpush.msra.mxu2 %v2354_v54  ;;  %v2432_v12 = vld [vmem:[%s3827_s1 + $0x6f0] sm:$0xff]  ;;  %v2421_v14 = vld [vmem:[%s3827_s1 + $0x698] sm:$0xff]  ;;  %v2396_v17 = vld [vmem:[%s3827_s1 + $0x608] sm:$0xff] }
  0xed   : > { %1396 = vmatmul.f32.gmra.mxu2 %v3231_v28  ;;  %1291 = vmatmul.f32.gmra.mxu0 %v3231_v28  ;;  %v2385_v16 = vld [vmem:[%s3827_s1 + $0x5b0] sm:$0xff]  ;;  %v2431_v20 = vld [vmem:[%s3827_s1 + $0x6e8] sm:$0xff]  ;;  %v2395_v23 = vld [vmem:[%s3827_s1 + $0x600] sm:$0xff] }
  0xee   : > { %1707 = vmatpush.msra.mxu1 %v2307_v44  ;;  %1819 = vmatpush.msra.mxu0 %v2342_v46  ;;  %v2420_v15 = vld [vmem:[%s3827_s1 + $0x690] sm:$0xff]  ;;  %v2384_v22 = vld [vmem:[%s3827_s1 + $0x5a8] sm:$0xff]  ;;  %v2430_v26 = vld [vmem:[%s3827_s1 + $0x6e0] sm:$0xff]  ;;  %v3463_v46 = vpop.f32.mrf.mxu0 }
  0xef   : > { %1749 = vmatpush.msra.mxu3 %v2319_v52  ;;  %1862 = vmatpush.msra.mxu2 %v2353_v60  ;;  %v2419_v25 = vld [vmem:[%s3827_s1 + $0x688] sm:$0xff]  ;;  %v2383_v29 = vld [vmem:[%s3827_s1 + $0x5a0] sm:$0xff]  ;;  %v2394_v31 = vld [vmem:[%s3827_s1 + $0x5f8] sm:$0xff] }
  0xf0   : > { %2260 = vmatmul.msk.f32.gmra.mxu3 %vm268_vm0, %v2787_v48  ;;  %1493 = vmatmul.f32.gmra.mxu1 %v2820_v49  ;;  %v2418_v32 = vld [vmem:[%s3827_s1 + $0x680] sm:$0xff]  ;;  %v2382_v33 = vld [vmem:[%s3827_s1 + $0x598] sm:$0xff]  ;;  %v2381_v41 = vld [vmem:[%s3827_s1 + $0x590] sm:$0xff] }
  0xf1   : > { %1708 = vmatpush.msra.mxu1 %v2306_v51  ;;  %1820 = vmatpush.msra.mxu0 %v2341_v53  ;;  %v2429_v37 = vld [vmem:[%s3827_s1 + $0x6d8] sm:$0xff]  ;;  %v2393_v43 = vld [vmem:[%s3827_s1 + $0x5f0] sm:$0xff]  ;;  %v2380_v50 = vld [vmem:[%s3827_s1 + $0x588] sm:$0xff]  ;;  %v3468_v51 = vpop.f32.mrf.mxu2 }
  0xf2   : > { %1750 = vmatpush.msra.mxu3 %v2318_v56  ;;  %1863 = vmatpush.msra.mxu2 %v2352_v2  ;;  %v2417_v38 = vld [vmem:[%s3827_s1 + $0x678] sm:$0xff]  ;;  %v3443_v40 = vpop.f32.mrf.mxu3  ;;  %v2416_v44 = vld [vmem:[%s3827_s1 + $0x670] sm:$0xff]  ;;  %v2392_v52 = vld [vmem:[%s3827_s1 + $0x5e8] sm:$0xff] }
  0xf3   : > { %1709 = vmatpush.msra.mxu1 %v2305_v55  ;;  %1821 = vmatpush.msra.mxu0 %v2340_v57  ;;  %v2428_v45 = vld [vmem:[%s3827_s1 + $0x6d0] sm:$0xff]  ;;  %v2415_v53 = vld [vmem:[%s3827_s1 + $0x668] sm:$0xff]  ;;  %v2379_v55 = vld [vmem:[%s3827_s1 + $0x580] sm:$0xff]  ;;  %v3488_v57 = vpop.f32.mrf.mxu1 }
  0xf4   : > { %1751 = vmatpush.msra.mxu3 %v2317_v63  ;;  %v2427_v54 = vld [vmem:[%s3827_s1 + $0x6c8] sm:$0xff]  ;;  %v2391_v56 = vld [vmem:[%s3827_s1 + $0x5e0] sm:$0xff] }
  0xf5   : > { %2294 = vmatmul.msk.f32.vlgmr.msrb.gmra.mxu2 %vm268_vm0, %v2705_v21  ;;  %1602 = vmatmul.f32.vlgmr.msrb.gmra.mxu0 %v2746_v27  ;;  %v2426_v63 = vld [vmem:[%s3827_s1 + $0x6c0] sm:$0xff] }
  0xf6   : > { %1710 = vmatpush.msra.mxu1 %v2304_v59  ;;  %1822 = vmatpush.msra.mxu0 %v2339_v61  ;;  %v2414_v59 = vld [vmem:[%s3827_s1 + $0x660] sm:$0xff]  ;;  %v2378_v61 = vld [vmem:[%s3827_s1 + $0x578] sm:$0xff] }
  0xf7   : > { %1964 = vmatpush.msrb.mxu3 %v2398_v4  ;;  %2076 = vmatpush.msrb.mxu2 %v2433_v6  ;;  %v2390_v4 = vld [vmem:[%s3827_s1 + $0x5d8] sm:$0xff] }
  0xf8   : > { %2261 = vmatmul.msk.f32.gmra.mxu3 %vm268_vm0, %v2850_v0  ;;  %1496 = vmatmul.f32.gmra.mxu1 %v2900_v13  ;;  %v2425_v6 = vld [vmem:[%s3827_s1 + $0x6b8] sm:$0xff] }
  0xf9   : > { %1711 = vmatpush.msra.mxu1 %v2303_v62  ;;  %1823 = vmatpush.msra.mxu0 %v2338_v1  ;;  %v3501_v62 = vpop.f32.mrf.mxu0  ;;  %v2413_v1 = vld [vmem:[%s3827_s1 + $0x658] sm:$0xff] }
  0xfa   : > { %1965 = vmatpush.msrb.mxu3 %v2397_v9  ;;  %2077 = vmatpush.msrb.mxu2 %v2432_v12  ;;  %v3493_v60 = vpop.f32.mrf.mxu3  ;;  %v3509_v2 = vpop.f32.mrf.mxu2 }
  0xfb   : > { %1712 = vmatpush.msra.mxu1 %v2302_v3  ;;  %1824 = vmatpush.msra.mxu0 %v2337_v5  ;;  %v2377_v3 = vld [vmem:[%s3827_s1 + $0x570] sm:$0xff] }
  0xfc   : > { %1966 = vmatpush.msrb.mxu3 %v2396_v17  ;;  %2078 = vmatpush.msrb.mxu2 %v2431_v20  ;;  %v2412_v5 = vld [vmem:[%s3827_s1 + $0x650] sm:$0xff]  ;;  %v2388_v20 = vld [vmem:[%s3827_s1 + $0x5c8] sm:$0xff] }
  0xfd   : > { %2295 = vmatmul.msk.f32.gmra.mxu2 %vm268_vm0, %v2787_v48  ;;  %1605 = vmatmul.f32.gmra.mxu0 %v2820_v49 }
  0xfe   : > { %1713 = vmatpush.msra.mxu1 %v2301_v7  ;;  %1825 = vmatpush.msra.mxu0 %v2336_v8  ;;  %v2376_v7 = vld [vmem:[%s3827_s1 + $0x568] sm:$0xff] }
  0xff   : > { %1967 = vmatpush.msrb.mxu3 %v2395_v23  ;;  %2079 = vmatpush.msrb.mxu2 %v2430_v26  ;;  %v2374_v23 = vld [vmem:[%s3827_s1 + $0x558] sm:$0xff] }
 0x100   : > { %2262 = vmatmul.msk.f32.gmra.mxu3 %vm268_vm0, %v2931_v36  ;;  %1499 = vmatmul.f32.gmra.mxu1 %v2964_v35 }
 0x101   : > { %1922 = vmatpush.msrb.mxu1 %v2386_v10  ;;  %2034 = vmatpush.msrb.mxu0 %v2421_v14  ;;  %v2389_v10 = vld [vmem:[%s3827_s1 + $0x5d0] sm:$0xff]  ;;  %v2411_v14 = vld [vmem:[%s3827_s1 + $0x648] sm:$0xff] }
 0x102   : > { %1968 = vmatpush.msrb.mxu3 %v2394_v31  ;;  %2080 = vmatpush.msrb.mxu2 %v2429_v37  ;;  %v2409_v31 = vld [vmem:[%s3827_s1 + $0x638] sm:$0xff]  ;;  %v2387_v37 = vld [vmem:[%s3827_s1 + $0x5c0] sm:$0xff] }
 0x103   : > { %1923 = vmatpush.msrb.mxu1 %v2385_v16  ;;  %2035 = vmatpush.msrb.mxu0 %v2420_v15  ;;  %v2424_v16 = vld [vmem:[%s3827_s1 + $0x6b0] sm:$0xff]  ;;  %v2375_v15 = vld [vmem:[%s3827_s1 + $0x560] sm:$0xff] }
 0x104   : > { %1969 = vmatpush.msrb.mxu3 %v2393_v43  ;;  %2081 = vmatpush.msrb.mxu2 %v2428_v45  ;;  %v2422_v45 = vld [vmem:[%s3827_s1 + $0x6a0] sm:$0xff] }
 0x105   : > { %2296 = vmatmul.msk.f32.gmra.mxu2 %vm268_vm0, %v2850_v0  ;;  %1608 = vmatmul.f32.gmra.mxu0 %v2900_v13  ;;  %v3529_v8 = vpop.f32.mrf.mxu1 }
 0x106   : > { %1924 = vmatpush.msrb.mxu1 %v2384_v22  ;;  %2036 = vmatpush.msrb.mxu0 %v2419_v25  ;;  %v2410_v22 = vld [vmem:[%s3827_s1 + $0x640] sm:$0xff]  ;;  %v2423_v25 = vld [vmem:[%s3827_s1 + $0x6a8] sm:$0xff] }
 0x107   : > { %1970 = vmatpush.msrb.mxu3 %v2392_v52  ;;  %2082 = vmatpush.msrb.mxu2 %v2427_v54  ;;  %v2407_v52 = vld [vmem:[%s3827_s1 + $0x628] sm:$0xff]  ;;  %v2371_v54 = vld [vmem:[%s3827_s1 + $0x540] sm:$0xff] }
 0x108   : > { %2263 = vmatmul.msk.f32.gmra.mxu3 %vm268_vm0, %v2994_v58  ;;  %1502 = vmatmul.f32.gmra.mxu1 %v3041_v11 }
 0x109   : > { %1925 = vmatpush.msrb.mxu1 %v2383_v29  ;;  %2037 = vmatpush.msrb.mxu0 %v2418_v32 }
 0x10a   : > { %1971 = vmatpush.msrb.mxu3 %v2391_v56  ;;  %2083 = vmatpush.msrb.mxu2 %v2426_v63 }
 0x10b   : > { %1926 = vmatpush.msrb.mxu1 %v2382_v33  ;;  %2038 = vmatpush.msrb.mxu0 %v2417_v38  ;;  %v3531_v9 = vpop.f32.mrf.mxu3  ;;  %v2373_v33 = vld [vmem:[%s3827_s1 + $0x550] sm:$0xff] }
 0x10c   : > { %1972 = vmatpush.msrb.mxu3 %v2390_v4  ;;  %2084 = vmatpush.msrb.mxu2 %v2425_v6 }
 0x10d   : > { %2297 = vmatmul.msk.f32.gmra.mxu2 %vm268_vm0, %v2931_v36  ;;  %1611 = vmatmul.f32.gmra.mxu0 %v2964_v35 }
 0x10e   : > { %1927 = vmatpush.msrb.mxu1 %v2381_v41  ;;  %2039 = vmatpush.msrb.mxu0 %v2416_v44  ;;  %v2408_v44 = vld [vmem:[%s3827_s1 + $0x630] sm:$0xff] }
 0x10f   : > { %1973 = vmatpush.msrb.mxu3 %v2389_v10  ;;  %2085 = vmatpush.msrb.mxu2 %v2424_v16 }
 0x110   : > { %2264 = vmatmul.msk.f32.gmra.mxu3 %vm268_vm0, %v3075_v42  ;;  %1505 = vmatmul.f32.gmra.mxu1 %v3109_v47 }
 0x111   : > { %1928 = vmatpush.msrb.mxu1 %v2380_v50  ;;  %2040 = vmatpush.msrb.mxu0 %v2415_v53  ;;  %v2372_v50 = vld [vmem:[%s3827_s1 + $0x548] sm:$0xff] }
 0x112   : > { %v3539_v12 = vpop.f32.mrf.mxu0  ;;  %1974 = vmatpush.msrb.mxu3 %v2388_v20  ;;  %2086 = vmatpush.msrb.mxu2 %v2423_v25 }
 0x113   : > { %1929 = vmatpush.msrb.mxu1 %v2379_v55  ;;  %2041 = vmatpush.msrb.mxu0 %v2414_v59  ;;  %v2406_v55 = vld [vmem:[%s3827_s1 + $0x620] sm:$0xff] }
 0x114   : > { %1975 = vmatpush.msrb.mxu3 %v2387_v37  ;;  %2087 = vmatpush.msrb.mxu2 %v2422_v45 }
 0x115   : > { %2298 = vmatmul.msk.f32.gmra.mxu2 %vm268_vm0, %v2994_v58  ;;  %1614 = vmatmul.f32.gmra.mxu0 %v3041_v11 }
 0x116   : > { %1930 = vmatpush.msrb.mxu1 %v2378_v61  ;;  %2042 = vmatpush.msrb.mxu0 %v2413_v1 }
 0x118   : > { %2265 = vmatmul.msk.f32.gmra.mxu3 %vm268_vm0, %v3176_v24  ;;  %1508 = vmatmul.f32.gmra.mxu1 %v3231_v28  ;;  %v3547_v17 = vpop.f32.mrf.mxu2 }
 0x119   : > { %1931 = vmatpush.msrb.mxu1 %v2377_v3  ;;  %2043 = vmatpush.msrb.mxu0 %v2412_v5 }
 0x11b   : > { %1932 = vmatpush.msrb.mxu1 %v2376_v7  ;;  %2044 = vmatpush.msrb.mxu0 %v2411_v14 }
 0x11d   : > { %2299 = vmatmul.msk.f32.gmra.mxu2 %vm268_vm0, %v3075_v42  ;;  %1617 = vmatmul.f32.gmra.mxu0 %v3109_v47 }
 0x11e   : > { %1933 = vmatpush.msrb.mxu1 %v2375_v15  ;;  %2045 = vmatpush.msrb.mxu0 %v2410_v22 }
 0x120   : > { %2329 = vmatmul.msk.f32.vlgmr.msra.gmra.mxu3 %vm268_vm0, %v2705_v21  ;;  %1714 = vmatmul.f32.vlgmr.msra.gmra.mxu1 %v2746_v27 }
 0x121   : > { %1934 = vmatpush.msrb.mxu1 %v2374_v23  ;;  %2046 = vmatpush.msrb.mxu0 %v2409_v31 }
 0x122   : > { %v1324_v26 = vpop.f32.mrf.mxu1 }
 0x123   : > { %1935 = vmatpush.msrb.mxu1 %v2373_v33  ;;  %2047 = vmatpush.msrb.mxu0 %v2408_v44 }
 0x125   : > { %2300 = vmatmul.msk.f32.gmra.mxu2 %vm268_vm0, %v3176_v24  ;;  %1620 = vmatmul.f32.gmra.mxu0 %v3231_v28 }
 0x126   : > { %1936 = vmatpush.msrb.mxu1 %v2372_v50  ;;  %2048 = vmatpush.msrb.mxu0 %v2407_v52 }
 0x128   : > { %2330 = vmatmul.msk.f32.gmra.mxu3 %vm268_vm0, %v2787_v48  ;;  %1717 = vmatmul.f32.gmra.mxu1 %v2820_v49  ;;  %v1429_v29 = vpop.f32.mrf.mxu3 }
 0x129   : > { %1937 = vmatpush.msrb.mxu1 %v2371_v54  ;;  %2049 = vmatpush.msrb.mxu0 %v2406_v55 }
 0x12d   : > { %2364 = vmatmul.msk.f32.vlgmr.msra.gmra.mxu2 %vm268_vm0, %v2705_v21  ;;  %1826 = vmatmul.f32.vlgmr.msra.gmra.mxu0 %v2746_v27 }
 0x12f   : > { %v1286_v32 = vpop.f32.mrf.mxu0 }
 0x130   : > { %2331 = vmatmul.msk.f32.gmra.mxu3 %vm268_vm0, %v2850_v0  ;;  %1720 = vmatmul.f32.gmra.mxu1 %v2900_v13  ;;  %v3579_v41 = vadd.f32 %v1324_v26, %v1286_v32  ;;  %v1313_v26 = vadd.f32 %v3394_v18, %v3422_v30  ;;  %v1421_v18 = vadd.f32 %v3443_v40, %v3468_v51 }
 0x135   : > { %2365 = vmatmul.msk.f32.gmra.mxu2 %vm268_vm0, %v2787_v48  ;;  %1829 = vmatmul.f32.gmra.mxu0 %v2820_v49  ;;  %v1391_v38 = vpop.f32.mrf.mxu2 }
 0x136   : > { %v3581_v43 = vadd.f32 %v1429_v29, %v1391_v38 }
 0x138   : > { %2332 = vmatmul.msk.f32.gmra.mxu3 %vm268_vm0, %v2931_v36  ;;  %1723 = vmatmul.f32.gmra.mxu1 %v2964_v35  ;;  %v1442_v53 = vmax.f32 %v3579_v41, %v3581_v43 }
 0x13d   : > { %2366 = vmatmul.msk.f32.gmra.mxu2 %vm268_vm0, %v2850_v0  ;;  %1832 = vmatmul.f32.gmra.mxu0 %v2900_v13 }
 0x140   : > { %2333 = vmatmul.msk.f32.gmra.mxu3 %vm268_vm0, %v2994_v58  ;;  %1726 = vmatmul.f32.gmra.mxu1 %v3041_v11  ;;  %v1327_v56 = vpop.f32.mrf.mxu1 }
 0x145   : > { %2367 = vmatmul.msk.f32.gmra.mxu2 %vm268_vm0, %v2931_v36  ;;  %1835 = vmatmul.f32.gmra.mxu0 %v2964_v35 }
 0x146   : > { %v1432_v63 = vpop.f32.mrf.mxu3 }
 0x148   : > { %2334 = vmatmul.msk.f32.gmra.mxu3 %vm268_vm0, %v3075_v42  ;;  %1729 = vmatmul.f32.gmra.mxu1 %v3109_v47 }
 0x14d   : > { %v1289_v59 = vpop.f32.mrf.mxu0  ;;  %2368 = vmatmul.msk.f32.gmra.mxu2 %vm268_vm0, %v2994_v58  ;;  %1838 = vmatmul.f32.gmra.mxu0 %v3041_v11 }
 0x14e   : > { %v3615_v61 = vadd.f32 %v1327_v56, %v1289_v59 }
 0x150   : > { %2335 = vmatmul.msk.f32.gmra.mxu3 %vm268_vm0, %v3176_v24  ;;  %1732 = vmatmul.f32.gmra.mxu1 %v3231_v28 }
 0x153   : > { %v1394_v1 = vpop.f32.mrf.mxu2 }
 0x154   : > { %v3620_v3 = vadd.f32 %v1432_v63, %v1394_v1 }
 0x155   : > { %2369 = vmatmul.msk.f32.gmra.mxu2 %vm268_vm0, %v3075_v42  ;;  %1841 = vmatmul.f32.gmra.mxu0 %v3109_v47 }
 0x156   : > { %v1443_v4 = vmax.f32 %v3615_v61, %v3620_v3 }
 0x158   : > { %2399 = vmatmul.msk.f32.vlgmr.msrb.gmra.mxu3 %vm268_vm0, %v2705_v21  ;;  %1938 = vmatmul.f32.vlgmr.msrb.gmra.mxu1 %v2746_v27 }
 0x15d   : > { %v1330_v5 = vpop.f32.mrf.mxu1  ;;  %2370 = vmatmul.msk.f32.gmra.mxu2 %vm268_vm0, %v3176_v24  ;;  %1844 = vmatmul.f32.gmra.mxu0 %v3231_v28 }
 0x160   : > { %2400 = vmatmul.msk.f32.gmra.mxu3 %vm268_vm0, %v2787_v48  ;;  %1941 = vmatmul.f32.gmra.mxu1 %v2820_v49 }
 0x163   : > { %v1435_v6 = vpop.f32.mrf.mxu3 }
 0x165   : > { %v1491_v7 = vpop.f32.mrf.mxu1  ;;  %2434 = vmatmul.msk.f32.vlgmr.msrb.gmra.mxu2 %vm268_vm0, %v2705_v21  ;;  %2050 = vmatmul.f32.vlgmr.msrb.gmra.mxu0 %v2746_v27  ;;  %v1418_v27 = vadd.f32 %v3396_v19, %v3433_v34 }
 0x167   : > { %v1438_v31 = vmax.f32 %v1313_v26, %v1418_v27 }
 0x168   : > { %2401 = vmatmul.msk.f32.gmra.mxu3 %vm268_vm0, %v2850_v0  ;;  %1944 = vmatmul.f32.gmra.mxu1 %v2900_v13 }
 0x16a   : > { %v1292_v10 = vpop.f32.mrf.mxu0 }
 0x16b   : > { %v1529_v14 = vpop.f32.mrf.mxu3  ;;  %v3642_v16 = vadd.f32 %v1330_v5, %v1292_v10 }
 0x16c   : > { %v1530_v15 = vadd.f32 %v1529_v14, %v1491_v7 }
 0x16d   : > { %v1494_v20 = vpop.f32.mrf.mxu1  ;;  %2435 = vmatmul.msk.f32.gmra.mxu2 %vm268_vm0, %v2787_v48  ;;  %2053 = vmatmul.f32.gmra.mxu0 %v2820_v49 }
 0x16e   : > { %v3661_v32 = vmax.f32 %v1438_v31, %v1530_v15 }
 0x170   : > { %2402 = vmatmul.msk.f32.gmra.mxu3 %vm268_vm0, %v2931_v36  ;;  %1947 = vmatmul.f32.gmra.mxu1 %v2964_v35  ;;  %v1397_v21 = vpop.f32.mrf.mxu2 }
 0x171   : > { %v3652_v22 = vadd.f32 %v1435_v6, %v1397_v21 }
 0x172   : > { %v1603_v23 = vpop.f32.mrf.mxu0 }
 0x173   : > { %v1532_v25 = vpop.f32.mrf.mxu3  ;;  %v1444_v48 = vmax.f32 %v3642_v16, %v3652_v22 }
 0x174   : > { %v1533_v49 = vadd.f32 %v1532_v25, %v1494_v20 }
 0x175   : > { %v1497_v29 = vpop.f32.mrf.mxu1  ;;  %2436 = vmatmul.msk.f32.gmra.mxu2 %vm268_vm0, %v2850_v0  ;;  %2056 = vmatmul.f32.gmra.mxu0 %v2900_v13  ;;  %v1316_v0 = vadd.f32 %v3441_v39, %v3463_v46  ;;  %v1424_v39 = vadd.f32 %v3493_v60, %v3509_v2 }
 0x177   : > { %v1439_v44 = vmax.f32 %v1316_v0, %v1421_v18 }
 0x178   : > { %2403 = vmatmul.msk.f32.gmra.mxu3 %vm268_vm0, %v2994_v58  ;;  %1950 = vmatmul.f32.gmra.mxu1 %v3041_v11  ;;  %v1641_v19 = vpop.f32.mrf.mxu2 }
 0x179   : > { %v3668_v30 = vadd.f32 %v1641_v19, %v1603_v23  ;;  %v3677_v45 = vmax.f32 %v1439_v44, %v1533_v49 }
 0x17a   : > { %v1606_v34 = vpop.f32.mrf.mxu0 }
 0x17b   : > { %v1535_v33 = vpop.f32.mrf.mxu3  ;;  %v1662_v13 = vmax.f32 %v3661_v32, %v3668_v30 }
 0x17c   : > { %v1536_v37 = vadd.f32 %v1535_v33, %v1497_v29 }
 0x17d   : > { %v1500_v38 = vpop.f32.mrf.mxu1  ;;  %2437 = vmatmul.msk.f32.gmra.mxu2 %vm268_vm0, %v2931_v36  ;;  %2059 = vmatmul.f32.gmra.mxu0 %v2964_v35  ;;  %v1319_v36 = vadd.f32 %v3488_v57, %v3501_v62  ;;  %v1427_v57 = vadd.f32 %v3531_v9, %v3547_v17 }
 0x17f   : > { %v1440_v55 = vmax.f32 %v1319_v36, %v1424_v39 }
 0x180   : > { %2404 = vmatmul.msk.f32.gmra.mxu3 %vm268_vm0, %v3075_v42  ;;  %1953 = vmatmul.f32.gmra.mxu1 %v3109_v47  ;;  %v1644_v40 = vpop.f32.mrf.mxu2 }
 0x181   : > { %v3684_v46 = vadd.f32 %v1644_v40, %v1606_v34  ;;  %v3693_v56 = vmax.f32 %v1440_v55, %v1536_v37 }
 0x182   : > { %v1609_v51 = vpop.f32.mrf.mxu0 }
 0x183   : > { %v1538_v50 = vpop.f32.mrf.mxu3  ;;  %v1663_v35 = vmax.f32 %v3677_v45, %v3684_v46 }
 0x184   : > { %v1539_v52 = vadd.f32 %v1538_v50, %v1500_v38 }
 0x185   : > { %v1503_v54 = vpop.f32.mrf.mxu1  ;;  %2438 = vmatmul.msk.f32.gmra.mxu2 %vm268_vm0, %v2994_v58  ;;  %2062 = vmatmul.f32.gmra.mxu0 %v3041_v11  ;;  %v1322_v58 = vadd.f32 %v3529_v8, %v3539_v12 }
 0x187   : > { %v1441_v5 = vmax.f32 %v1322_v58, %v1427_v57 }
 0x188   : > { %2405 = vmatmul.msk.f32.gmra.mxu3 %vm268_vm0, %v3176_v24  ;;  %1956 = vmatmul.f32.gmra.mxu1 %v3231_v28  ;;  %v1647_v60 = vpop.f32.mrf.mxu2 }
 0x189   : > { %v3700_v62 = vadd.f32 %v1647_v60, %v1609_v51  ;;  %v3714_v17 = vmax.f32 %v1441_v5, %v1539_v52 }
 0x18a   : > { %v1612_v2 = vpop.f32.mrf.mxu0 }
 0x18b   : > { %v1541_v59 = vpop.f32.mrf.mxu3  ;;  %v1664_v11 = vmax.f32 %v3693_v56, %v3700_v62 }
 0x18c   : > { %v1542_v63 = vadd.f32 %v1541_v59, %v1503_v54 }
 0x18d   : > { %v1506_v1 = vpop.f32.mrf.mxu1  ;;  %2439 = vmatmul.msk.f32.gmra.mxu2 %vm268_vm0, %v3075_v42  ;;  %2065 = vmatmul.f32.gmra.mxu0 %v3109_v47 }
 0x18e   : > { %v3712_v9 = vmax.f32 %v1442_v53, %v1542_v63 }
 0x190   : > { %v1650_v6 = vpop.f32.mrf.mxu2 }
 0x191   : > { %v3716_v8 = vadd.f32 %v1650_v6, %v1612_v2 }
 0x192   : > { %v1615_v12 = vpop.f32.mrf.mxu0 }
 0x193   : > { %v1544_v7 = vpop.f32.mrf.mxu3  ;;  %v1665_v10 = vmax.f32 %v3714_v17, %v3716_v8 }
 0x194   : > { %v1545_v14 = vadd.f32 %v1544_v7, %v1506_v1 }
 0x195   : > { %v1509_v15 = vpop.f32.mrf.mxu1  ;;  %2440 = vmatmul.msk.f32.gmra.mxu2 %vm268_vm0, %v3176_v24  ;;  %2068 = vmatmul.f32.gmra.mxu0 %v3231_v28 }
 0x196   : > { %v3726_v42 = vmax.f32 %v1443_v4, %v1545_v14 }
 0x198   : > { %v1653_v47 = vpop.f32.mrf.mxu2 }
 0x199   : > { %v3728_v41 = vadd.f32 %v1653_v47, %v1615_v12 }
 0x19a   : > { %v1618_v43 = vpop.f32.mrf.mxu0 }
 0x19b   : > { %v1547_v53 = vpop.f32.mrf.mxu3  ;;  %v1666_v20 = vmax.f32 %v3712_v9, %v3728_v41 }
 0x19c   : > { %v1548_v21 = vadd.f32 %v1547_v53, %v1509_v15 }
 0x19d   : > { %v1715_v27 = vpop.f32.mrf.mxu1 }
 0x19e   : > { %v3735_v24 = vmax.f32 %v1444_v48, %v1548_v21 }
 0x1a0   : > { %v1656_v28 = vpop.f32.mrf.mxu2 }
 0x1a1   : > { %v3737_v23 = vadd.f32 %v1656_v28, %v1618_v43 }
 0x1a2   : > { %v1621_v61 = vpop.f32.mrf.mxu0 }
 0x1a3   : > { %v1753_v3 = vpop.f32.mrf.mxu3  ;;  %v1667_v4 = vmax.f32 %v3726_v42, %v3737_v23 }
 0x1a4   : > { %v1754_v1 = vadd.f32 %v1753_v3, %v1715_v27 }
 0x1a5   : > { %v1718_v25 = vpop.f32.mrf.mxu1 }
 0x1a6   : > { %v1774_v12 = vmax.f32 %v1662_v13, %v1754_v1 }
 0x1a8   : > { %v1659_v26 = vpop.f32.mrf.mxu2 }
 0x1a9   : > { %v3741_v49 = vadd.f32 %v1659_v26, %v1621_v61 }
 0x1aa   : > { %v1827_v29 = vpop.f32.mrf.mxu0 }
 0x1ab   : > { %v1756_v31 = vpop.f32.mrf.mxu3  ;;  %v1668_v19 = vmax.f32 %v3735_v24, %v3741_v49 }
 0x1ac   : > { %v1757_v53 = vadd.f32 %v1756_v31, %v1718_v25 }
 0x1ad   : > { %v1721_v16 = vpop.f32.mrf.mxu1 }
 0x1ae   : > { %v1775_v27 = vmax.f32 %v1663_v35, %v1757_v53 }
 0x1b0   : > { %v1865_v22 = vpop.f32.mrf.mxu2 }
 0x1b1   : > { %v1866_v7 = vadd.f32 %v1865_v22, %v1827_v29 }
 0x1b2   : > { %v1830_v48 = vpop.f32.mrf.mxu0 }
 0x1b3   : > { %v1759_v18 = vpop.f32.mrf.mxu3  ;;  %v1886_v43 = vmax.f32 %v1774_v12, %v1866_v7 }
 0x1b4   : > { %v1760_v31 = vadd.f32 %v1759_v18, %v1721_v16 }
 0x1b5   : > { %v1724_v34 = vpop.f32.mrf.mxu1 }
 0x1b6   : > { %v1776_v35 = vmax.f32 %v1664_v11, %v1760_v31 }
 0x1b8   : > { %v1868_v33 = vpop.f32.mrf.mxu2 }
 0x1b9   : > { %v1869_v3 = vadd.f32 %v1868_v33, %v1830_v48 }
 0x1ba   : > { %v1833_v0 = vpop.f32.mrf.mxu0 }
 0x1bb   : > { %v1762_v37 = vpop.f32.mrf.mxu3  ;;  %v1887_v29 = vmax.f32 %v1775_v27, %v1869_v3 }
 0x1bc   : > { %v1763_v7 = vadd.f32 %v1762_v37, %v1724_v34 }
 0x1bd   : > { %v3745_v38 = vpop.f32.mrf.mxu1 }
 0x1c0   : > { %v1871_v44 = vpop.f32.mrf.mxu2 }
 0x1c1   : > { %v1872_v22 = vadd.f32 %v1871_v44, %v1833_v0 }
 0x1c2   : > { %v1836_v40 = vpop.f32.mrf.mxu0 }
 0x1c3   : > { %v3747_v39 = vpop.f32.mrf.mxu3 }
 0x1c4   : > { %v1766_v34 = vadd.f32 %v3747_v39, %v3745_v38 }
 0x1c5   : > { %v3749_v51 = vpop.f32.mrf.mxu1 }
 0x1c6   : > { %v1778_v17 = vmax.f32 %v1666_v20, %v1766_v34 }
 0x1c8   : > { %v1874_v50 = vpop.f32.mrf.mxu2 }
 0x1c9   : > { %v1875_v56 = vadd.f32 %v1874_v50, %v1836_v40 }
 0x1ca   : > { %v3751_v36 = vpop.f32.mrf.mxu0 }
 0x1cb   : > { %v3753_v52 = vpop.f32.mrf.mxu3 }
 0x1cc   : > { %v1769_v38 = vadd.f32 %v3753_v52, %v3749_v51 }
 0x1cd   : > { %v3755_v54 = vpop.f32.mrf.mxu1 }
 0x1ce   : > { %v1779_v9 = vmax.f32 %v1667_v4, %v1769_v38 }
 0x1d0   : > { %v3757_v55 = vpop.f32.mrf.mxu2 }
 0x1d1   : > { %v1878_v8 = vadd.f32 %v3757_v55, %v3751_v36 }
 0x1d2   : > { %v3759_v60 = vpop.f32.mrf.mxu0 }
 0x1d3   : > { %v3761_v57 = vpop.f32.mrf.mxu3 }
 0x1d4   : > { %v1772_v51 = vadd.f32 %v3761_v57, %v3755_v54 }
 0x1d5   : > { %v1939_v2 = vpop.f32.mrf.mxu1 }
 0x1d6   : > { %v1780_v23 = vmax.f32 %v1668_v19, %v1772_v51 }
 0x1d8   : > { %v3763_v59 = vpop.f32.mrf.mxu2 }
 0x1d9   : > { %v1881_v41 = vadd.f32 %v3763_v59, %v3759_v60 }
 0x1da   : > { %v3765_v58 = vpop.f32.mrf.mxu0 }
 0x1db   : > { %v1977_v63 = vpop.f32.mrf.mxu3 }
 0x1dc   : > { %v1978_v47 = vadd.f32 %v1977_v63, %v1939_v2 }
 0x1dd   : > { %v1942_v5 = vpop.f32.mrf.mxu1 }
 0x1de   : > { %v1998_v21 = vmax.f32 %v1886_v43, %v1978_v47 }
 0x1e0   : > { %v3769_v6 = vpop.f32.mrf.mxu2 }
 0x1e1   : > { %v1884_v4 = vadd.f32 %v3769_v6, %v3765_v58 }
 0x1e2   : > { %v2051_v14 = vpop.f32.mrf.mxu0 }
 0x1e3   : > { %v1980_v15 = vpop.f32.mrf.mxu3 }
 0x1e4   : > { %v1981_v25 = vadd.f32 %v1980_v15, %v1942_v5  ;;  %v1888_v5 = vmax.f32 %v1776_v35, %v1872_v22 }
 0x1e5   : > { %v1945_v28 = vpop.f32.mrf.mxu1 }
 0x1e6   : > { %v1999_v45 = vmax.f32 %v1887_v29, %v1981_v25  ;;  %v1892_v29 = vmax.f32 %v1780_v23, %v1884_v4 }
 0x1e8   : > { %v2089_v61 = vpop.f32.mrf.mxu2 }
 0x1e9   : > { %v2090_v26 = vadd.f32 %v2089_v61, %v2051_v14  ;;  %v1777_v14 = vmax.f32 %v1665_v10, %v1763_v7 }
 0x1ea   : > { %v2054_v32 = vpop.f32.mrf.mxu0 }
 0x1eb   : > { %v1983_v30 = vpop.f32.mrf.mxu3  ;;  %v2110_v13 = vmax.f32 %v1998_v21, %v2090_v26  ;;  %v1889_v43 = vmax.f32 %v1777_v14, %v1875_v56 }
 0x1ec   : > { %v1984_v12 = vadd.f32 %v1983_v30, %v1945_v28  ;;  %v1890_v28 = vmax.f32 %v1778_v17, %v1878_v8 }
 0x1ed   : > { %2118 = vst.msk [vmem:[%s3780_s4] sm:$0xff] %vm2117_vm8, %v2110_v13  ;;  %v1948_v33 = vpop.f32.mrf.mxu1 }
 0x1ee   : > { %v2000_v16 = vmax.f32 %v1888_v5, %v1984_v12 }
 0x1f0   : > { %v2092_v46 = vpop.f32.mrf.mxu2 }
 0x1f1   : > { %v2093_v48 = vadd.f32 %v2092_v46, %v2054_v32  ;;  %v1891_v32 = vmax.f32 %v1779_v9, %v1881_v41 }
 0x1f2   : > { %v2057_v2 = vpop.f32.mrf.mxu0 }
 0x1f3   : > { %v1986_v63 = vpop.f32.mrf.mxu3  ;;  %v2111_v1 = vmax.f32 %v1999_v45, %v2093_v48 }
 0x1f4   : > { %v1987_v44 = vadd.f32 %v1986_v63, %v1948_v33 }
 0x1f5   : > { %2119 = vst.msk [vmem:[%s3780_s4 + $0x8] sm:$0xff] %vm2117_vm8, %v2111_v1  ;;  %v1951_v15 = vpop.f32.mrf.mxu1 }
 0x1f6   : > { %v2001_v37 = vmax.f32 %v1889_v43, %v1987_v44 }
 0x1f8   : > { %v2095_v18 = vpop.f32.mrf.mxu2 }
 0x1f9   : > { %v2096_v62 = vadd.f32 %v2095_v18, %v2057_v2 }
 0x1fa   : > { %v2060_v11 = vpop.f32.mrf.mxu0 }
 0x1fb   : > { %v2112_v0 = vmax.f32 %v2000_v16, %v2096_v62  ;;  %v1989_v47 = vpop.f32.mrf.mxu3 }
 0x1fc   : > { %v1990_v21 = vadd.f32 %v1989_v47, %v1951_v15 }
 0x1fd   : > { %2120 = vst.msk [vmem:[%s3780_s4 + $0x10] sm:$0xff] %vm2117_vm8, %v2112_v0  ;;  %v1954_v39 = vpop.f32.mrf.mxu1 }
 0x1fe   : > { %v2002_v27 = vmax.f32 %v1890_v28, %v1990_v21 }
 0x200   : > { %v2098_v53 = vpop.f32.mrf.mxu2 }
 0x201   : > { %v2099_v10 = vadd.f32 %v2098_v53, %v2060_v11 }
 0x202   : > { %v2063_v40 = vpop.f32.mrf.mxu0 }
 0x203   : > { %v2113_v50 = vmax.f32 %v2001_v37, %v2099_v10  ;;  %v1992_v61 = vpop.f32.mrf.mxu3 }
 0x204   : > { %v1993_v55 = vadd.f32 %v1992_v61, %v1954_v39 }
 0x205   : > { %2121 = vst.msk [vmem:[%s3780_s4 + $0x18] sm:$0xff] %vm2117_vm8, %v2113_v50  ;;  %v1957_v30 = vpop.f32.mrf.mxu1 }
 0x206   : > { %v2003_v52 = vmax.f32 %v1891_v32, %v1993_v55 }
 0x208   : > { %v2101_v3 = vpop.f32.mrf.mxu2 }
 0x209   : > { %v2102_v20 = vadd.f32 %v2101_v3, %v2063_v40 }
 0x20a   : > { %v2066_v26 = vpop.f32.mrf.mxu0 }
 0x20b   : > { %v2114_v36 = vmax.f32 %v2002_v27, %v2102_v20  ;;  %v1995_v42 = vpop.f32.mrf.mxu3 }
 0x20c   : > { %v1996_v25 = vadd.f32 %v1995_v42, %v1957_v30 }
 0x20d   : > { %2122 = vst.msk [vmem:[%s3780_s4 + $0x20] sm:$0xff] %vm2117_vm8, %v2114_v36 }
 0x20e   : > { %v2004_v57 = vmax.f32 %v1892_v29, %v1996_v25 }
 0x210   : > { %v2104_v13 = vpop.f32.mrf.mxu2 }
 0x211   : > { %v2105_v60 = vadd.f32 %v2104_v13, %v2066_v26 }
 0x212   : > { %v2069_v54 = vpop.f32.mrf.mxu0 }
 0x213   : > { %v2115_v59 = vmax.f32 %v2003_v52, %v2105_v60 }
 0x215   : > { %2123 = vst.msk [vmem:[%s3780_s4 + $0x28] sm:$0xff] %vm2117_vm8, %v2115_v59 }
 0x218   : > { %v2107_v31 = vpop.f32.mrf.mxu2 }
 0x219   : > { %v2108_v45 = vadd.f32 %v2107_v31, %v2069_v54 }
 0x21b   : > { %v2116_v46 = vmax.f32 %v2004_v57, %v2108_v45 }
 0x21d   : > { %2124 = vst.msk [vmem:[%s3780_s4 + $0x30] sm:$0xff] %vm2117_vm8, %v2116_v46 }
 0x21e PF: > { %s12_s9 = sadd.s32 1, %s2458_s9  }
 0x21f   : > { %p9_p5 = scmp.ge.s32.totalorder %s12_s9, 5  }
 0x221   :  { %11 = sbr.rel (!%p9_p5) target bundleno = 1 (0x1), region = 65 }

</bundles_post_ra>
